<compile_context>
chip_gen: v7x
topology: tpu7x:2x2x1
jax: 0.10.0
libtpu: 0.0.40
codegen_flags: <defaults>
</compile_context>

<pallas_src>
import functools

import jax
import jax.numpy as jnp
from jax import lax
from jax.experimental import pallas as pl
from jax.experimental.pallas import tpu as pltpu

KH = KW = 3  # kernel_size=3, stride=1, padding=1


def _sft_kernel(feat_ref, cond_ref, w0_ref, b0_ref, w1_ref, b1_ref, o_ref,
                xp_ref, ap_ref, *, H, W, TH, Cf, Cd, Co, num_h_tiles):
    # feat_ref: (H, W, Cf)      full-image features  (resident across h tiles)
    # cond_ref: (H, W, Cd)      full-image conditions (resident across h tiles)
    # w0_ref:   (9, Cc, 2*Cc)   per-tap conv0 weights  [scale | shift] on N
    # b0_ref:   (1, 2*Cc)
    # w1_ref:   (9, 2*Cc, 2*Co) per-tap block-diagonal conv1 weights
    # b1_ref:   (1, 2*Co)
    # o_ref:    (TH, W, Co)     output tile
    # xp_ref:   (TH+4, W+2, Cc) zero-padded concat input tile (scratch)
    # ap_ref:   (TH+2, W+2, 2Cc) zero-padded conv0 activations (scratch)
    Cc = Cf + Cd
    C2 = 2 * Cc
    t = pl.program_id(1)
    r0 = pl.multiple_of(t * TH, TH)          # first output row of this tile
    last = num_h_tiles - 1

    # ---------------------------------------------------------------- stage 0
    # Zero-padded, channel-concatenated input tile in VMEM.
    # xp row d  <->  absolute input row (r0 - 2 + d);  xp col e <-> col (e-1).
    xp_ref[...] = jnp.zeros_like(xp_ref)

    def copy_rows(src_start, dst_start, nrows):
        xcat = jnp.concatenate(
            [feat_ref[pl.ds(src_start, nrows), :, :],
             cond_ref[pl.ds(src_start, nrows), :, :]], axis=-1)
        xp_ref[pl.ds(dst_start, nrows), 1:W + 1, :] = xcat

    if num_h_tiles == 1:
        copy_rows(0, 2, H)                                # whole image
    else:
        @pl.when(t == 0)
        def _():
            copy_rows(0, 2, TH + 2)                       # top image border

        @pl.when(t == last)
        def _():
            copy_rows(r0 - 2, 0, TH + 2)                  # bottom image border

        if num_h_tiles > 2:
            @pl.when(jnp.logical_and(t > 0, t < last))
            def _():
                copy_rows(r0 - 2, 0, TH + 4)              # interior tile

    # ---------------------------------------------------------------- stage 1
    # conv0 (scale & shift packed on the N axis) over TH + 2 rows (the extra
    # top/bottom row is the halo conv1 needs), 9 tap dots accumulated in vregs.
    M0 = (TH + 2) * W
    acc0 = jnp.zeros((M0, C2), jnp.float32)
    for kh in range(KH):
        for kw in range(KW):
            idx = kh * KW + kw
            slab = xp_ref[kh:kh + TH + 2, kw:kw + W, :]       # (TH+2, W, Cc)
            acc0 = acc0 + jnp.dot(slab.reshape(M0, Cc), w0_ref[idx],
                                  preferred_element_type=jnp.float32)
    a0 = acc0 + b0_ref[...]
    a0 = jnp.where(a0 > 0, a0, 0.1 * a0)                      # leaky_relu(0.1)
    a0 = a0.reshape(TH + 2, W, C2)

    # Halo rows that fall outside the image are conv1's zero padding.
    row_abs = r0 - 1 + lax.broadcasted_iota(jnp.int32, (TH + 2, 1, 1), 0)
    a0 = jnp.where(jnp.logical_and(row_abs >= 0, row_abs < H), a0, 0.0)

    ap_ref[...] = jnp.zeros_like(ap_ref)
    ap_ref[:, 1:W + 1, :] = a0

    # ---------------------------------------------------------------- stage 2
    # conv1 (both branches via block-diagonal per-tap weights) + sigmoid +
    # the final features * scale + shift over the TH output rows.
    M1 = TH * W
    acc1 = jnp.zeros((M1, 2 * Co), jnp.float32)
    for kh in range(KH):
        for kw in range(KW):
            idx = kh * KW + kw
            slab = ap_ref[kh:kh + TH, kw:kw + W, :]           # (TH, W, 2Cc)
            acc1 = acc1 + jnp.dot(slab.reshape(M1, C2), w1_ref[idx],
                                  preferred_element_type=jnp.float32)
    y = acc1 + b1_ref[...]

    scale = 1.0 / (1.0 + jnp.exp(-y[:, :Co]))                 # sigmoid
    shift = y[:, Co:]
    f = feat_ref[pl.ds(r0, TH), :, :].reshape(M1, Co)
    out = f * scale + shift                                   # (M1, Co)

    o_ref[...] = out.reshape(TH, W, Co).astype(o_ref.dtype)


def _pick_row_tile(H):
    # Largest row tile that keeps >= 2 tiles (pipeline depth / v7x 2-TC
    # sharding) and keeps the output H-block a multiple of 8.
    for th in (64, 32, 16, 8):
        if H % th == 0 and H // th >= 2:
            return th
    return H                       # single full-dim tile (always legal)


def sft_layer_nhwc(features, conditions, w0, b0, w1, b1):
    """Fused SFT layer on NHWC inputs. Returns (N, H, W, Co)."""
    N, H, W, Cf = features.shape
    Cd = conditions.shape[-1]
    Cc = Cf + Cd
    Co = Cf
    TH = _pick_row_tile(H)
    num_h_tiles = H // TH

    kernel = functools.partial(
        _sft_kernel, H=H, W=W, TH=TH, Cf=Cf, Cd=Cd, Co=Co,
        num_h_tiles=num_h_tiles)

    return pl.pallas_call(
        kernel,
        out_shape=jax.ShapeDtypeStruct((N, H, W, Co), features.dtype),
        grid_spec=pltpu.PrefetchScalarGridSpec(
            num_scalar_prefetch=0,
            grid=(N, num_h_tiles),
            in_specs=[
                # Full-image blocks; index maps ignore t so they stay
                # resident across the row-tile axis (fetched once per n).
                pl.BlockSpec((None, H, W, Cf), lambda n, t: (n, 0, 0, 0)),
                pl.BlockSpec((None, H, W, Cd), lambda n, t: (n, 0, 0, 0)),
                pl.BlockSpec((KH * KW, Cc, 2 * Cc), lambda n, t: (0, 0, 0)),
                pl.BlockSpec((1, 2 * Cc), lambda n, t: (0, 0)),
                pl.BlockSpec((KH * KW, 2 * Cc, 2 * Co), lambda n, t: (0, 0, 0)),
                pl.BlockSpec((1, 2 * Co), lambda n, t: (0, 0)),
            ],
            out_specs=pl.BlockSpec((None, TH, W, Co),
                                   lambda n, t: (n, t, 0, 0)),
            scratch_shapes=[
                pltpu.VMEM((TH + 4, W + 2, Cc), jnp.float32),       # padded in
                pltpu.VMEM((TH + 2, W + 2, 2 * Cc), jnp.float32),   # padded a0
            ],
        ),
        compiler_params=pltpu.CompilerParams(
            dimension_semantics=("parallel", "parallel"),
        ),
    )(features, conditions, w0, b0, w1, b1)


class SFTlayerPallas:
    """JAX/Pallas port of SFTlayer (forward only).

    Supports the defaults kernel_size=3, stride=1, padding=1, bias=True.
    """

    def __init__(self, base_feature_ch, condition_ch, stage, key,
                 kernel_size=3, stride=1, padding=1, bias=True,
                 activation='prelu', norm=None, weight_norm=False):
        assert kernel_size == 3 and stride == 1 and padding == 1 and bias
        # TODO(synk): weight_norm=True is only a reparametrization; fold the
        # g/v factors into the packed weights at init if it is ever needed.
        assert not weight_norm
        Cc = stage * base_feature_ch + condition_ch
        Co = stage * base_feature_ch
        self.Cc, self.Co = Cc, Co

        def conv_init(kw_, kb_, cin, cout):
            # PyTorch Conv2d default-style uniform(+-1/sqrt(fan_in)) init.
            bound = 1.0 / float(cin * KH * KW) ** 0.5
            w = jax.random.uniform(kw_, (cout, cin, KH, KW), jnp.float32,
                                   -bound, bound)                 # OIHW
            b = jax.random.uniform(kb_, (cout,), jnp.float32, -bound, bound)
            return w, b

        ks = jax.random.split(key, 8)
        ws0, bs0 = conv_init(ks[0], ks[1], Cc, Cc)   # SFT_scale_conv0
        ws1, bs1 = conv_init(ks[2], ks[3], Cc, Co)   # SFT_scale_conv1
        wt0, bt0 = conv_init(ks[4], ks[5], Cc, Cc)   # SFT_shift_conv0
        wt1, bt1 = conv_init(ks[6], ks[7], Cc, Co)   # SFT_shift_conv1

        def hwio(w_oihw):
            return jnp.transpose(w_oihw, (2, 3, 1, 0))            # OIHW->HWIO

        # Raw params for the pure-XLA reference.
        self.raw = dict(ws0=hwio(ws0), bs0=bs0, ws1=hwio(ws1), bs1=bs1,
                        wt0=hwio(wt0), bt0=bt0, wt1=hwio(wt1), bt1=bt1)

        # MXU-ready per-tap packed weights (built once on the host side).
        #  conv0: scale & shift share the input -> pack on the N axis.
        self.w0 = jnp.concatenate([hwio(ws0), hwio(wt0)],
                                  axis=3).reshape(KH * KW, Cc, 2 * Cc)
        self.b0 = jnp.concatenate([bs0, bt0]).reshape(1, 2 * Cc)
        #  conv1: different inputs per branch -> block-diagonal on (K, N).
        z = jnp.zeros((KH, KW, Cc, Co), jnp.float32)
        w1 = jnp.concatenate(
            [jnp.concatenate([hwio(ws1), z], axis=3),
             jnp.concatenate([z, hwio(wt1)], axis=3)], axis=2)    # (3,3,2Cc,2Co)
        self.w1 = w1.reshape(KH * KW, 2 * Cc, 2 * Co)
        self.b1 = jnp.concatenate([bs1, bt1]).reshape(1, 2 * Co)

    def __call__(self, features_nchw, conditions_nchw):
        f = jnp.transpose(features_nchw, (0, 2, 3, 1))
        c = jnp.transpose(conditions_nchw, (0, 2, 3, 1))
        y = sft_layer_nhwc(f, c, self.w0, self.b0, self.w1, self.b1)
        return jnp.transpose(y, (0, 3, 1, 2))                     # back to NCHW


def _reference(features_nchw, conditions_nchw, p):
    """Pure-JAX (XLA) reference for the same forward pass."""
    f = jnp.transpose(features_nchw, (0, 2, 3, 1))
    c = jnp.transpose(conditions_nchw, (0, 2, 3, 1))
    x = jnp.concatenate([f, c], axis=-1)

    def conv(v, w_hwio, b):
        y = lax.conv_general_dilated(
            v, w_hwio, window_strides=(1, 1), padding=((1, 1), (1, 1)),
            dimension_numbers=('NHWC', 'HWIO', 'NHWC'))
        return y + b.reshape(1, 1, 1, -1)

    def lrelu(v):
        return jnp.where(v > 0, v, 0.1 * v)

    scale = jax.nn.sigmoid(conv(lrelu(conv(x, p['ws0'], p['bs0'])),
                                p['ws1'], p['bs1']))
    shift = conv(lrelu(conv(x, p['wt0'], p['bt0'])), p['wt1'], p['bt1'])
    out = f * scale + shift
    return jnp.transpose(out, (0, 3, 1, 2))


if __name__ == "__main__":
    key = jax.random.PRNGKey(0)
    k_f, k_c, k_p = jax.random.split(key, 3)

    base_feature_ch, condition_ch, stage = 16, 16, 1
    N, H, W = 2, 16, 16
    Cf = stage * base_feature_ch                    # feature channels = 16

    features = jax.random.normal(k_f, (N, Cf, H, W), jnp.float32)
    conditions = jax.random.normal(k_c, (N, condition_ch, H, W), jnp.float32)

    layer = SFTlayerPallas(base_feature_ch, condition_ch, stage, k_p)

    out = jax.block_until_ready(layer(features, conditions))
    ref = jax.block_until_ready(_reference(features, conditions, layer.raw))

    assert out.shape == (N, Cf, H, W), out.shape
    assert out.dtype == jnp.float32
    max_err = float(jnp.max(jnp.abs(out - ref)))
    assert jnp.allclose(out, ref, atol=1e-3, rtol=1e-3), max_err
    print("KERNEL_OK")
</pallas_src>

<mosaic_0001>
module attributes {stable_mosaic.version = 11 : i64} {
  func.func @_sft_kernel(%arg0: i32, %arg1: i32, %arg2: memref<1x16x16x16xf32, #tpu.memory_space<vmem>>, %arg3: memref<1x16x16x16xf32, #tpu.memory_space<vmem>>, %arg4: memref<9x32x64xf32, #tpu.memory_space<vmem>>, %arg5: memref<1x64xf32, #tpu.memory_space<vmem>>, %arg6: memref<9x64x32xf32, #tpu.memory_space<vmem>>, %arg7: memref<1x32xf32, #tpu.memory_space<vmem>>, %arg8: memref<1x8x16x16xf32, #tpu.memory_space<vmem>>, %arg9: memref<12x18x32xf32, #tpu.memory_space<vmem>>, %arg10: memref<10x18x64xf32, #tpu.memory_space<vmem>>) attributes {dimension_semantics = [#tpu.dimension_semantics<parallel>, #tpu.dimension_semantics<parallel>], iteration_bounds = array<i64: 2, 2>, scalar_prefetch = 0 : i64, scratch_operands = 2 : i64, tpu.core_type = #tpu.core_type<tc>, window_params = [{transform_indices = @transform_0, window_bounds = array<i64: 1, 16, 16, 16>}, {transform_indices = @transform_1, window_bounds = array<i64: 1, 16, 16, 16>}, {pipeline_mode = #tpu.pipeline_mode<synchronous>, transform_indices = @transform_2, window_bounds = array<i64: 9, 32, 64>}, {pipeline_mode = #tpu.pipeline_mode<synchronous>, transform_indices = @transform_3, window_bounds = array<i64: 1, 64>}, {pipeline_mode = #tpu.pipeline_mode<synchronous>, transform_indices = @transform_4, window_bounds = array<i64: 9, 64, 32>}, {pipeline_mode = #tpu.pipeline_mode<synchronous>, transform_indices = @transform_5, window_bounds = array<i64: 1, 32>}, {transform_indices = @transform_6, window_bounds = array<i64: 1, 8, 16, 16>}]} {
    %c8_i32 = arith.constant 8 : i32
    %0 = arith.muli %arg1, %c8_i32 : i32
    %1 = tpu.assume_multiple %0, 8 : i32
    %cst = arith.constant 0.000000e+00 : f32
    %2 = vector.broadcast %cst : f32 to vector<12x18x32xf32>
    %c0 = arith.constant 0 : index
    %c0_0 = arith.constant 0 : index
    %c0_1 = arith.constant 0 : index
    %3 = vector.load %arg9[%c0, %c0_0, %c0_1] : memref<12x18x32xf32, #tpu.memory_space<vmem>>, vector<12x18x32xf32>
    tpu.vector_store %arg9[%c0, %c0_0, %c0_1], %2 {strides = array<i32>} : memref<12x18x32xf32, #tpu.memory_space<vmem>>, vector<12x18x32xf32>,
    %c0_i32 = arith.constant 0 : i32
    %4 = arith.cmpi eq, %arg1, %c0_i32 : i32
    %5 = arith.extui %4 : i1 to i32
    %c0_i32_2 = arith.constant 0 : i32
    %6 = arith.cmpi ne, %5, %c0_i32_2 : i32
    scf.if %6 {
      %c0_150 = arith.constant 0 : index
      %c0_151 = arith.constant 0 : index
      %c0_152 = arith.constant 0 : index
      %c0_153 = arith.constant 0 : index
      %167 = vector.load %arg2[%c0_150, %c0_151, %c0_152, %c0_153] : memref<1x16x16x16xf32, #tpu.memory_space<vmem>>, vector<1x10x16x16xf32>
      %168 = vector.shape_cast %167 : vector<1x10x16x16xf32> to vector<10x16x16xf32>
      %c0_154 = arith.constant 0 : index
      %c0_155 = arith.constant 0 : index
      %c0_156 = arith.constant 0 : index
      %c0_157 = arith.constant 0 : index
      %169 = vector.load %arg3[%c0_154, %c0_155, %c0_156, %c0_157] : memref<1x16x16x16xf32, #tpu.memory_space<vmem>>, vector<1x10x16x16xf32>
      %170 = vector.shape_cast %169 : vector<1x10x16x16xf32> to vector<10x16x16xf32>
      %171 = tpu.concatenate %168, %170 in 2 : vector<10x16x16xf32>, vector<10x16x16xf32> -> vector<10x16x32xf32>
      %c2_158 = arith.constant 2 : index
      %c1_159 = arith.constant 1 : index
      %c0_160 = arith.constant 0 : index
      %172 = vector.load %arg9[%c2_158, %c1_159, %c0_160] : memref<12x18x32xf32, #tpu.memory_space<vmem>>, vector<10x16x32xf32>
      tpu.vector_store %arg9[%c2_158, %c1_159, %c0_160], %171 {strides = array<i32>} : memref<12x18x32xf32, #tpu.memory_space<vmem>>, vector<10x16x32xf32>,
    } else {
    }
    %c1_i32 = arith.constant 1 : i32
    %7 = arith.cmpi eq, %arg1, %c1_i32 : i32
    %8 = arith.extui %7 : i1 to i32
    %c0_i32_3 = arith.constant 0 : i32
    %9 = arith.cmpi ne, %8, %c0_i32_3 : i32
    scf.if %9 {
      %c2_i32 = arith.constant 2 : i32
      %167 = arith.subi %1, %c2_i32 : i32
      %c0_150 = arith.constant 0 : index
      %168 = arith.index_cast %167 : i32 to index
      %c0_151 = arith.constant 0 : index
      %c0_152 = arith.constant 0 : index
      %169 = vector.load %arg2[%c0_150, %168, %c0_151, %c0_152] : memref<1x16x16x16xf32, #tpu.memory_space<vmem>>, vector<1x10x16x16xf32>
      %170 = vector.shape_cast %169 : vector<1x10x16x16xf32> to vector<10x16x16xf32>
      %c0_153 = arith.constant 0 : index
      %171 = arith.index_cast %167 : i32 to index
      %c0_154 = arith.constant 0 : index
      %c0_155 = arith.constant 0 : index
      %172 = vector.load %arg3[%c0_153, %171, %c0_154, %c0_155] : memref<1x16x16x16xf32, #tpu.memory_space<vmem>>, vector<1x10x16x16xf32>
      %173 = vector.shape_cast %172 : vector<1x10x16x16xf32> to vector<10x16x16xf32>
      %174 = tpu.concatenate %170, %173 in 2 : vector<10x16x16xf32>, vector<10x16x16xf32> -> vector<10x16x32xf32>
      %c0_156 = arith.constant 0 : index
      %c1_157 = arith.constant 1 : index
      %c0_158 = arith.constant 0 : index
      %175 = vector.load %arg9[%c0_156, %c1_157, %c0_158] : memref<12x18x32xf32, #tpu.memory_space<vmem>>, vector<10x16x32xf32>
      tpu.vector_store %arg9[%c0_156, %c1_157, %c0_158], %174 {strides = array<i32>} : memref<12x18x32xf32, #tpu.memory_space<vmem>>, vector<10x16x32xf32>,
    } else {
    }
    %cst_4 = arith.constant 0.000000e+00 : f32
    %10 = vector.broadcast %cst_4 : f32 to vector<160x64xf32>
    %c0_5 = arith.constant 0 : index
    %c0_6 = arith.constant 0 : index
    %c0_7 = arith.constant 0 : index
    %11 = vector.load %arg9[%c0_5, %c0_6, %c0_7] : memref<12x18x32xf32, #tpu.memory_space<vmem>>, vector<10x16x32xf32>
    %12 = vector.shape_cast %11 : vector<10x16x32xf32> to vector<160x32xf32>
    %c0_8 = arith.constant 0 : index
    %c0_9 = arith.constant 0 : index
    %c0_10 = arith.constant 0 : index
    %13 = vector.load %arg4[%c0_8, %c0_9, %c0_10] : memref<9x32x64xf32, #tpu.memory_space<vmem>>, vector<1x32x64xf32>
    %14 = vector.shape_cast %13 : vector<1x32x64xf32> to vector<32x64xf32>
    %cst_11 = arith.constant dense<0.000000e+00> : vector<160x64xf32>
    %15 = tpu.matmul %12, %14, %cst_11 {dimension_numbers = #tpu.dot_dimension_numbers<[1], [0], [0], [1], [0, 0, 1, 1], [], []>} : vector<160x32xf32>, vector<32x64xf32>, vector<160x64xf32> -> vector<160x64xf32>
    %16 = arith.addf %10, %15 : vector<160x64xf32>
    %c0_12 = arith.constant 0 : index
    %c1 = arith.constant 1 : index
    %c0_13 = arith.constant 0 : index
    %17 = vector.load %arg9[%c0_12, %c1, %c0_13] : memref<12x18x32xf32, #tpu.memory_space<vmem>>, vector<10x16x32xf32>
    %18 = vector.shape_cast %17 : vector<10x16x32xf32> to vector<160x32xf32>
    %c1_14 = arith.constant 1 : index
    %c0_15 = arith.constant 0 : index
    %c0_16 = arith.constant 0 : index
    %19 = vector.load %arg4[%c1_14, %c0_15, %c0_16] : memref<9x32x64xf32, #tpu.memory_space<vmem>>, vector<1x32x64xf32>
    %20 = vector.shape_cast %19 : vector<1x32x64xf32> to vector<32x64xf32>
    %cst_17 = arith.constant dense<0.000000e+00> : vector<160x64xf32>
    %21 = tpu.matmul %18, %20, %cst_17 {dimension_numbers = #tpu.dot_dimension_numbers<[1], [0], [0], [1], [0, 0, 1, 1], [], []>} : vector<160x32xf32>, vector<32x64xf32>, vector<160x64xf32> -> vector<160x64xf32>
    %22 = arith.addf %16, %21 : vector<160x64xf32>
    %c0_18 = arith.constant 0 : index
    %c2 = arith.constant 2 : index
    %c0_19 = arith.constant 0 : index
    %23 = vector.load %arg9[%c0_18, %c2, %c0_19] : memref<12x18x32xf32, #tpu.memory_space<vmem>>, vector<10x16x32xf32>
    %24 = vector.shape_cast %23 : vector<10x16x32xf32> to vector<160x32xf32>
    %c2_20 = arith.constant 2 : index
    %c0_21 = arith.constant 0 : index
    %c0_22 = arith.constant 0 : index
    %25 = vector.load %arg4[%c2_20, %c0_21, %c0_22] : memref<9x32x64xf32, #tpu.memory_space<vmem>>, vector<1x32x64xf32>
    %26 = vector.shape_cast %25 : vector<1x32x64xf32> to vector<32x64xf32>
    %cst_23 = arith.constant dense<0.000000e+00> : vector<160x64xf32>
    %27 = tpu.matmul %24, %26, %cst_23 {dimension_numbers = #tpu.dot_dimension_numbers<[1], [0], [0], [1], [0, 0, 1, 1], [], []>} : vector<160x32xf32>, vector<32x64xf32>, vector<160x64xf32> -> vector<160x64xf32>
    %28 = arith.addf %22, %27 : vector<160x64xf32>
    %c1_24 = arith.constant 1 : index
    %c0_25 = arith.constant 0 : index
    %c0_26 = arith.constant 0 : index
    %29 = vector.load %arg9[%c1_24, %c0_25, %c0_26] : memref<12x18x32xf32, #tpu.memory_space<vmem>>, vector<10x16x32xf32>
    %30 = vector.shape_cast %29 : vector<10x16x32xf32> to vector<160x32xf32>
    %c3 = arith.constant 3 : index
    %c0_27 = arith.constant 0 : index
    %c0_28 = arith.constant 0 : index
    %31 = vector.load %arg4[%c3, %c0_27, %c0_28] : memref<9x32x64xf32, #tpu.memory_space<vmem>>, vector<1x32x64xf32>
    %32 = vector.shape_cast %31 : vector<1x32x64xf32> to vector<32x64xf32>
    %cst_29 = arith.constant dense<0.000000e+00> : vector<160x64xf32>
    %33 = tpu.matmul %30, %32, %cst_29 {dimension_numbers = #tpu.dot_dimension_numbers<[1], [0], [0], [1], [0, 0, 1, 1], [], []>} : vector<160x32xf32>, vector<32x64xf32>, vector<160x64xf32> -> vector<160x64xf32>
    %34 = arith.addf %28, %33 : vector<160x64xf32>
    %c1_30 = arith.constant 1 : index
    %c1_31 = arith.constant 1 : index
    %c0_32 = arith.constant 0 : index
    %35 = vector.load %arg9[%c1_30, %c1_31, %c0_32] : memref<12x18x32xf32, #tpu.memory_space<vmem>>, vector<10x16x32xf32>
    %36 = vector.shape_cast %35 : vector<10x16x32xf32> to vector<160x32xf32>
    %c4 = arith.constant 4 : index
    %c0_33 = arith.constant 0 : index
    %c0_34 = arith.constant 0 : index
    %37 = vector.load %arg4[%c4, %c0_33, %c0_34] : memref<9x32x64xf32, #tpu.memory_space<vmem>>, vector<1x32x64xf32>
    %38 = vector.shape_cast %37 : vector<1x32x64xf32> to vector<32x64xf32>
    %cst_35 = arith.constant dense<0.000000e+00> : vector<160x64xf32>
    %39 = tpu.matmul %36, %38, %cst_35 {dimension_numbers = #tpu.dot_dimension_numbers<[1], [0], [0], [1], [0, 0, 1, 1], [], []>} : vector<160x32xf32>, vector<32x64xf32>, vector<160x64xf32> -> vector<160x64xf32>
    %40 = arith.addf %34, %39 : vector<160x64xf32>
    %c1_36 = arith.constant 1 : index
    %c2_37 = arith.constant 2 : index
    %c0_38 = arith.constant 0 : index
    %41 = vector.load %arg9[%c1_36, %c2_37, %c0_38] : memref<12x18x32xf32, #tpu.memory_space<vmem>>, vector<10x16x32xf32>
    %42 = vector.shape_cast %41 : vector<10x16x32xf32> to vector<160x32xf32>
    %c5 = arith.constant 5 : index
    %c0_39 = arith.constant 0 : index
    %c0_40 = arith.constant 0 : index
    %43 = vector.load %arg4[%c5, %c0_39, %c0_40] : memref<9x32x64xf32, #tpu.memory_space<vmem>>, vector<1x32x64xf32>
    %44 = vector.shape_cast %43 : vector<1x32x64xf32> to vector<32x64xf32>
    %cst_41 = arith.constant dense<0.000000e+00> : vector<160x64xf32>
    %45 = tpu.matmul %42, %44, %cst_41 {dimension_numbers = #tpu.dot_dimension_numbers<[1], [0], [0], [1], [0, 0, 1, 1], [], []>} : vector<160x32xf32>, vector<32x64xf32>, vector<160x64xf32> -> vector<160x64xf32>
    %46 = arith.addf %40, %45 : vector<160x64xf32>
    %c2_42 = arith.constant 2 : index
    %c0_43 = arith.constant 0 : index
    %c0_44 = arith.constant 0 : index
    %47 = vector.load %arg9[%c2_42, %c0_43, %c0_44] : memref<12x18x32xf32, #tpu.memory_space<vmem>>, vector<10x16x32xf32>
    %48 = vector.shape_cast %47 : vector<10x16x32xf32> to vector<160x32xf32>
    %c6 = arith.constant 6 : index
    %c0_45 = arith.constant 0 : index
    %c0_46 = arith.constant 0 : index
    %49 = vector.load %arg4[%c6, %c0_45, %c0_46] : memref<9x32x64xf32, #tpu.memory_space<vmem>>, vector<1x32x64xf32>
    %50 = vector.shape_cast %49 : vector<1x32x64xf32> to vector<32x64xf32>
    %cst_47 = arith.constant dense<0.000000e+00> : vector<160x64xf32>
    %51 = tpu.matmul %48, %50, %cst_47 {dimension_numbers = #tpu.dot_dimension_numbers<[1], [0], [0], [1], [0, 0, 1, 1], [], []>} : vector<160x32xf32>, vector<32x64xf32>, vector<160x64xf32> -> vector<160x64xf32>
    %52 = arith.addf %46, %51 : vector<160x64xf32>
    %c2_48 = arith.constant 2 : index
    %c1_49 = arith.constant 1 : index
    %c0_50 = arith.constant 0 : index
    %53 = vector.load %arg9[%c2_48, %c1_49, %c0_50] : memref<12x18x32xf32, #tpu.memory_space<vmem>>, vector<10x16x32xf32>
    %54 = vector.shape_cast %53 : vector<10x16x32xf32> to vector<160x32xf32>
    %c7 = arith.constant 7 : index
    %c0_51 = arith.constant 0 : index
    %c0_52 = arith.constant 0 : index
    %55 = vector.load %arg4[%c7, %c0_51, %c0_52] : memref<9x32x64xf32, #tpu.memory_space<vmem>>, vector<1x32x64xf32>
    %56 = vector.shape_cast %55 : vector<1x32x64xf32> to vector<32x64xf32>
    %cst_53 = arith.constant dense<0.000000e+00> : vector<160x64xf32>
    %57 = tpu.matmul %54, %56, %cst_53 {dimension_numbers = #tpu.dot_dimension_numbers<[1], [0], [0], [1], [0, 0, 1, 1], [], []>} : vector<160x32xf32>, vector<32x64xf32>, vector<160x64xf32> -> vector<160x64xf32>
    %58 = arith.addf %52, %57 : vector<160x64xf32>
    %c2_54 = arith.constant 2 : index
    %c2_55 = arith.constant 2 : index
    %c0_56 = arith.constant 0 : index
    %59 = vector.load %arg9[%c2_54, %c2_55, %c0_56] : memref<12x18x32xf32, #tpu.memory_space<vmem>>, vector<10x16x32xf32>
    %60 = vector.shape_cast %59 : vector<10x16x32xf32> to vector<160x32xf32>
    %c8 = arith.constant 8 : index
    %c0_57 = arith.constant 0 : index
    %c0_58 = arith.constant 0 : index
    %61 = vector.load %arg4[%c8, %c0_57, %c0_58] : memref<9x32x64xf32, #tpu.memory_space<vmem>>, vector<1x32x64xf32>
    %62 = vector.shape_cast %61 : vector<1x32x64xf32> to vector<32x64xf32>
    %cst_59 = arith.constant dense<0.000000e+00> : vector<160x64xf32>
    %63 = tpu.matmul %60, %62, %cst_59 {dimension_numbers = #tpu.dot_dimension_numbers<[1], [0], [0], [1], [0, 0, 1, 1], [], []>} : vector<160x32xf32>, vector<32x64xf32>, vector<160x64xf32> -> vector<160x64xf32>
    %64 = arith.addf %58, %63 : vector<160x64xf32>
    %c0_60 = arith.constant 0 : index
    %c0_61 = arith.constant 0 : index
    %65 = vector.load %arg5[%c0_60, %c0_61] : memref<1x64xf32, #tpu.memory_space<vmem>>, vector<1x64xf32>
    %66 = vector.broadcast %65 : vector<1x64xf32> to vector<160x64xf32>
    %67 = arith.addf %64, %66 : vector<160x64xf32>
    %cst_62 = arith.constant 0.000000e+00 : f32
    %68 = vector.broadcast %cst_62 : f32 to vector<160x64xf32>
    %69 = arith.cmpf ogt, %67, %68 : vector<160x64xf32>
    %cst_63 = arith.constant 1.000000e-01 : f32
    %70 = vector.broadcast %cst_63 : f32 to vector<160x64xf32>
    %71 = arith.mulf %70, %67 : vector<160x64xf32>
    %72 = arith.select %69, %67, %71 : vector<160x64xi1>, vector<160x64xf32>
    %73 = vector.shape_cast %72 : vector<160x64xf32> to vector<10x16x64xf32>
    %c1_i32_64 = arith.constant 1 : i32
    %74 = arith.subi %1, %c1_i32_64 : i32
    %75 = tpu.iota {dimensions = array<i32: 0>} : vector<10x1x1xi32>
    %76 = vector.broadcast %74 : i32 to vector<10x1x1xi32>
    %77 = arith.addi %76, %75 : vector<10x1x1xi32>
    %c0_i32_65 = arith.constant 0 : i32
    %78 = vector.broadcast %c0_i32_65 : i32 to vector<10x1x1xi32>
    %79 = arith.cmpi sge, %77, %78 : vector<10x1x1xi32>
    %c16_i32 = arith.constant 16 : i32
    %80 = vector.broadcast %c16_i32 : i32 to vector<10x1x1xi32>
    %81 = arith.cmpi slt, %77, %80 : vector<10x1x1xi32>
    %82 = arith.andi %79, %81 : vector<10x1x1xi1>
    %cst_66 = arith.constant 0.000000e+00 : f32
    %83 = vector.shape_cast %82 : vector<10x1x1xi1> to vector<10x1x1xi1>
    %84 = vector.broadcast %83 : vector<10x1x1xi1> to vector<10x16x64xi1>
    %85 = vector.broadcast %cst_66 : f32 to vector<10x16x64xf32>
    %86 = arith.select %84, %73, %85 : vector<10x16x64xi1>, vector<10x16x64xf32>
    %cst_67 = arith.constant 0.000000e+00 : f32
    %87 = vector.broadcast %cst_67 : f32 to vector<10x18x64xf32>
    %c0_68 = arith.constant 0 : index
    %c0_69 = arith.constant 0 : index
    %c0_70 = arith.constant 0 : index
    %88 = vector.load %arg10[%c0_68, %c0_69, %c0_70] : memref<10x18x64xf32, #tpu.memory_space<vmem>>, vector<10x18x64xf32>
    tpu.vector_store %arg10[%c0_68, %c0_69, %c0_70], %87 {strides = array<i32>} : memref<10x18x64xf32, #tpu.memory_space<vmem>>, vector<10x18x64xf32>,
    %c0_71 = arith.constant 0 : index
    %c1_72 = arith.constant 1 : index
    %c0_73 = arith.constant 0 : index
    %89 = vector.load %arg10[%c0_71, %c1_72, %c0_73] : memref<10x18x64xf32, #tpu.memory_space<vmem>>, vector<10x16x64xf32>
    tpu.vector_store %arg10[%c0_71, %c1_72, %c0_73], %86 {strides = array<i32>} : memref<10x18x64xf32, #tpu.memory_space<vmem>>, vector<10x16x64xf32>,
    %cst_74 = arith.constant 0.000000e+00 : f32
    %90 = vector.broadcast %cst_74 : f32 to vector<128x32xf32>
    %c0_75 = arith.constant 0 : index
    %c0_76 = arith.constant 0 : index
    %c0_77 = arith.constant 0 : index
    %91 = vector.load %arg10[%c0_75, %c0_76, %c0_77] : memref<10x18x64xf32, #tpu.memory_space<vmem>>, vector<8x16x64xf32>
    %92 = vector.shape_cast %91 : vector<8x16x64xf32> to vector<128x64xf32>
    %c0_78 = arith.constant 0 : index
    %c0_79 = arith.constant 0 : index
    %c0_80 = arith.constant 0 : index
    %93 = vector.load %arg6[%c0_78, %c0_79, %c0_80] : memref<9x64x32xf32, #tpu.memory_space<vmem>>, vector<1x64x32xf32>
    %94 = vector.shape_cast %93 : vector<1x64x32xf32> to vector<64x32xf32>
    %cst_81 = arith.constant dense<0.000000e+00> : vector<128x32xf32>
    %95 = tpu.matmul %92, %94, %cst_81 {dimension_numbers = #tpu.dot_dimension_numbers<[1], [0], [0], [1], [0, 0, 1, 1], [], []>} : vector<128x64xf32>, vector<64x32xf32>, vector<128x32xf32> -> vector<128x32xf32>
    %96 = arith.addf %90, %95 : vector<128x32xf32>
    %c0_82 = arith.constant 0 : index
    %c1_83 = arith.constant 1 : index
    %c0_84 = arith.constant 0 : index
    %97 = vector.load %arg10[%c0_82, %c1_83, %c0_84] : memref<10x18x64xf32, #tpu.memory_space<vmem>>, vector<8x16x64xf32>
    %98 = vector.shape_cast %97 : vector<8x16x64xf32> to vector<128x64xf32>
    %c1_85 = arith.constant 1 : index
    %c0_86 = arith.constant 0 : index
    %c0_87 = arith.constant 0 : index
    %99 = vector.load %arg6[%c1_85, %c0_86, %c0_87] : memref<9x64x32xf32, #tpu.memory_space<vmem>>, vector<1x64x32xf32>
    %100 = vector.shape_cast %99 : vector<1x64x32xf32> to vector<64x32xf32>
    %cst_88 = arith.constant dense<0.000000e+00> : vector<128x32xf32>
    %101 = tpu.matmul %98, %100, %cst_88 {dimension_numbers = #tpu.dot_dimension_numbers<[1], [0], [0], [1], [0, 0, 1, 1], [], []>} : vector<128x64xf32>, vector<64x32xf32>, vector<128x32xf32> -> vector<128x32xf32>
    %102 = arith.addf %96, %101 : vector<128x32xf32>
    %c0_89 = arith.constant 0 : index
    %c2_90 = arith.constant 2 : index
    %c0_91 = arith.constant 0 : index
    %103 = vector.load %arg10[%c0_89, %c2_90, %c0_91] : memref<10x18x64xf32, #tpu.memory_space<vmem>>, vector<8x16x64xf32>
    %104 = vector.shape_cast %103 : vector<8x16x64xf32> to vector<128x64xf32>
    %c2_92 = arith.constant 2 : index
    %c0_93 = arith.constant 0 : index
    %c0_94 = arith.constant 0 : index
    %105 = vector.load %arg6[%c2_92, %c0_93, %c0_94] : memref<9x64x32xf32, #tpu.memory_space<vmem>>, vector<1x64x32xf32>
    %106 = vector.shape_cast %105 : vector<1x64x32xf32> to vector<64x32xf32>
    %cst_95 = arith.constant dense<0.000000e+00> : vector<128x32xf32>
    %107 = tpu.matmul %104, %106, %cst_95 {dimension_numbers = #tpu.dot_dimension_numbers<[1], [0], [0], [1], [0, 0, 1, 1], [], []>} : vector<128x64xf32>, vector<64x32xf32>, vector<128x32xf32> -> vector<128x32xf32>
    %108 = arith.addf %102, %107 : vector<128x32xf32>
    %c1_96 = arith.constant 1 : index
    %c0_97 = arith.constant 0 : index
    %c0_98 = arith.constant 0 : index
    %109 = vector.load %arg10[%c1_96, %c0_97, %c0_98] : memref<10x18x64xf32, #tpu.memory_space<vmem>>, vector<8x16x64xf32>
    %110 = vector.shape_cast %109 : vector<8x16x64xf32> to vector<128x64xf32>
    %c3_99 = arith.constant 3 : index
    %c0_100 = arith.constant 0 : index
    %c0_101 = arith.constant 0 : index
    %111 = vector.load %arg6[%c3_99, %c0_100, %c0_101] : memref<9x64x32xf32, #tpu.memory_space<vmem>>, vector<1x64x32xf32>
    %112 = vector.shape_cast %111 : vector<1x64x32xf32> to vector<64x32xf32>
    %cst_102 = arith.constant dense<0.000000e+00> : vector<128x32xf32>
    %113 = tpu.matmul %110, %112, %cst_102 {dimension_numbers = #tpu.dot_dimension_numbers<[1], [0], [0], [1], [0, 0, 1, 1], [], []>} : vector<128x64xf32>, vector<64x32xf32>, vector<128x32xf32> -> vector<128x32xf32>
    %114 = arith.addf %108, %113 : vector<128x32xf32>
    %c1_103 = arith.constant 1 : index
    %c1_104 = arith.constant 1 : index
    %c0_105 = arith.constant 0 : index
    %115 = vector.load %arg10[%c1_103, %c1_104, %c0_105] : memref<10x18x64xf32, #tpu.memory_space<vmem>>, vector<8x16x64xf32>
    %116 = vector.shape_cast %115 : vector<8x16x64xf32> to vector<128x64xf32>
    %c4_106 = arith.constant 4 : index
    %c0_107 = arith.constant 0 : index
    %c0_108 = arith.constant 0 : index
    %117 = vector.load %arg6[%c4_106, %c0_107, %c0_108] : memref<9x64x32xf32, #tpu.memory_space<vmem>>, vector<1x64x32xf32>
    %118 = vector.shape_cast %117 : vector<1x64x32xf32> to vector<64x32xf32>
    %cst_109 = arith.constant dense<0.000000e+00> : vector<128x32xf32>
    %119 = tpu.matmul %116, %118, %cst_109 {dimension_numbers = #tpu.dot_dimension_numbers<[1], [0], [0], [1], [0, 0, 1, 1], [], []>} : vector<128x64xf32>, vector<64x32xf32>, vector<128x32xf32> -> vector<128x32xf32>
    %120 = arith.addf %114, %119 : vector<128x32xf32>
    %c1_110 = arith.constant 1 : index
    %c2_111 = arith.constant 2 : index
    %c0_112 = arith.constant 0 : index
    %121 = vector.load %arg10[%c1_110, %c2_111, %c0_112] : memref<10x18x64xf32, #tpu.memory_space<vmem>>, vector<8x16x64xf32>
    %122 = vector.shape_cast %121 : vector<8x16x64xf32> to vector<128x64xf32>
    %c5_113 = arith.constant 5 : index
    %c0_114 = arith.constant 0 : index
    %c0_115 = arith.constant 0 : index
    %123 = vector.load %arg6[%c5_113, %c0_114, %c0_115] : memref<9x64x32xf32, #tpu.memory_space<vmem>>, vector<1x64x32xf32>
    %124 = vector.shape_cast %123 : vector<1x64x32xf32> to vector<64x32xf32>
    %cst_116 = arith.constant dense<0.000000e+00> : vector<128x32xf32>
    %125 = tpu.matmul %122, %124, %cst_116 {dimension_numbers = #tpu.dot_dimension_numbers<[1], [0], [0], [1], [0, 0, 1, 1], [], []>} : vector<128x64xf32>, vector<64x32xf32>, vector<128x32xf32> -> vector<128x32xf32>
    %126 = arith.addf %120, %125 : vector<128x32xf32>
    %c2_117 = arith.constant 2 : index
    %c0_118 = arith.constant 0 : index
    %c0_119 = arith.constant 0 : index
    %127 = vector.load %arg10[%c2_117, %c0_118, %c0_119] : memref<10x18x64xf32, #tpu.memory_space<vmem>>, vector<8x16x64xf32>
    %128 = vector.shape_cast %127 : vector<8x16x64xf32> to vector<128x64xf32>
    %c6_120 = arith.constant 6 : index
    %c0_121 = arith.constant 0 : index
    %c0_122 = arith.constant 0 : index
    %129 = vector.load %arg6[%c6_120, %c0_121, %c0_122] : memref<9x64x32xf32, #tpu.memory_space<vmem>>, vector<1x64x32xf32>
    %130 = vector.shape_cast %129 : vector<1x64x32xf32> to vector<64x32xf32>
    %cst_123 = arith.constant dense<0.000000e+00> : vector<128x32xf32>
    %131 = tpu.matmul %128, %130, %cst_123 {dimension_numbers = #tpu.dot_dimension_numbers<[1], [0], [0], [1], [0, 0, 1, 1], [], []>} : vector<128x64xf32>, vector<64x32xf32>, vector<128x32xf32> -> vector<128x32xf32>
    %132 = arith.addf %126, %131 : vector<128x32xf32>
    %c2_124 = arith.constant 2 : index
    %c1_125 = arith.constant 1 : index
    %c0_126 = arith.constant 0 : index
    %133 = vector.load %arg10[%c2_124, %c1_125, %c0_126] : memref<10x18x64xf32, #tpu.memory_space<vmem>>, vector<8x16x64xf32>
    %134 = vector.shape_cast %133 : vector<8x16x64xf32> to vector<128x64xf32>
    %c7_127 = arith.constant 7 : index
    %c0_128 = arith.constant 0 : index
    %c0_129 = arith.constant 0 : index
    %135 = vector.load %arg6[%c7_127, %c0_128, %c0_129] : memref<9x64x32xf32, #tpu.memory_space<vmem>>, vector<1x64x32xf32>
    %136 = vector.shape_cast %135 : vector<1x64x32xf32> to vector<64x32xf32>
    %cst_130 = arith.constant dense<0.000000e+00> : vector<128x32xf32>
    %137 = tpu.matmul %134, %136, %cst_130 {dimension_numbers = #tpu.dot_dimension_numbers<[1], [0], [0], [1], [0, 0, 1, 1], [], []>} : vector<128x64xf32>, vector<64x32xf32>, vector<128x32xf32> -> vector<128x32xf32>
    %138 = arith.addf %132, %137 : vector<128x32xf32>
    %c2_131 = arith.constant 2 : index
    %c2_132 = arith.constant 2 : index
    %c0_133 = arith.constant 0 : index
    %139 = vector.load %arg10[%c2_131, %c2_132, %c0_133] : memref<10x18x64xf32, #tpu.memory_space<vmem>>, vector<8x16x64xf32>
    %140 = vector.shape_cast %139 : vector<8x16x64xf32> to vector<128x64xf32>
    %c8_134 = arith.constant 8 : index
    %c0_135 = arith.constant 0 : index
    %c0_136 = arith.constant 0 : index
    %141 = vector.load %arg6[%c8_134, %c0_135, %c0_136] : memref<9x64x32xf32, #tpu.memory_space<vmem>>, vector<1x64x32xf32>
    %142 = vector.shape_cast %141 : vector<1x64x32xf32> to vector<64x32xf32>
    %cst_137 = arith.constant dense<0.000000e+00> : vector<128x32xf32>
    %143 = tpu.matmul %140, %142, %cst_137 {dimension_numbers = #tpu.dot_dimension_numbers<[1], [0], [0], [1], [0, 0, 1, 1], [], []>} : vector<128x64xf32>, vector<64x32xf32>, vector<128x32xf32> -> vector<128x32xf32>
    %144 = arith.addf %138, %143 : vector<128x32xf32>
    %c0_138 = arith.constant 0 : index
    %c0_139 = arith.constant 0 : index
    %145 = vector.load %arg7[%c0_138, %c0_139] : memref<1x32xf32, #tpu.memory_space<vmem>>, vector<1x32xf32>
    %146 = vector.broadcast %145 : vector<1x32xf32> to vector<128x32xf32>
    %147 = arith.addf %144, %146 : vector<128x32xf32>
    %148 = vector.extract_strided_slice %147 {offsets = [0, 0], sizes = [128, 16], strides = [1, 1]} : vector<128x32xf32> to vector<128x16xf32>
    %cst_140 = arith.constant 0.000000e+00 : f32
    %149 = vector.broadcast %cst_140 : f32 to vector<128x16xf32>
    %150 = arith.subf %149, %148 : vector<128x16xf32>
    %151 = math.exp %150 : vector<128x16xf32>
    %cst_141 = arith.constant 1.000000e+00 : f32
    %152 = vector.broadcast %cst_141 : f32 to vector<128x16xf32>
    %153 = arith.addf %152, %151 : vector<128x16xf32>
    %cst_142 = arith.constant 1.000000e+00 : f32
    %154 = vector.broadcast %cst_142 : f32 to vector<128x16xf32>
    %155 = arith.divf %154, %153 : vector<128x16xf32>
    %156 = vector.extract_strided_slice %147 {offsets = [0, 16], sizes = [128, 16], strides = [1, 1]} : vector<128x32xf32> to vector<128x16xf32>
    %c0_143 = arith.constant 0 : index
    %157 = arith.index_cast %1 : i32 to index
    %c0_144 = arith.constant 0 : index
    %c0_145 = arith.constant 0 : index
    %158 = vector.load %arg2[%c0_143, %157, %c0_144, %c0_145] : memref<1x16x16x16xf32, #tpu.memory_space<vmem>>, vector<1x8x16x16xf32>
    %159 = vector.shape_cast %158 : vector<1x8x16x16xf32> to vector<8x16x16xf32>
    %160 = vector.shape_cast %159 : vector<8x16x16xf32> to vector<128x16xf32>
    %161 = arith.mulf %160, %155 : vector<128x16xf32>
    %162 = arith.addf %161, %156 : vector<128x16xf32>
    %163 = vector.shape_cast %162 : vector<128x16xf32> to vector<8x16x16xf32>
    %c0_146 = arith.constant 0 : index
    %c0_147 = arith.constant 0 : index
    %c0_148 = arith.constant 0 : index
    %c0_149 = arith.constant 0 : index
    %164 = vector.load %arg8[%c0_146, %c0_147, %c0_148, %c0_149] : memref<1x8x16x16xf32, #tpu.memory_space<vmem>>, vector<1x8x16x16xf32>
    %165 = vector.shape_cast %164 : vector<1x8x16x16xf32> to vector<8x16x16xf32>
    %166 = vector.shape_cast %163 : vector<8x16x16xf32> to vector<1x8x16x16xf32>
    tpu.vector_store %arg8[%c0_146, %c0_147, %c0_148, %c0_149], %166 {strides = array<i32>} : memref<1x8x16x16xf32, #tpu.memory_space<vmem>>, vector<1x8x16x16xf32>,
    return
  }
  func.func @transform_0(%arg0: i32, %arg1: i32) -> (i32, i32, i32, i32) {
    %c0_i32 = arith.constant 0 : i32
    %c0_i32_0 = arith.constant 0 : i32
    %c0_i32_1 = arith.constant 0 : i32
    %c0_i32_2 = arith.constant 0 : i32
    return %arg0, %c0_i32, %c0_i32_0, %c0_i32_1 : i32, i32, i32, i32
  }
  func.func @transform_1(%arg0: i32, %arg1: i32) -> (i32, i32, i32, i32) {
    %c0_i32 = arith.constant 0 : i32
    %c0_i32_0 = arith.constant 0 : i32
    %c0_i32_1 = arith.constant 0 : i32
    %c0_i32_2 = arith.constant 0 : i32
    return %arg0, %c0_i32, %c0_i32_0, %c0_i32_1 : i32, i32, i32, i32
  }
  func.func @transform_2(%arg0: i32, %arg1: i32) -> (i32, i32, i32) {
    %c0_i32 = arith.constant 0 : i32
    %c0_i32_0 = arith.constant 0 : i32
    %c0_i32_1 = arith.constant 0 : i32
    %c0_i32_2 = arith.constant 0 : i32
    return %c0_i32, %c0_i32_0, %c0_i32_1 : i32, i32, i32
  }
  func.func @transform_3(%arg0: i32, %arg1: i32) -> (i32, i32) {
    %c0_i32 = arith.constant 0 : i32
    %c0_i32_0 = arith.constant 0 : i32
    %c0_i32_1 = arith.constant 0 : i32
    return %c0_i32, %c0_i32_0 : i32, i32
  }
  func.func @transform_4(%arg0: i32, %arg1: i32) -> (i32, i32, i32) {
    %c0_i32 = arith.constant 0 : i32
    %c0_i32_0 = arith.constant 0 : i32
    %c0_i32_1 = arith.constant 0 : i32
    %c0_i32_2 = arith.constant 0 : i32
    return %c0_i32, %c0_i32_0, %c0_i32_1 : i32, i32, i32
  }
  func.func @transform_5(%arg0: i32, %arg1: i32) -> (i32, i32) {
    %c0_i32 = arith.constant 0 : i32
    %c0_i32_0 = arith.constant 0 : i32
    %c0_i32_1 = arith.constant 0 : i32
    return %c0_i32, %c0_i32_0 : i32, i32
  }
  func.func @transform_6(%arg0: i32, %arg1: i32) -> (i32, i32, i32, i32) {
    %c0_i32 = arith.constant 0 : i32
    %c0_i32_0 = arith.constant 0 : i32
    %c0_i32_1 = arith.constant 0 : i32
    return %arg0, %arg1, %c0_i32, %c0_i32_0 : i32, i32, i32, i32
  }
}

</mosaic_0001>

<bundles_post_ra>
// kernel: tpu_custom_call.1
= control target key start
LH: loop header
LB: loop body
LE: loop exit
PB: predicated region body
PF: predicated region fallthrough
CT: control target
= control target key end

     0   :  { %11 = vsyncpa [#allocation5], 0  ;;  %s10250_s0 = inlined_call_operand.vmem [shape: f32[2,16,16,16], index: 0, kind: input, shape index: {}]   ;;  %s10251_s1 = inlined_call_operand.hbm [shape: f32[2,16,16,16], index: 1, kind: input, shape index: {}]   ;;  %s10252_s2 = inlined_call_operand.vmem [shape: f32[9,32,64], index: 2, kind: input, shape index: {}]   ;;  %s10253_s3 = inlined_call_operand.vmem [shape: f32[1,64], index: 3, kind: input, shape index: {}]   ;;  %s10254_s4 = inlined_call_operand.vmem [shape: f32[9,64,32], index: 4, kind: input, shape index: {}]   ;;  %s10255_s5 = inlined_call_operand.vmem [shape: f32[1,32], index: 5, kind: input, shape index: {}]   ;;  %s10256_s6 = inlined_call_operand.hbm [shape: f32[2,16,16,16], index: 6, kind: output, shape index: {}]  }
   0x1   :  { %13 = vsyncpa [#allocation5 + $0x1], 0 }
   0x2   :  { %14 = vsyncpa [#allocation6], 0 }
   0x3   :  { %16 = vsyncpa [#allocation6 + $0x1], 0  ;;  %s8204_s21 = smov 0   ;;  %s8206_s22 = smov 0  }
   0x4   :  { %s8208_s23 = smov 0   ;;  %s8210_s24 = smov 0  }
   0x5   :  { %s8212_s25 = smov 0   ;;  %s8214_s26 = smov 0  }
   0x6   :  { %s8216_s27 = smov 0   ;;  %s8218_s28 = smov 0  }
   0x7   :  { %s8220_s29 = smov 0   ;;  %s8222_s30 = smov 0  }
   0x8   :  { %s8224_s7 = smov 0  }
   0x9 LB: > { %10266 = sst [smem:[#allocation10_spill]] %s8149_s29  ;;  %s5737_s8 = sadd.s32 4294967295, %s8157_s7   ;;  %s8157_s7 = sphi %s8224_s7, %s22_s7   ;;  %s8153_s30 = sphi %s8222_s30, %s10303_s30   ;;  %s8149_s29 = sphi %s8220_s29, %s10302_s29   ;;  %s8145_s28 = sphi %s8218_s28, %s10301_s28   ;;  %s8141_s27 = sphi %s8216_s27, %s10300_s27   ;;  %s8137_s26 = sphi %s8214_s26, %s10309_s26   ;;  %s8133_s25 = sphi %s8212_s25, %s10308_s25   ;;  %s8129_s24 = sphi %s8210_s24, %s10307_s24   ;;  %s8125_s23 = sphi %s8208_s23, %s10306_s23   ;;  %s8121_s22 = sphi %s8206_s22, %s10305_s22   ;;  %s8117_s21 = sphi %s8204_s21, %s10304_s21  }
   0xa   : > { %10267 = sst [smem:[#allocation11_spill]] %s8153_s30  ;;  %s5738_s9 = sadd.s32 4294967294, %s8157_s7  }
   0xb   : > { %s31_s10 = sadd.s32 1, %s8149_s29  ;;  %s34_s11 = sadd.s32 1, %s8153_s30 }
   0xc   : > { %p32_p0 = scmp.ge.s32.totalorder %s31_s10, 2  ;;  %s67_s12 = sadd.s32 1, %s8137_s26 }
   0xd   : > { %p74_p1 = scmp.ne.s32.totalorder %s8137_s26, %s8133_s25  ;;  %p75_p2 = scmp.eq.s32.totalorder %s8157_s7, 0 }
   0xe   : > { %s10311_s10 = smov (%p32_p0, %s31_s10), 0  ;;  %s10313_s11 = smov (!%p32_p0, %s34_s11), %s8153_s30 }
   0xf   : > { %10268 = sst [smem:[#allocation12_spill]] %s10311_s10  ;;  %p8268_p3 = por %p75_p2, %p74_p1 }
  0x10   : > { %p80_p4 = scmp.ne.s32.totalorder %s8133_s25, %s8129_s24  ;;  %p36_p5 = scmp.ge.s32.totalorder %s10313_s11, 2 }
  0x11   : > { %p81_p6 = scmp.eq.s32.totalorder %s5737_s8, 0  ;;  %s175_s14 = ssub.s32 %s8149_s29, %s10311_s10 }
  0x12   : > { %s179_s15 = sadd.s32 1, %s8125_s23  ;;  %s10315_s11 = smov (%p36_p5, %s10313_s11), 0 }
  0x13   : > { %10270 = sst [smem:[#allocation13_spill]] %s10315_s11  ;;  %p8278_p7 = por %p81_p6, %p80_p4 }
  0x14   : > { %p189_p8 = scmp.ne.s32.totalorder %s8125_s23, %s8121_s22  ;;  %s64_s17 = ssub.s32 %s8153_s30, %s10315_s11 }
  0x15   : > { %p190_p9 = scmp.eq.s32.totalorder %s5737_s8, 3  ;;  %p65_p10 = scmp.eq.s32.totalorder %s64_s17, 0 }
  0x16   : > { %s176_s18 = sor.u32 %s175_s14, %s64_s17  ;;  %p195_p13 = scmp.ne.s32.totalorder %s8121_s22, %s8117_s21 }
  0x17   : > { %p177_p11 = scmp.eq.s32.totalorder %s176_s18, 0  ;;  %p8286_p12 = por %p190_p9, %p189_p8 }
  0x18   : > { %s8291_s20 = scalar_select %p65_p10, %s8137_s26, %s67_s12  }
  0x19   : > { %s10272_s19 = scalar_select %p8286_p12, 1, 0 }
  0x1a   : > { %s8294_s24 = scalar_select %p177_p11, %s8125_s23, %s179_s15  }
  0x1b   : > { %p196_p0 = scmp.eq.s32.totalorder %s5738_s9, 3  ;;  %p7843_p1 = scmp.lt.s32.totalorder %s8157_s7, 4 }
  0x1c   : > { %s236_s8 = sand.u32 1, %s8137_s26   ;;  %s6185_s17 = sshll.u32 %s8153_s30, 12 }
  0x1d   : > { %p8299_p2 = por %p196_p0, %p195_p13  ;;  %s5741_s14 = sshll.u32 %s236_s8, 8 }
  0x1e   : > { %s8308_s29 = scalar_lea.hbm %s10251_s1, %s6185_s17  ;;  %s240_s12 = scalar_lea.vmem [#allocation4], %s5741_s14 }
  0x1f   : > { %s10273_s10 = scalar_select %p8299_p2, 1, 0 }
  0x20   : > { %s247_s15 = sshll.u32 %s240_s12, 4  ;;  %p8314_p4 = pnand %p7843_p1, %p8268_p3  ;;  %s8310_s15 = int_to_ptr.vmem [resolvable:$true] %s247_s15 }
  0x21   : > { %s8319_s30 = scalar_lea.sflag [#allocation5], %s236_s8  ;;  %s8005_s11 = scalar_lea.hbm %s8308_s29, 4096 }
  0x22   : > { %p8006_p6 = scmp.ne.s32.totalorder %s8308_s29, %s8005_s11  ;;  %p8007_p8 = pneg %p8314_p4 }
  0x23   : > { %s8010_s13 = scalar_lea.hbm %s10251_s1, 8192  ;;  %p8011_p3 = scmp.lt.u32.totalorder %s8308_s29, %s10251_s1 }
  0x24   : > { %p8008_p9 = pnand %p8007_p8, %p8006_p6  ;;  %p8012_p11 = scmp.lt.u32.totalorder %s8010_s13, %s8005_s11 }
  0x25   : > { %p8014_p0 = scmp.lt.u32.totalorder %s8005_s11, %s8308_s29 }
  0x26   : > { %p8009_p10 = pneg %p8008_p9  ;;  %p8013_p13 = por %p8012_p11, %p8011_p3 }
  0x28   : > { %p8015_p1 = por %p8014_p0, %p8013_p13 }
  0x2a   : > { %p8016_p5 = pnand %p8015_p1, %p8009_p10 }
  0x2c   : > { %8019 = shalt.err (!%p8016_p5)
}
  0x2d   : > { %s8020_s8 = scalar_lea.vmem %s8310_s15, 4096  ;;  %s8159_s14 = smov [#allocation4]  }
  0x2e   : > { %p8021_p6 = scmp.ne.s32.totalorder %s8310_s15, %s8020_s8  ;;  %s8025_s17 = sshll.u32 %s8159_s14, 4  ;;  %s8026_s17 = int_to_ptr.vmem [resolvable:$false] %s8025_s17 }
  0x2f   : > { %s8027_s18 = scalar_lea.vmem %s8026_s17, 8192  ;;  %p8028_p12 = scmp.lt.s32.totalorder %s8310_s15, %s8026_s17 }
  0x30   : > { %p8023_p9 = pnand %p8021_p6, %p8007_p8  ;;  %p8029_p3 = scmp.lt.s32.totalorder %s8027_s18, %s8020_s8 }
  0x32   : > { %p8024_p2 = pneg %p8023_p9  ;;  %p8030_p11 = por %p8029_p3, %p8028_p12 }
  0x34   : > { %p8031_p13 = pnand %p8030_p11, %p8024_p2 }
  0x36   : > { %8034 = shalt.err (!%p8031_p13)
}
  0x37   : > { %s8160_s11 = smov 128   ;;  %s8161_s13 = smov 8  }
  0x38   : > { %7838 = dma.hbm_to_vmem [thread:$0]  (!%p8314_p4), %s8308_s29, 4096, %s8310_s15, %s8319_s30, %s8160_s11, %s8160_s11, %s8161_s13  }
  0x39   : > { %p255_p5 = scmp.lt.s32.totalorder %s8157_s7, 5  ;;  %p10275_p8 = scmp.ge.s32.totalorder %s8157_s7, 1 }
  0x3b   : > { %p256_p10 = pnand %p10275_p8, %p255_p5 }
  0x3d   : > { %259 = sbr.rel (%p256_p10) target bundleno = 1581 (0x62d), region = 44 }
  0x44   : > { %s261_s12 = sand.u32 1, %s8133_s25  }
  0x45   : > { %s5745_s8 = sshll.u32 %s261_s12, 8  ;;  %s262_s14 = scalar_lea.sflag [#allocation5], %s261_s12 }
  0x46   : > { %s8351_s17 = scalar_lea.vmem [#allocation4], %s5745_s8 }
  0x47   : > { %8108 = dma.done.wait (%p8278_p7), %s262_s14, 4096  }
  0x48   : > { %8110 = vsyncadd (%p8278_p7), %s262_s14, 4294963200  ;;  %s10262_s29 = sand.u32 1, %s8121_s22   ;;  %p299_p12 = scmp.lt.s32.totalorder %s8145_s28, 1  ;;  %vm306_vm0 = vcmask 261120   ;;  %vm309_vm1 = vcmask 254976   ;;  %v10263_v0 = vmov 0.0  }
  0x49   : > { %s8361_s30 = sshll.u32 %s10262_s29, 7  ;;  %s5749_s15 = sshll.u32 %s8141_s27, 3  ;;  %307 = vst.msk [vmem:[#allocation2] sm:$0xff] %vm306_vm0, %v10263_v0  ;;  %308 = vst.msk [vmem:[#allocation2 + $0x8] sm:$0xff] %vm306_vm0, %v10263_v0 }
  0x4a   : > { %311 = vst.msk [vmem:[#allocation2 + $0x18] sm:$0xff] %vm306_vm0, %v10263_v0  ;;  %312 = vst.msk [vmem:[#allocation2 + $0x20] sm:$0xff] %vm306_vm0, %v10263_v0  ;;  %s300_s16 = scalar_select %p299_p12, %s8145_s28, 1 }
  0x4b   : > { %314 = vst.msk [vmem:[#allocation2 + $0x30] sm:$0xff] %vm306_vm0, %v10263_v0  ;;  %315 = vst.msk [vmem:[#allocation2 + $0x38] sm:$0xff] %vm306_vm0, %v10263_v0  ;;  %s8445_s12 = scalar_lea.vmem [#allocation7], %s8361_s30  ;;  %p5750_p7 = scmp.ne.s32.totalorder %s8141_s27, 0 }
  0x4c   : > { %317 = vst.msk [vmem:[#allocation2 + $0x48] sm:$0xff] %vm306_vm0, %v10263_v0  ;;  %318 = vst.msk [vmem:[#allocation2 + $0x50] sm:$0xff] %vm306_vm0, %v10263_v0  ;;  %s6186_s9 = sshll.u32 %s300_s16, 8  ;;  %v370_v1 = vld [vmem:[%s8351_s17 + $0x10] sm:$0xff] (!%p5750_p7)  ;;  %v368_v2 = vld [vmem:[%s8351_s17] sm:$0xff] (!%p5750_p7)  ;;  %s8163_s8 = smov (!%p5750_p7), 16  }
  0x4d   : > { %320 = vst.msk [vmem:[#allocation2 + $0x60] sm:$0xff] %vm306_vm0, %v10263_v0  ;;  %321 = vst.msk [vmem:[#allocation2 + $0x68] sm:$0xff] %vm306_vm0, %v10263_v0  ;;  %s8442_s13 = scalar_lea.vmem %s10250_s0, %s6186_s9  ;;  %412 = vrot.lane.b32.xlu1 (!%p5750_p7), %v370_v1, %s8163_s8  ;;  %408 = vrot.lane.b32.xlu0 (!%p5750_p7), %v368_v2, %s8163_s8  ;;  %v371_v3 = vld [vmem:[%s8351_s17 + $0x18] sm:$0xff] (!%p5750_p7)  ;;  %v369_v4 = vld [vmem:[%s8351_s17 + $0x8] sm:$0xff] (!%p5750_p7)  ;;  %vm468_vm2 = vcmask (!%p5750_p7), 130048  }
  0x4e   : > { %323 = vst.msk [vmem:[#allocation2 + $0x78] sm:$0xff] %vm306_vm0, %v10263_v0  ;;  %324 = vst.msk [vmem:[#allocation2 + $0x80] sm:$0xff] %vm306_vm0, %v10263_v0  ;;  %v373_v5 = vld [vmem:[%s8351_s17 + $0x28] sm:$0xff] (!%p5750_p7)  ;;  %v372_v6 = vld [vmem:[%s8351_s17 + $0x20] sm:$0xff] (!%p5750_p7) }
  0x4f   : > { %326 = vst.msk [vmem:[#allocation2 + $0x90] sm:$0xff] %vm306_vm0, %v10263_v0  ;;  %327 = vst.msk [vmem:[#allocation2 + $0x98] sm:$0xff] %vm306_vm0, %v10263_v0  ;;  %v375_v7 = vld [vmem:[%s8351_s17 + $0x38] sm:$0xff] (!%p5750_p7)  ;;  %v374_v8 = vld [vmem:[%s8351_s17 + $0x30] sm:$0xff] (!%p5750_p7) }
  0x50   : > { %329 = vst.msk [vmem:[#allocation2 + $0xa8] sm:$0xff] %vm306_vm0, %v10263_v0  ;;  %330 = vst.msk [vmem:[#allocation2 + $0xb0] sm:$0xff] %vm306_vm0, %v10263_v0  ;;  %v377_v9 = vld [vmem:[%s8351_s17 + $0x48] sm:$0xff] (!%p5750_p7)  ;;  %v376_v10 = vld [vmem:[%s8351_s17 + $0x40] sm:$0xff] (!%p5750_p7) }
  0x51   : > { %332 = vst.msk [vmem:[#allocation2 + $0xc0] sm:$0xff] %vm306_vm0, %v10263_v0  ;;  %333 = vst.msk [vmem:[#allocation2 + $0xc8] sm:$0xff] %vm306_vm0, %v10263_v0  ;;  %414 = vrot.lane.b32.xlu1 (!%p5750_p7), %v371_v3, %s8163_s8  ;;  %410 = vrot.lane.b32.xlu0 (!%p5750_p7), %v369_v4, %s8163_s8  ;;  %v379_v11 = vld [vmem:[%s8351_s17 + $0x58] sm:$0xff] (!%p5750_p7)  ;;  %v378_v12 = vld [vmem:[%s8351_s17 + $0x50] sm:$0xff] (!%p5750_p7) }
  0x52   : > { %335 = vst.msk [vmem:[#allocation2 + $0xd8] sm:$0xff] %vm306_vm0, %v10263_v0  ;;  %336 = vst.msk [vmem:[#allocation2 + $0xe0] sm:$0xff] %vm306_vm0, %v10263_v0  ;;  %v381_v13 = vld [vmem:[%s8351_s17 + $0x68] sm:$0xff] (!%p5750_p7)  ;;  %v380_v14 = vld [vmem:[%s8351_s17 + $0x60] sm:$0xff] (!%p5750_p7) }
  0x53   : > { %338 = vst.msk [vmem:[#allocation2 + $0xf0] sm:$0xff] %vm306_vm0, %v10263_v0  ;;  %339 = vst.msk [vmem:[#allocation2 + $0xf8] sm:$0xff] %vm306_vm0, %v10263_v0  ;;  %v383_v15 = vld [vmem:[%s8351_s17 + $0x78] sm:$0xff] (!%p5750_p7)  ;;  %v382_v16 = vld [vmem:[%s8351_s17 + $0x70] sm:$0xff] (!%p5750_p7) }
  0x54   : > { %341 = vst.msk [vmem:[#allocation2 + $0x108] sm:$0xff] %vm306_vm0, %v10263_v0  ;;  %342 = vst.msk [vmem:[#allocation2 + $0x110] sm:$0xff] %vm306_vm0, %v10263_v0  ;;  %347 = sbr.rel (%p5750_p7) target bundleno = 230 (0xe6), region = 52  ;;  %v385_v17 = vld [vmem:[%s8351_s17 + $0x88] sm:$0xff] (!%p5750_p7)  ;;  %v384_v18 = vld [vmem:[%s8351_s17 + $0x80] sm:$0xff] (!%p5750_p7) }
  0x55   : > { %310 = vst.msk [vmem:[#allocation2 + $0x10] sm:$0x3] %vm309_vm1, %v10263_v0  ;;  %313 = vst.msk [vmem:[#allocation2 + $0x28] sm:$0x3] %vm309_vm1, %v10263_v0  ;;  %418 = vrot.lane.b32.xlu1 (!%p5750_p7), %v373_v5, %s8163_s8  ;;  %416 = vrot.lane.b32.xlu0 (!%p5750_p7), %v372_v6, %s8163_s8  ;;  %v387_v19 = vld [vmem:[%s8351_s17 + $0x98] sm:$0xff] (!%p5750_p7)  ;;  %v386_v20 = vld [vmem:[%s8351_s17 + $0x90] sm:$0xff] (!%p5750_p7) }
  0x56   : > { %316 = vst.msk [vmem:[#allocation2 + $0x40] sm:$0x3] %vm309_vm1, %v10263_v0  ;;  %319 = vst.msk [vmem:[#allocation2 + $0x58] sm:$0x3] %vm309_vm1, %v10263_v0  ;;  %v350_v21 = vld [vmem:[%s8442_s13 + $0x10] sm:$0xff] (!%p5750_p7)  ;;  %v348_v22 = vld [vmem:[%s8442_s13] sm:$0xff] (!%p5750_p7) }
  0x57   : > { %322 = vst.msk [vmem:[#allocation2 + $0x70] sm:$0x3] %vm309_vm1, %v10263_v0  ;;  %325 = vst.msk [vmem:[#allocation2 + $0x88] sm:$0x3] %vm309_vm1, %v10263_v0  ;;  %v351_v27 = vld [vmem:[%s8442_s13 + $0x18] sm:$0xff] (!%p5750_p7)  ;;  %v349_v28 = vld [vmem:[%s8442_s13 + $0x8] sm:$0xff] (!%p5750_p7) }
  0x58   : > { %328 = vst.msk [vmem:[#allocation2 + $0xa0] sm:$0x3] %vm309_vm1, %v10263_v0  ;;  %331 = vst.msk [vmem:[#allocation2 + $0xb8] sm:$0x3] %vm309_vm1, %v10263_v0  ;;  %v353_v33 = vld [vmem:[%s8442_s13 + $0x28] sm:$0xff] (!%p5750_p7)  ;;  %v352_v34 = vld [vmem:[%s8442_s13 + $0x20] sm:$0xff] (!%p5750_p7) }
  0x59   : > { %334 = vst.msk [vmem:[#allocation2 + $0xd0] sm:$0x3] %vm309_vm1, %v10263_v0  ;;  %337 = vst.msk [vmem:[#allocation2 + $0xe8] sm:$0x3] %vm309_vm1, %v10263_v0  ;;  %422 = vrot.lane.b32.xlu1 (!%p5750_p7), %v375_v7, %s8163_s8  ;;  %420 = vrot.lane.b32.xlu0 (!%p5750_p7), %v374_v8, %s8163_s8  ;;  %v355_v39 = vld [vmem:[%s8442_s13 + $0x38] sm:$0xff] (!%p5750_p7)  ;;  %v354_v40 = vld [vmem:[%s8442_s13 + $0x30] sm:$0xff] (!%p5750_p7) }
  0x5a   : > { %340 = vst.msk [vmem:[#allocation2 + $0x100] sm:$0x3] %vm309_vm1, %v10263_v0  ;;  %343 = vst.msk [vmem:[#allocation2 + $0x118] sm:$0x3] %vm309_vm1, %v10263_v0  ;;  %v357_v45 = vld [vmem:[%s8442_s13 + $0x48] sm:$0xff] (!%p5750_p7)  ;;  %v356_v46 = vld [vmem:[%s8442_s13 + $0x40] sm:$0xff] (!%p5750_p7) }
  0x5b   : > { %v359_v51 = vld [vmem:[%s8442_s13 + $0x58] sm:$0xff]  ;;  %v358_v52 = vld [vmem:[%s8442_s13 + $0x50] sm:$0xff]  ;;  %v361_v57 = vld [vmem:[%s8442_s13 + $0x68] sm:$0xff] }
  0x5c   : > { %v360_v58 = vld [vmem:[%s8442_s13 + $0x60] sm:$0xff]  ;;  %v363_v63 = vld [vmem:[%s8442_s13 + $0x78] sm:$0xff]  ;;  %v362_v1 = vld [vmem:[%s8442_s13 + $0x70] sm:$0xff] }
  0x5d   : > { %426 = vrot.lane.b32.xlu1 %v377_v9, %s8163_s8  ;;  %424 = vrot.lane.b32.xlu0 %v376_v10, %s8163_s8  ;;  %v365_v6 = vld [vmem:[%s8442_s13 + $0x88] sm:$0xff]  ;;  %v364_v7 = vld [vmem:[%s8442_s13 + $0x80] sm:$0xff] }
  0x61   : > { %430 = vrot.lane.b32.xlu1 %v379_v11, %s8163_s8  ;;  %428 = vrot.lane.b32.xlu0 %v378_v12, %s8163_s8  ;;  %v367_v12 = vld [vmem:[%s8442_s13 + $0x98] sm:$0xff] }
  0x65   : > { %434 = vrot.lane.b32.xlu1 %v381_v13, %s8163_s8  ;;  %432 = vrot.lane.b32.xlu0 %v380_v14, %s8163_s8  ;;  %v366_v13 = vld [vmem:[%s8442_s13 + $0x90] sm:$0xff] }
  0x69   : > { %438 = vrot.lane.b32.xlu1 %v383_v15, %s8163_s8  ;;  %436 = vrot.lane.b32.xlu0 %v382_v16, %s8163_s8 }
  0x6d   : > { %442 = vrot.lane.b32.xlu1 %v385_v17, %s8163_s8  ;;  %440 = vrot.lane.b32.xlu0 %v384_v18, %s8163_s8 }
  0x71   : > { %446 = vrot.lane.b32.xlu1 %v387_v19, %s8163_s8  ;;  %444 = vrot.lane.b32.xlu0 %v386_v20, %s8163_s8 }
  0xbf   : > { %v413_v23 = vpop.permute.xlu1 %412  ;;  %v409_v24 = vpop.permute.xlu0 %408 }
  0xc0   : > { %v471_v25 = vsel %vm468_vm2, %v350_v21, %v413_v23  ;;  %v469_v26 = vsel %vm468_vm2, %v348_v22, %v409_v24 }
  0xc1   : > { %492 = vst.msk [vmem:[#allocation2 + $0x49] sm:$0xff] %vm306_vm0, %v471_v25  ;;  %490 = vst.msk [vmem:[#allocation2 + $0x31] sm:$0xff] %vm306_vm0, %v469_v26 }
  0xc3   : > { %v415_v29 = vpop.permute.xlu1 %414  ;;  %v411_v30 = vpop.permute.xlu0 %410 }
  0xc4   : > { %v472_v31 = vsel %vm468_vm2, %v351_v27, %v415_v29  ;;  %v470_v32 = vsel %vm468_vm2, %v349_v28, %v411_v30 }
  0xc5   : > { %493 = vst.msk [vmem:[#allocation2 + $0x51] sm:$0xff] %vm306_vm0, %v472_v31  ;;  %491 = vst.msk [vmem:[#allocation2 + $0x39] sm:$0xff] %vm306_vm0, %v470_v32 }
  0xc7   : > { %v419_v35 = vpop.permute.xlu1 %418  ;;  %v417_v36 = vpop.permute.xlu0 %416 }
  0xc8   : > { %v474_v37 = vsel %vm468_vm2, %v353_v33, %v419_v35  ;;  %v473_v38 = vsel %vm468_vm2, %v352_v34, %v417_v36 }
  0xc9   : > { %495 = vst.msk [vmem:[#allocation2 + $0x69] sm:$0xff] %vm306_vm0, %v474_v37  ;;  %494 = vst.msk [vmem:[#allocation2 + $0x61] sm:$0xff] %vm306_vm0, %v473_v38 }
  0xcb   : > { %v423_v41 = vpop.permute.xlu1 %422  ;;  %v421_v42 = vpop.permute.xlu0 %420 }
  0xcc   : > { %v476_v43 = vsel %vm468_vm2, %v355_v39, %v423_v41  ;;  %v475_v44 = vsel %vm468_vm2, %v354_v40, %v421_v42 }
  0xcd   : > { %497 = vst.msk [vmem:[#allocation2 + $0x81] sm:$0xff] %vm306_vm0, %v476_v43  ;;  %496 = vst.msk [vmem:[#allocation2 + $0x79] sm:$0xff] %vm306_vm0, %v475_v44 }
  0xcf   : > { %v427_v47 = vpop.permute.xlu1 %426  ;;  %v425_v48 = vpop.permute.xlu0 %424 }
  0xd0   : > { %v478_v49 = vsel %vm468_vm2, %v357_v45, %v427_v47  ;;  %v477_v50 = vsel %vm468_vm2, %v356_v46, %v425_v48 }
  0xd1   : > { %499 = vst.msk [vmem:[#allocation2 + $0x99] sm:$0xff] %vm306_vm0, %v478_v49  ;;  %498 = vst.msk [vmem:[#allocation2 + $0x91] sm:$0xff] %vm306_vm0, %v477_v50 }
  0xd3   : > { %v431_v53 = vpop.permute.xlu1 %430  ;;  %v429_v54 = vpop.permute.xlu0 %428 }
  0xd4   : > { %v480_v55 = vsel %vm468_vm2, %v359_v51, %v431_v53  ;;  %v479_v56 = vsel %vm468_vm2, %v358_v52, %v429_v54 }
  0xd5   : > { %501 = vst.msk [vmem:[#allocation2 + $0xb1] sm:$0xff] %vm306_vm0, %v480_v55  ;;  %500 = vst.msk [vmem:[#allocation2 + $0xa9] sm:$0xff] %vm306_vm0, %v479_v56 }
  0xd7   : > { %v435_v59 = vpop.permute.xlu1 %434  ;;  %v433_v60 = vpop.permute.xlu0 %432 }
  0xd8   : > { %v482_v61 = vsel %vm468_vm2, %v361_v57, %v435_v59  ;;  %v481_v62 = vsel %vm468_vm2, %v360_v58, %v433_v60 }
  0xd9   : > { %503 = vst.msk [vmem:[#allocation2 + $0xc9] sm:$0xff] %vm306_vm0, %v482_v61  ;;  %502 = vst.msk [vmem:[#allocation2 + $0xc1] sm:$0xff] %vm306_vm0, %v481_v62 }
  0xdb   : > { %v439_v2 = vpop.permute.xlu1 %438  ;;  %v437_v3 = vpop.permute.xlu0 %436 }
  0xdc   : > { %v484_v4 = vsel %vm468_vm2, %v363_v63, %v439_v2  ;;  %v483_v5 = vsel %vm468_vm2, %v362_v1, %v437_v3 }
  0xdd   : > { %505 = vst.msk [vmem:[#allocation2 + $0xe1] sm:$0xff] %vm306_vm0, %v484_v4  ;;  %504 = vst.msk [vmem:[#allocation2 + $0xd9] sm:$0xff] %vm306_vm0, %v483_v5 }
  0xdf   : > { %v443_v8 = vpop.permute.xlu1 %442  ;;  %v441_v9 = vpop.permute.xlu0 %440 }
  0xe0   : > { %v486_v10 = vsel %vm468_vm2, %v365_v6, %v443_v8  ;;  %v485_v11 = vsel %vm468_vm2, %v364_v7, %v441_v9 }
  0xe1   : > { %507 = vst.msk [vmem:[#allocation2 + $0xf9] sm:$0xff] %vm306_vm0, %v486_v10  ;;  %506 = vst.msk [vmem:[#allocation2 + $0xf1] sm:$0xff] %vm306_vm0, %v485_v11 }
  0xe3   : > { %v447_v14 = vpop.permute.xlu1 %446  ;;  %v445_v15 = vpop.permute.xlu0 %444 }
  0xe4   : > { %v488_v16 = vsel %vm468_vm2, %v367_v12, %v447_v14  ;;  %v487_v17 = vsel %vm468_vm2, %v366_v13, %v445_v15 }
  0xe5   : > { %509 = vst.msk [vmem:[#allocation2 + $0x111] sm:$0xff] %vm306_vm0, %v488_v16  ;;  %508 = vst.msk [vmem:[#allocation2 + $0x109] sm:$0xff] %vm306_vm0, %v487_v17 }
  0xe6 PF: > { %p5751_p2 = scmp.ne.s32.totalorder %s8141_s27, 1 }
  0xe7   : > { %s8551_s14 = sadd.s32 (!%p5751_p2), 4294967294, %s5749_s15  ;;  %s8164_s9 = smov (!%p5751_p2), 16   ;;  %vm638_vm3 = vcmask (!%p5751_p2), 130048  }
  0xe8   : > { %513 = sbr.rel (%p5751_p2) target bundleno = 388 (0x184), region = 56  ;;  %s5753_s30 = sshll.u32 (!%p5751_p2), %s8551_s14, 4 }
  0xe9   : > { %s8557_s16 = scalar_lea.vmem (!%p5751_p2), %s8351_s17, %s5753_s30 [#allocation4]  ;;  %s8602_s17 = scalar_lea.vmem (!%p5751_p2), %s8442_s13, %s5753_s30 }
  0xea   : > { %v540_v18 = vld [vmem:[%s8557_s16 + $0x10] sm:$0xff] (!%p5751_p2)  ;;  %v538_v19 = vld [vmem:[%s8557_s16] sm:$0xff] (!%p5751_p2)  ;;  %v541_v20 = vld [vmem:[%s8557_s16 + $0x18] sm:$0xff] (!%p5751_p2) }
  0xeb   : > { %582 = vrot.lane.b32.xlu1 (!%p5751_p2), %v540_v18, %s8164_s9  ;;  %578 = vrot.lane.b32.xlu0 (!%p5751_p2), %v538_v19, %s8164_s9  ;;  %v539_v21 = vld [vmem:[%s8557_s16 + $0x8] sm:$0xff] (!%p5751_p2)  ;;  %v542_v23 = vld [vmem:[%s8557_s16 + $0x20] sm:$0xff] (!%p5751_p2) }
  0xec   : > { %v543_v22 = vld [vmem:[%s8557_s16 + $0x28] sm:$0xff] (!%p5751_p2)  ;;  %v545_v24 = vld [vmem:[%s8557_s16 + $0x38] sm:$0xff] (!%p5751_p2)  ;;  %v544_v25 = vld [vmem:[%s8557_s16 + $0x30] sm:$0xff] (!%p5751_p2) }
  0xed   : > { %v547_v26 = vld [vmem:[%s8557_s16 + $0x48] sm:$0xff] (!%p5751_p2)  ;;  %v546_v27 = vld [vmem:[%s8557_s16 + $0x40] sm:$0xff] (!%p5751_p2)  ;;  %v549_v28 = vld [vmem:[%s8557_s16 + $0x58] sm:$0xff] (!%p5751_p2) }
  0xee   : > { %v548_v29 = vld [vmem:[%s8557_s16 + $0x50] sm:$0xff] (!%p5751_p2)  ;;  %v551_v30 = vld [vmem:[%s8557_s16 + $0x68] sm:$0xff] (!%p5751_p2)  ;;  %v550_v31 = vld [vmem:[%s8557_s16 + $0x60] sm:$0xff] (!%p5751_p2) }
  0xef   : > { %584 = vrot.lane.b32.xlu1 %v541_v20, %s8164_s9  ;;  %580 = vrot.lane.b32.xlu0 %v539_v21, %s8164_s9  ;;  %v553_v32 = vld [vmem:[%s8557_s16 + $0x78] sm:$0xff]  ;;  %v552_v33 = vld [vmem:[%s8557_s16 + $0x70] sm:$0xff] }
  0xf0   : > { %v555_v34 = vld [vmem:[%s8557_s16 + $0x88] sm:$0xff]  ;;  %v554_v35 = vld [vmem:[%s8557_s16 + $0x80] sm:$0xff]  ;;  %v557_v36 = vld [vmem:[%s8557_s16 + $0x98] sm:$0xff] }
  0xf1   : > { %v556_v37 = vld [vmem:[%s8557_s16 + $0x90] sm:$0xff]  ;;  %v517_v39 = vld [vmem:[%s8602_s17] sm:$0xff]  ;;  %v520_v44 = vld [vmem:[%s8602_s17 + $0x18] sm:$0xff] }
  0xf2   : > { %v519_v38 = vld [vmem:[%s8602_s17 + $0x10] sm:$0xff]  ;;  %v518_v45 = vld [vmem:[%s8602_s17 + $0x8] sm:$0xff]  ;;  %v521_v51 = vld [vmem:[%s8602_s17 + $0x20] sm:$0xff] }
  0xf3   : > { %588 = vrot.lane.b32.xlu1 %v543_v22, %s8164_s9  ;;  %586 = vrot.lane.b32.xlu0 %v542_v23, %s8164_s9  ;;  %v522_v50 = vld [vmem:[%s8602_s17 + $0x28] sm:$0xff]  ;;  %v524_v56 = vld [vmem:[%s8602_s17 + $0x38] sm:$0xff] }
  0xf4   : > { %v523_v57 = vld [vmem:[%s8602_s17 + $0x30] sm:$0xff]  ;;  %v526_v62 = vld [vmem:[%s8602_s17 + $0x48] sm:$0xff]  ;;  %v525_v63 = vld [vmem:[%s8602_s17 + $0x40] sm:$0xff] }
  0xf5   : > { %v528_v5 = vld [vmem:[%s8602_s17 + $0x58] sm:$0xff]  ;;  %v527_v6 = vld [vmem:[%s8602_s17 + $0x50] sm:$0xff]  ;;  %v530_v11 = vld [vmem:[%s8602_s17 + $0x68] sm:$0xff] }
  0xf6   : > { %v529_v12 = vld [vmem:[%s8602_s17 + $0x60] sm:$0xff]  ;;  %v532_v17 = vld [vmem:[%s8602_s17 + $0x78] sm:$0xff]  ;;  %v531_v18 = vld [vmem:[%s8602_s17 + $0x70] sm:$0xff] }
  0xf7   : > { %592 = vrot.lane.b32.xlu1 %v545_v24, %s8164_s9  ;;  %590 = vrot.lane.b32.xlu0 %v544_v25, %s8164_s9  ;;  %v534_v23 = vld [vmem:[%s8602_s17 + $0x88] sm:$0xff]  ;;  %v533_v24 = vld [vmem:[%s8602_s17 + $0x80] sm:$0xff] }
  0xfb   : > { %596 = vrot.lane.b32.xlu1 %v547_v26, %s8164_s9  ;;  %594 = vrot.lane.b32.xlu0 %v546_v27, %s8164_s9 }
  0xff   : > { %600 = vrot.lane.b32.xlu1 %v549_v28, %s8164_s9  ;;  %598 = vrot.lane.b32.xlu0 %v548_v29, %s8164_s9  ;;  %v536_v29 = vld [vmem:[%s8602_s17 + $0x98] sm:$0xff] }
 0x103   : > { %604 = vrot.lane.b32.xlu1 %v551_v30, %s8164_s9  ;;  %602 = vrot.lane.b32.xlu0 %v550_v31, %s8164_s9  ;;  %v535_v30 = vld [vmem:[%s8602_s17 + $0x90] sm:$0xff] }
 0x107   : > { %608 = vrot.lane.b32.xlu1 %v553_v32, %s8164_s9  ;;  %606 = vrot.lane.b32.xlu0 %v552_v33, %s8164_s9 }
 0x10b   : > { %612 = vrot.lane.b32.xlu1 %v555_v34, %s8164_s9  ;;  %610 = vrot.lane.b32.xlu0 %v554_v35, %s8164_s9 }
 0x10f   : > { %616 = vrot.lane.b32.xlu1 %v557_v36, %s8164_s9  ;;  %614 = vrot.lane.b32.xlu0 %v556_v37, %s8164_s9 }
 0x15d   : > { %v583_v40 = vpop.permute.xlu1 %582  ;;  %v579_v41 = vpop.permute.xlu0 %578 }
 0x15e   : > { %v641_v42 = vsel %vm638_vm3, %v519_v38, %v583_v40  ;;  %v639_v43 = vsel %vm638_vm3, %v517_v39, %v579_v41 }
 0x15f   : > { %661 = vst.msk [vmem:[#allocation2 + $0x19] sm:$0xff] %vm306_vm0, %v641_v42  ;;  %659 = vst.msk [vmem:[#allocation2 + $0x1] sm:$0xff] %vm306_vm0, %v639_v43 }
 0x161   : > { %v585_v46 = vpop.permute.xlu1 %584  ;;  %v581_v47 = vpop.permute.xlu0 %580 }
 0x162   : > { %v642_v48 = vsel %vm638_vm3, %v520_v44, %v585_v46  ;;  %v640_v49 = vsel %vm638_vm3, %v518_v45, %v581_v47 }
 0x163   : > { %662 = vst.msk [vmem:[#allocation2 + $0x21] sm:$0xff] %vm306_vm0, %v642_v48  ;;  %660 = vst.msk [vmem:[#allocation2 + $0x9] sm:$0xff] %vm306_vm0, %v640_v49 }
 0x165   : > { %v589_v52 = vpop.permute.xlu1 %588  ;;  %v587_v53 = vpop.permute.xlu0 %586 }
 0x166   : > { %v644_v54 = vsel %vm638_vm3, %v522_v50, %v589_v52  ;;  %v643_v55 = vsel %vm638_vm3, %v521_v51, %v587_v53 }
 0x167   : > { %664 = vst.msk [vmem:[#allocation2 + $0x39] sm:$0xff] %vm306_vm0, %v644_v54  ;;  %663 = vst.msk [vmem:[#allocation2 + $0x31] sm:$0xff] %vm306_vm0, %v643_v55 }
 0x169   : > { %v593_v58 = vpop.permute.xlu1 %592  ;;  %v591_v59 = vpop.permute.xlu0 %590 }
 0x16a   : > { %v646_v60 = vsel %vm638_vm3, %v524_v56, %v593_v58  ;;  %v645_v61 = vsel %vm638_vm3, %v523_v57, %v591_v59 }
 0x16b   : > { %666 = vst.msk [vmem:[#allocation2 + $0x51] sm:$0xff] %vm306_vm0, %v646_v60  ;;  %665 = vst.msk [vmem:[#allocation2 + $0x49] sm:$0xff] %vm306_vm0, %v645_v61 }
 0x16d   : > { %v597_v1 = vpop.permute.xlu1 %596  ;;  %v595_v2 = vpop.permute.xlu0 %594 }
 0x16e   : > { %v648_v3 = vsel %vm638_vm3, %v526_v62, %v597_v1  ;;  %v647_v4 = vsel %vm638_vm3, %v525_v63, %v595_v2 }
 0x16f   : > { %668 = vst.msk [vmem:[#allocation2 + $0x69] sm:$0xff] %vm306_vm0, %v648_v3  ;;  %667 = vst.msk [vmem:[#allocation2 + $0x61] sm:$0xff] %vm306_vm0, %v647_v4 }
 0x171   : > { %v601_v7 = vpop.permute.xlu1 %600  ;;  %v599_v8 = vpop.permute.xlu0 %598 }
 0x172   : > { %v650_v9 = vsel %vm638_vm3, %v528_v5, %v601_v7  ;;  %v649_v10 = vsel %vm638_vm3, %v527_v6, %v599_v8 }
 0x173   : > { %670 = vst.msk [vmem:[#allocation2 + $0x81] sm:$0xff] %vm306_vm0, %v650_v9  ;;  %669 = vst.msk [vmem:[#allocation2 + $0x79] sm:$0xff] %vm306_vm0, %v649_v10 }
 0x175   : > { %v605_v13 = vpop.permute.xlu1 %604  ;;  %v603_v14 = vpop.permute.xlu0 %602 }
 0x176   : > { %v652_v15 = vsel %vm638_vm3, %v530_v11, %v605_v13  ;;  %v651_v16 = vsel %vm638_vm3, %v529_v12, %v603_v14 }
 0x177   : > { %672 = vst.msk [vmem:[#allocation2 + $0x99] sm:$0xff] %vm306_vm0, %v652_v15  ;;  %671 = vst.msk [vmem:[#allocation2 + $0x91] sm:$0xff] %vm306_vm0, %v651_v16 }
 0x179   : > { %v609_v19 = vpop.permute.xlu1 %608  ;;  %v607_v20 = vpop.permute.xlu0 %606 }
 0x17a   : > { %v654_v21 = vsel %vm638_vm3, %v532_v17, %v609_v19  ;;  %v653_v22 = vsel %vm638_vm3, %v531_v18, %v607_v20 }
 0x17b   : > { %674 = vst.msk [vmem:[#allocation2 + $0xb1] sm:$0xff] %vm306_vm0, %v654_v21  ;;  %673 = vst.msk [vmem:[#allocation2 + $0xa9] sm:$0xff] %vm306_vm0, %v653_v22 }
 0x17d   : > { %v613_v25 = vpop.permute.xlu1 %612  ;;  %v611_v26 = vpop.permute.xlu0 %610 }
 0x17e   : > { %v656_v27 = vsel %vm638_vm3, %v534_v23, %v613_v25  ;;  %v655_v28 = vsel %vm638_vm3, %v533_v24, %v611_v26 }
 0x17f   : > { %676 = vst.msk [vmem:[#allocation2 + $0xc9] sm:$0xff] %vm306_vm0, %v656_v27  ;;  %675 = vst.msk [vmem:[#allocation2 + $0xc1] sm:$0xff] %vm306_vm0, %v655_v28 }
 0x181   : > { %v617_v31 = vpop.permute.xlu1 %616  ;;  %v615_v32 = vpop.permute.xlu0 %614 }
 0x182   : > { %v658_v33 = vsel %vm638_vm3, %v536_v29, %v617_v31  ;;  %v657_v34 = vsel %vm638_vm3, %v535_v30, %v615_v32 }
 0x183   : > { %678 = vst.msk [vmem:[#allocation2 + $0xe1] sm:$0xff] %vm306_vm0, %v658_v33  ;;  %677 = vst.msk [vmem:[#allocation2 + $0xd9] sm:$0xff] %vm306_vm0, %v657_v34 }
 0x184 PF: > { %v5754_v35 = vld [vmem:[%s10252_s2 + $0x20] sm:$0xff]  ;;  %v5755_v36 = vld [vmem:[%s10252_s2 + $0x28] sm:$0xff]  ;;  %v5756_v37 = vld [vmem:[%s10252_s2 + $0x30] sm:$0xff]  ;;  %vm3238_vm4 = vcmask 523264   ;;  %vm3241_vm5 = vcmask 517120   ;;  %s5967_s8 = sadd.s32 4294967295, %s5749_s15 }
 0x185   : > { %v7323_v38 = vpack.c.bf16 %v5755_v36, %v5754_v35  ;;  %v5757_v39 = vld [vmem:[%s10252_s2 + $0x38] sm:$0xff]  ;;  %v703_v40 = vld [vmem:[#allocation2 + $0x1] sm:$0xff]  ;;  %v701_v45 = vld [vmem:[%s10252_s2 + $0x10] sm:$0xff]  ;;  %s8165_s11 = smov 112   ;;  %s6181_s30 = sshll.u32 %s8145_s28, 5 }
 0x186   : > { %v7327_v41 = vpack.c.bf16 %v5757_v39, %v5756_v37  ;;  %6629 = vmatprep.mubr.msk.f32.mxu0 %vm306_vm0, %v703_v40  ;;  %v699_v42 = vld [vmem:[%s10252_s2] sm:$0xff]  ;;  %v700_v43 = vld [vmem:[%s10252_s2 + $0x8] sm:$0xff]  ;;  %v702_v46 = vld [vmem:[%s10252_s2 + $0x18] sm:$0xff]  ;;  %s5632_s28 = sshll.u32 %s8445_s12, 4  ;;  %s10297_s17 = sand.u32 1, %s8121_s22   ;;  %s10183_s28 = int_to_ptr.vmem [resolvable:$true] %s5632_s28 }
 0x187   : > { %7324 = vmatprep.subr.bf16.mxu0 %v7323_v38  ;;  %v7331_v44 = vpack.c.bf16 %v700_v43, %v699_v42  ;;  %v704_v47 = vld [vmem:[#allocation2 + $0x9] sm:$0xff]  ;;  %v8689_v48 = vld [vmem:[#allocation2 + $0x19] sm:$0xff]  ;;  %v7335_v49 = vpack.c.bf16 %v702_v46, %v701_v45  ;;  %v8700_v52 = vld [vmem:[#allocation2 + $0x21] sm:$0xff]  ;;  %s10189_s18 = scalar_lea.sflag [#allocation6], %s10297_s17  ;;  %p10298_p0 = scmp.ne.s32.totalorder %s10272_s19, 0 }
 0x188   : > { %7326 = vmatpush3.bf16.msra.mxu0 %v7323_v38  ;;  %v5798_v50 = vld [vmem:[%s10252_s2 + $0x40] sm:$0xff]  ;;  %v5799_v51 = vld [vmem:[%s10252_s2 + $0x48] sm:$0xff]  ;;  %v8702_v53 = vld [vmem:[#allocation2 + $0x31] sm:$0xff] }
 0x189   : > { %7328 = vmatprep.subr.bf16.mxu0 %v7327_v41  ;;  %v7339_v54 = vpack.c.bf16 %v5799_v51, %v5798_v50  ;;  %v8708_v55 = vld [vmem:[#allocation2 + $0x39] sm:$0xff]  ;;  %v8710_v56 = vld [vmem:[#allocation2 + $0x49] sm:$0xff]  ;;  %v8716_v57 = vld [vmem:[#allocation2 + $0x51] sm:$0xff] }
 0x18a   : > { %v8718_v58 = vld [vmem:[#allocation2 + $0x4a] sm:$0xff]  ;;  %v8720_v59 = vld [vmem:[#allocation2 + $0x61] sm:$0xff]  ;;  %v8730_v61 = vld [vmem:[#allocation2 + $0x79] sm:$0xff] }
 0x18b   : > { %6936 = vmatprep.mubr.msk.f32.mxu1 %vm306_vm0, %v8718_v58  ;;  %v8728_v60 = vld [vmem:[#allocation2 + $0x69] sm:$0xff]  ;;  %v8736_v62 = vld [vmem:[#allocation2 + $0x81] sm:$0xff]  ;;  %v8738_v63 = vld [vmem:[#allocation2 + $0x91] sm:$0xff] }
 0x18c   : > { %7330 = vmatpush3.bf16.msra.mxu0 %v7327_v41  ;;  %v8744_v1 = vld [vmem:[#allocation2 + $0x99] sm:$0xff]  ;;  %v8746_v2 = vld [vmem:[#allocation2 + $0xa9] sm:$0xff]  ;;  %v8752_v3 = vld [vmem:[#allocation2 + $0xb1] sm:$0xff] }
 0x18d   : > { %7332 = vmatprep.subr.bf16.mxu0 %v7331_v44  ;;  %v8754_v4 = vld [vmem:[#allocation2 + $0xc1] sm:$0xff]  ;;  %v8760_v5 = vld [vmem:[#allocation2 + $0xc9] sm:$0xff]  ;;  %v8762_v6 = vld [vmem:[#allocation2 + $0xd9] sm:$0xff] }
 0x18e   : > { %v8768_v7 = vld [vmem:[#allocation2 + $0xe1] sm:$0xff]  ;;  %v5800_v9 = vld [vmem:[%s10252_s2 + $0x50] sm:$0xff]  ;;  %v5801_v10 = vld [vmem:[%s10252_s2 + $0x58] sm:$0xff] }
 0x18f   : > { %6630 = vmatmul.mubr.msk.f32.vlgmr.msra.gmra.mrb[0].mxu0 %vm306_vm0, %v704_v47  ;;  %v679_v8 = vld [vmem:[#allocation2] sm:$0xff]  ;;  %v680_v11 = vld [vmem:[#allocation2 + $0x8] sm:$0xff]  ;;  %v8779_v12 = vld [vmem:[#allocation2 + $0x18] sm:$0xff]  ;;  %v7343_v13 = vpack.c.bf16 %v5801_v10, %v5800_v9 }
 0x190   : > { %7334 = vmatpush3.bf16.msra.mxu0 %v7331_v44  ;;  %6632 = vmatprep.mubr.msk.f32.mxu0 %vm306_vm0, %v8689_v48  ;;  %v5822_v14 = vld [vmem:[%s10252_s2 + $0x60] sm:$0xff]  ;;  %v5823_v15 = vld [vmem:[%s10252_s2 + $0x68] sm:$0xff]  ;;  %v8792_v17 = vld [vmem:[#allocation2 + $0x30] sm:$0xff] }
 0x191   : > { %7336 = vmatprep.subr.bf16.mxu0 %v7335_v49  ;;  %v8790_v16 = vld [vmem:[#allocation2 + $0x20] sm:$0xff]  ;;  %v7347_v18 = vpack.c.bf16 %v5823_v15, %v5822_v14  ;;  %v8798_v19 = vld [vmem:[#allocation2 + $0x38] sm:$0xff]  ;;  %v8800_v20 = vld [vmem:[#allocation2 + $0x48] sm:$0xff] }
 0x192   : > { %v8806_v21 = vld [vmem:[#allocation2 + $0x50] sm:$0xff]  ;;  %v8808_v22 = vld [vmem:[#allocation2 + $0x60] sm:$0xff]  ;;  %v8814_v23 = vld [vmem:[#allocation2 + $0x68] sm:$0xff] }
 0x193   : > { %6633 = vmatmul.mubr.msk.f32.gmra.mrb[2].mxu0 %vm306_vm0, %v8700_v52  ;;  %v8816_v24 = vld [vmem:[#allocation2 + $0x78] sm:$0xff]  ;;  %v8822_v25 = vld [vmem:[#allocation2 + $0x80] sm:$0xff]  ;;  %v8824_v26 = vld [vmem:[#allocation2 + $0x90] sm:$0xff] }
 0x194   : > { %6635 = vmatprep.mubr.msk.f32.mxu0 %vm306_vm0, %v8702_v53  ;;  %7338 = vmatpush3.bf16.msra.mxu0 %v7335_v49  ;;  %v8830_v27 = vld [vmem:[#allocation2 + $0x98] sm:$0xff]  ;;  %v8832_v28 = vld [vmem:[#allocation2 + $0xa8] sm:$0xff]  ;;  %v8838_v29 = vld [vmem:[#allocation2 + $0xb0] sm:$0xff] }
 0x195   : > { %7340 = vmatprep.subr.bf16.mxu0 %v7339_v54  ;;  %v8840_v30 = vld [vmem:[#allocation2 + $0xc0] sm:$0xff]  ;;  %v8846_v31 = vld [vmem:[#allocation2 + $0xc8] sm:$0xff]  ;;  %v8848_v32 = vld [vmem:[#allocation2 + $0xd8] sm:$0xff] }
 0x196   : > { %v8854_v33 = vld [vmem:[#allocation2 + $0xe0] sm:$0xff]  ;;  %v5824_v35 = vld [vmem:[%s10252_s2 + $0x70] sm:$0xff]  ;;  %v5825_v36 = vld [vmem:[%s10252_s2 + $0x78] sm:$0xff] }
 0x197   : > { %6636 = vmatmul.mubr.msk.f32.gmra.mrb[4].mxu0 %vm306_vm0, %v8708_v55  ;;  %v1178_v34 = vld [vmem:[#allocation2 + $0x2] sm:$0xff]  ;;  %v1179_v37 = vld [vmem:[#allocation2 + $0xa] sm:$0xff]  ;;  %v8865_v38 = vld [vmem:[#allocation2 + $0x1a] sm:$0xff]  ;;  %v7351_v39 = vpack.c.bf16 %v5825_v36, %v5824_v35 }
 0x198   : > { %6638 = vmatprep.mubr.msk.f32.mxu0 %vm306_vm0, %v8710_v56  ;;  %v5846_v40 = vld [vmem:[%s10252_s2 + $0x80] sm:$0xff]  ;;  %v5847_v41 = vld [vmem:[%s10252_s2 + $0x88] sm:$0xff]  ;;  %v8878_v43 = vld [vmem:[#allocation2 + $0x32] sm:$0xff] }
 0x199   : > { %v8876_v42 = vld [vmem:[#allocation2 + $0x22] sm:$0xff]  ;;  %v7355_v44 = vpack.c.bf16 %v5847_v41, %v5846_v40  ;;  %v8884_v45 = vld [vmem:[#allocation2 + $0x3a] sm:$0xff]  ;;  %v8890_v46 = vld [vmem:[#allocation2 + $0x52] sm:$0xff] }
 0x19a   : > { %v8892_v47 = vld [vmem:[#allocation2 + $0x62] sm:$0xff]  ;;  %v8898_v49 = vld [vmem:[#allocation2 + $0x6a] sm:$0xff]  ;;  %v8900_v50 = vld [vmem:[#allocation2 + $0x7a] sm:$0xff] }
 0x19b   : > { %6639 = vmatmul.mubr.msk.f32.gmra.mrb[6].mxu0 %vm306_vm0, %v8716_v57  ;;  %v8906_v51 = vld [vmem:[#allocation2 + $0x82] sm:$0xff]  ;;  %v8916_v9 = vld [vmem:[#allocation2 + $0xaa] sm:$0xff]  ;;  %v8922_v10 = vld [vmem:[#allocation2 + $0xb2] sm:$0xff] }
 0x19c   : > { %6641 = vmatprep.mubr.msk.f32.mxu0 %vm306_vm0, %v8720_v59  ;;  %v8932_v14 = vld [vmem:[#allocation2 + $0xda] sm:$0xff]  ;;  %v8938_v15 = vld [vmem:[#allocation2 + $0xe2] sm:$0xff]  ;;  %v5944_v41 = vld [vmem:[%s10252_s2 + $0x110] sm:$0xff] }
 0x19d   : > { %v5870_v36 = vld [vmem:[%s10252_s2 + $0xa0] sm:$0xff]  ;;  %v5919_v0 = vld [vmem:[%s10252_s2 + $0xe8] sm:$0xff] }
 0x19f   : > { %6642 = vmatmul.mubr.msk.f32.gmra.mrb[8].mxu0 %vm306_vm0, %v8728_v60 }
 0x1a0   : > { %6644 = vmatprep.mubr.msk.f32.mxu0 %vm306_vm0, %v8730_v61 }
 0x1a3   : > { %6645 = vmatmul.mubr.msk.f32.gmra.mrb[10].mxu0 %vm306_vm0, %v8736_v62 }
 0x1a4   : > { %6647 = vmatprep.mubr.msk.f32.mxu0 %vm306_vm0, %v8738_v63 }
 0x1a7   : > { %6648 = vmatmul.mubr.msk.f32.gmra.mrb[12].mxu0 %vm306_vm0, %v8744_v1 }
 0x1a8   : > { %6650 = vmatprep.mubr.msk.f32.mxu0 %vm306_vm0, %v8746_v2 }
 0x1ab   : > { %6651 = vmatmul.mubr.msk.f32.gmra.mrb[14].mxu0 %vm306_vm0, %v8752_v3 }
 0x1ac   : > { %6653 = vmatprep.mubr.msk.f32.mxu0 %vm306_vm0, %v8754_v4 }
 0x1af   : > { %6654 = vmatmul.mubr.msk.f32.gmra.mrb[16].mxu0 %vm306_vm0, %v8760_v5 }
 0x1b0   : > { %6656 = vmatprep.mubr.msk.f32.mxu0 %vm306_vm0, %v8762_v6 }
 0x1b3   : > { %6657 = vmatmul.mubr.msk.f32.gmra.mrb[18].mxu0 %vm306_vm0, %v8768_v7 }
 0x1b4   : > { %6667 = vmatprep.mubr.msk.f32.mxu0 %vm306_vm0, %v679_v8  ;;  %v8914_v8 = vld [vmem:[#allocation2 + $0x9a] sm:$0xff] }
 0x1b7   : > { %6668 = vmatmul.mubr.msk.f32.vlgmr.msra.gmra.mrb[0].mxu0 %vm306_vm0, %v680_v11  ;;  %v8924_v11 = vld [vmem:[#allocation2 + $0xc2] sm:$0xff] }
 0x1b8   : > { %7342 = vmatpush3.bf16.msra.mxu0 %v7339_v54  ;;  %6670 = vmatprep.mubr.msk.f32.mxu0 %vm306_vm0, %v8779_v12  ;;  %v8908_v54 = vld [vmem:[#allocation2 + $0x92] sm:$0xff] }
 0x1b9   : > { %7344 = vmatprep.subr.bf16.mxu0 %v7343_v13 }
 0x1bb   : > { %6671 = vmatmul.mubr.msk.f32.gmra.mrb[2].mxu0 %vm306_vm0, %v8790_v16 }
 0x1bc   : > { %6673 = vmatprep.mubr.msk.f32.mxu0 %vm306_vm0, %v8792_v17  ;;  %7346 = vmatpush3.bf16.msra.mxu0 %v7343_v13  ;;  %v8930_v13 = vld [vmem:[#allocation2 + $0xca] sm:$0xff] }
 0x1bd   : > { %7348 = vmatprep.subr.bf16.mxu0 %v7347_v18 }
 0x1bf   : > { %6674 = vmatmul.mubr.msk.f32.gmra.mrb[4].mxu0 %vm306_vm0, %v8798_v19 }
 0x1c0   : > { %6676 = vmatprep.mubr.msk.f32.mxu0 %vm306_vm0, %v8800_v20 }
 0x1c3   : > { %6677 = vmatmul.mubr.msk.f32.gmra.mrb[6].mxu0 %vm306_vm0, %v8806_v21 }
 0x1c4   : > { %6679 = vmatprep.mubr.msk.f32.mxu0 %vm306_vm0, %v8808_v22 }
 0x1c7   : > { %6680 = vmatmul.mubr.msk.f32.gmra.mrb[8].mxu0 %vm306_vm0, %v8814_v23 }
 0x1c8   : > { %6682 = vmatprep.mubr.msk.f32.mxu0 %vm306_vm0, %v8816_v24 }
 0x1cb   : > { %6683 = vmatmul.mubr.msk.f32.gmra.mrb[10].mxu0 %vm306_vm0, %v8822_v25 }
 0x1cc   : > { %6685 = vmatprep.mubr.msk.f32.mxu0 %vm306_vm0, %v8824_v26 }
 0x1cf   : > { %6686 = vmatmul.mubr.msk.f32.gmra.mrb[12].mxu0 %vm306_vm0, %v8830_v27 }
 0x1d0   : > { %6688 = vmatprep.mubr.msk.f32.mxu0 %vm306_vm0, %v8832_v28 }
 0x1d3   : > { %6689 = vmatmul.mubr.msk.f32.gmra.mrb[14].mxu0 %vm306_vm0, %v8838_v29 }
 0x1d4   : > { %6691 = vmatprep.mubr.msk.f32.mxu0 %vm306_vm0, %v8840_v30 }
 0x1d7   : > { %6692 = vmatmul.mubr.msk.f32.gmra.mrb[16].mxu0 %vm306_vm0, %v8846_v31 }
 0x1d8   : > { %6694 = vmatprep.mubr.msk.f32.mxu0 %vm306_vm0, %v8848_v32 }
 0x1db   : > { %6695 = vmatmul.mubr.msk.f32.gmra.mrb[18].mxu0 %vm306_vm0, %v8854_v33 }
 0x1dc   : > { %6705 = vmatprep.mubr.msk.f32.mxu0 %vm306_vm0, %v1178_v34  ;;  %v5849_v34 = vld [vmem:[%s10252_s2 + $0x98] sm:$0xff] }
 0x1df   : > { %6706 = vmatmul.mubr.msk.f32.vlgmr.msra.gmra.mrb[0].mxu0 %vm306_vm0, %v1179_v37  ;;  %v5871_v37 = vld [vmem:[%s10252_s2 + $0xa8] sm:$0xff] }
 0x1e0   : > { %7350 = vmatpush3.bf16.msra.mxu0 %v7347_v18  ;;  %6708 = vmatprep.mubr.msk.f32.mxu0 %vm306_vm0, %v8865_v38  ;;  %v5848_v18 = vld [vmem:[%s10252_s2 + $0x90] sm:$0xff] }
 0x1e1   : > { %7352 = vmatprep.subr.bf16.mxu0 %v7351_v39  ;;  %v7359_v35 = vpack.c.bf16 %v5849_v34, %v5848_v18  ;;  %v9004_v18 = vld [vmem:[#allocation2 + $0xf0] sm:$0xff] }
 0x1e3   : > { %6709 = vmatmul.mubr.msk.f32.gmra.mrb[2].mxu0 %vm306_vm0, %v8876_v42 }
 0x1e4   : > { %6711 = vmatprep.mubr.msk.f32.mxu0 %vm306_vm0, %v8878_v43  ;;  %7354 = vmatpush3.bf16.msra.mxu0 %v7351_v39  ;;  %v7363_v39 = vpack.c.bf16 %v5871_v37, %v5870_v36  ;;  %v5872_v36 = vld [vmem:[%s10252_s2 + $0xb0] sm:$0xff]  ;;  %v5873_v37 = vld [vmem:[%s10252_s2 + $0xb8] sm:$0xff] }
 0x1e5   : > { %7356 = vmatprep.subr.bf16.mxu0 %v7355_v44 }
 0x1e7   : > { %6712 = vmatmul.mubr.msk.f32.gmra.mrb[4].mxu0 %vm306_vm0, %v8884_v45 }
 0x1e8   : > { %6714 = vmatprep.mubr.msk.f32.mxu0 %vm306_vm0, %v8718_v58 }
 0x1eb   : > { %6715 = vmatmul.mubr.msk.f32.gmra.mrb[6].mxu0 %vm306_vm0, %v8890_v46 }
 0x1ec   : > { %6717 = vmatprep.mubr.msk.f32.mxu0 %vm306_vm0, %v8892_v47 }
 0x1ef   : > { %6718 = vmatmul.mubr.msk.f32.gmra.mrb[8].mxu0 %vm306_vm0, %v8898_v49 }
 0x1f0   : > { %6720 = vmatprep.mubr.msk.f32.mxu0 %vm306_vm0, %v8900_v50 }
 0x1f3   : > { %6721 = vmatmul.mubr.msk.f32.gmra.mrb[10].mxu0 %vm306_vm0, %v8906_v51 }
 0x1f4   : > { %6723 = vmatprep.mubr.msk.f32.mxu0 %vm306_vm0, %v8908_v54 }
 0x1f7   : > { %6724 = vmatmul.mubr.msk.f32.gmra.mrb[12].mxu0 %vm306_vm0, %v8914_v8 }
 0x1f8   : > { %6726 = vmatprep.mubr.msk.f32.mxu0 %vm306_vm0, %v8916_v9 }
 0x1fb   : > { %6727 = vmatmul.mubr.msk.f32.gmra.mrb[14].mxu0 %vm306_vm0, %v8922_v10 }
 0x1fc   : > { %6729 = vmatprep.mubr.msk.f32.mxu0 %vm306_vm0, %v8924_v11 }
 0x1ff   : > { %6730 = vmatmul.mubr.msk.f32.gmra.mrb[16].mxu0 %vm306_vm0, %v8930_v13 }
 0x200   : > { %6732 = vmatprep.mubr.msk.f32.mxu0 %vm306_vm0, %v8932_v14 }
 0x203   : > { %6733 = vmatmul.mubr.msk.f32.gmra.mrb[18].mxu0 %vm306_vm0, %v8938_v15 }
 0x204   : > { %6743 = vmatprep.mubr.msk.f32.mxu0 %vm306_vm0, %v8779_v12  ;;  %v5942_v12 = vld [vmem:[%s10252_s2 + $0x100] sm:$0xff] }
 0x207   : > { %6744 = vmatmul.mubr.msk.f32.vlgmr.msra.gmra.mrb[0].mxu0 %vm306_vm0, %v8790_v16  ;;  %v5943_v16 = vld [vmem:[%s10252_s2 + $0x108] sm:$0xff] }
 0x208   : > { %7358 = vmatpush3.bf16.msra.mxu0 %v7355_v44  ;;  %6746 = vmatprep.mubr.msk.f32.mxu0 %vm306_vm0, %v8792_v17  ;;  %v8990_v40 = vpack.c.bf16 %v5943_v16, %v5942_v12  ;;  %v5945_v44 = vld [vmem:[%s10252_s2 + $0x118] sm:$0xff]  ;;  %v7367_v12 = vpack.c.bf16 %v5873_v37, %v5872_v36  ;;  %v5894_v16 = vld [vmem:[%s10252_s2 + $0xc0] sm:$0xff] }
 0x209   : > { %7360 = vmatprep.subr.bf16.mxu0 %v7359_v35  ;;  %v9006_v34 = vpack.c.bf16 %v5945_v44, %v5944_v41  ;;  %v5895_v41 = vld [vmem:[%s10252_s2 + $0xc8] sm:$0xff]  ;;  %v2819_v36 = vld [vmem:[#allocation2 + $0x112] sm:$0xff] }
 0x20a   : > { %7539 = vmatprep.subr.bf16.mxu1 %v8990_v40  ;;  %v2818_v44 = vld [vmem:[#allocation2 + $0x10a] sm:$0xff] }
 0x20b   : > { %6747 = vmatmul.mubr.msk.f32.gmra.mrb[2].mxu0 %vm306_vm0, %v8798_v19  ;;  %7541 = vmatpush3.bf16.msra.mxu1 %v8990_v40  ;;  %v9094_v37 = vld [vmem:[#allocation2 + $0xf1] sm:$0xff] }
 0x20c   : > { %6749 = vmatprep.mubr.msk.f32.mxu0 %vm306_vm0, %v8800_v20  ;;  %7362 = vmatpush3.bf16.msra.mxu0 %v7359_v35  ;;  %v9013_v35 = vld [vmem:[#allocation2 + $0xf8] sm:$0xff] }
 0x20d   : > { %7364 = vmatprep.subr.bf16.mxu0 %v7363_v39  ;;  %7540 = vmatprep.subr.bf16.mxu1 %v9006_v34 }
 0x20f   : > { %6750 = vmatmul.mubr.msk.f32.gmra.mrb[4].mxu0 %vm306_vm0, %v8806_v21  ;;  %7542 = vmatpush3.bf16.msra.mxu1 %v9006_v34 }
 0x210   : > { %6752 = vmatprep.mubr.msk.f32.mxu0 %vm306_vm0, %v8808_v22 }
 0x212   : > { %6937 = vmatmul.mubr.msk.f32.vlgmr.msra.gmra.mrb[0].mxu1 %vm306_vm0, %v8890_v46 }
 0x213   : > { %6753 = vmatmul.mubr.msk.f32.gmra.mrb[6].mxu0 %vm306_vm0, %v8814_v23  ;;  %6939 = vmatprep.mubr.msk.f32.mxu1 %vm306_vm0, %v8892_v47 }
 0x214   : > { %6755 = vmatprep.mubr.msk.f32.mxu0 %vm306_vm0, %v8816_v24 }
 0x216   : > { %6940 = vmatmul.mubr.msk.f32.gmra.mrb[2].mxu1 %vm306_vm0, %v8898_v49 }
 0x217   : > { %6756 = vmatmul.mubr.msk.f32.gmra.mrb[8].mxu0 %vm306_vm0, %v8822_v25  ;;  %6942 = vmatprep.mubr.msk.f32.mxu1 %vm306_vm0, %v8900_v50 }
 0x218   : > { %6758 = vmatprep.mubr.msk.f32.mxu0 %vm306_vm0, %v8824_v26 }
 0x21a   : > { %6943 = vmatmul.mubr.msk.f32.gmra.mrb[4].mxu1 %vm306_vm0, %v8906_v51 }
 0x21b   : > { %6759 = vmatmul.mubr.msk.f32.gmra.mrb[10].mxu0 %vm306_vm0, %v8830_v27  ;;  %6945 = vmatprep.mubr.msk.f32.mxu1 %vm306_vm0, %v8908_v54 }
 0x21c   : > { %6761 = vmatprep.mubr.msk.f32.mxu0 %vm306_vm0, %v8832_v28 }
 0x21e   : > { %6946 = vmatmul.mubr.msk.f32.gmra.mrb[6].mxu1 %vm306_vm0, %v8914_v8 }
 0x21f   : > { %6762 = vmatmul.mubr.msk.f32.gmra.mrb[12].mxu0 %vm306_vm0, %v8838_v29  ;;  %6948 = vmatprep.mubr.msk.f32.mxu1 %vm306_vm0, %v8916_v9 }
 0x220   : > { %6764 = vmatprep.mubr.msk.f32.mxu0 %vm306_vm0, %v8840_v30 }
 0x222   : > { %6949 = vmatmul.mubr.msk.f32.gmra.mrb[8].mxu1 %vm306_vm0, %v8922_v10 }
 0x223   : > { %6765 = vmatmul.mubr.msk.f32.gmra.mrb[14].mxu0 %vm306_vm0, %v8846_v31  ;;  %6951 = vmatprep.mubr.msk.f32.mxu1 %vm306_vm0, %v8924_v11 }
 0x224   : > { %6767 = vmatprep.mubr.msk.f32.mxu0 %vm306_vm0, %v8848_v32 }
 0x226   : > { %6952 = vmatmul.mubr.msk.f32.gmra.mrb[10].mxu1 %vm306_vm0, %v8930_v13 }
 0x227   : > { %6768 = vmatmul.mubr.msk.f32.gmra.mrb[16].mxu0 %vm306_vm0, %v8854_v33  ;;  %6954 = vmatprep.mubr.msk.f32.mxu1 %vm306_vm0, %v8932_v14 }
 0x228   : > { %6770 = vmatprep.mubr.msk.f32.mxu0 %vm306_vm0, %v9004_v18 }
 0x22a   : > { %6955 = vmatmul.mubr.msk.f32.gmra.mrb[12].mxu1 %vm306_vm0, %v8938_v15 }
 0x22b   : > { %6771 = vmatmul.mubr.msk.f32.gmra.mrb[18].mxu0 %vm306_vm0, %v9013_v35 }
 0x22c   : > { %6781 = vmatprep.mubr.msk.f32.mxu0 %vm306_vm0, %v8689_v48  ;;  %v7371_v48 = vpack.c.bf16 %v5895_v41, %v5894_v16  ;;  %v5896_v16 = vld [vmem:[%s10252_s2 + $0xd0] sm:$0xff]  ;;  %v5897_v41 = vld [vmem:[%s10252_s2 + $0xd8] sm:$0xff] }
 0x22f   : > { %6782 = vmatmul.mubr.msk.f32.vlgmr.msra.gmra.mrb[0].mxu0 %vm306_vm0, %v8700_v52  ;;  %v2007_v52 = vld [vmem:[#allocation2 + $0xf2] sm:$0xff] }
 0x230   : > { %7366 = vmatpush3.bf16.msra.mxu0 %v7363_v39  ;;  %6784 = vmatprep.mubr.msk.f32.mxu0 %vm306_vm0, %v8702_v53  ;;  %v2008_v39 = vld [vmem:[#allocation2 + $0xfa] sm:$0xff] }
 0x231   : > { %7368 = vmatprep.subr.bf16.mxu0 %v7367_v12  ;;  %6957 = vmatprep.mubr.msk.f32.mxu1 %vm306_vm0, %v2007_v52 }
 0x232   : > { %6958 = vmatmul.mubr.msk.f32.gmra.mrb[14].mxu1 %vm306_vm0, %v2008_v39 }
 0x233   : > { %6785 = vmatmul.mubr.msk.f32.gmra.mrb[2].mxu0 %vm306_vm0, %v8708_v55  ;;  %6960 = vmatprep.mubr.msk.f32.mxu1 %vm306_vm0, %v2818_v44  ;;  %v7375_v44 = vpack.c.bf16 %v5897_v41, %v5896_v16 }
 0x234   : > { %6787 = vmatprep.mubr.msk.f32.mxu0 %vm306_vm0, %v8710_v56  ;;  %7370 = vmatpush3.bf16.msra.mxu0 %v7367_v12  ;;  %v9100_v12 = vld [vmem:[#allocation2 + $0xf9] sm:$0xff] }
 0x235   : > { %7372 = vmatprep.subr.bf16.mxu0 %v7371_v48  ;;  %10276 = vst [vmem:[#allocation14_spill] sm:$0xff] %v9100_v12 }
 0x236   : > { %6961 = vmatmul.mubr.msk.f32.gmra.mrb[16].mxu1 %vm306_vm0, %v2819_v36  ;;  %v5918_v36 = vld [vmem:[%s10252_s2 + $0xe0] sm:$0xff] }
 0x237   : > { %6788 = vmatmul.mubr.msk.f32.gmra.mrb[4].mxu0 %vm306_vm0, %v8716_v57 }
 0x238   : > { %6790 = vmatprep.mubr.msk.f32.mxu0 %vm306_vm0, %v8720_v59 }
 0x23b   : > { %6791 = vmatmul.mubr.msk.f32.gmra.mrb[6].mxu0 %vm306_vm0, %v8728_v60 }
 0x23c   : > { %6793 = vmatprep.mubr.msk.f32.mxu0 %vm306_vm0, %v8730_v61 }
 0x23f   : > { %6794 = vmatmul.mubr.msk.f32.gmra.mrb[8].mxu0 %vm306_vm0, %v8736_v62 }
 0x240   : > { %6796 = vmatprep.mubr.msk.f32.mxu0 %vm306_vm0, %v8738_v63 }
 0x243   : > { %6797 = vmatmul.mubr.msk.f32.gmra.mrb[10].mxu0 %vm306_vm0, %v8744_v1 }
 0x244   : > { %6799 = vmatprep.mubr.msk.f32.mxu0 %vm306_vm0, %v8746_v2 }
 0x247   : > { %6800 = vmatmul.mubr.msk.f32.gmra.mrb[12].mxu0 %vm306_vm0, %v8752_v3 }
 0x248   : > { %6802 = vmatprep.mubr.msk.f32.mxu0 %vm306_vm0, %v8754_v4 }
 0x24b   : > { %6803 = vmatmul.mubr.msk.f32.gmra.mrb[14].mxu0 %vm306_vm0, %v8760_v5 }
 0x24c   : > { %6805 = vmatprep.mubr.msk.f32.mxu0 %vm306_vm0, %v8762_v6 }
 0x24f   : > { %6806 = vmatmul.mubr.msk.f32.gmra.mrb[16].mxu0 %vm306_vm0, %v8768_v7 }
 0x250   : > { %6808 = vmatprep.mubr.msk.f32.mxu0 %vm306_vm0, %v9094_v37 }
 0x253   : > { %6809 = vmatmul.mubr.msk.f32.gmra.mrb[18].mxu0 %vm306_vm0, %v9100_v12  ;;  %v7379_v12 = vpack.c.bf16 %v5919_v0, %v5918_v36  ;;  %v5920_v0 = vld [vmem:[%s10252_s2 + $0xf0] sm:$0xff] }
 0x254   : > { %6819 = vmatprep.mubr.msk.f32.mxu0 %vm306_vm0, %v8865_v38 }
 0x257   : > { %6820 = vmatmul.mubr.msk.f32.vlgmr.msra.gmra.mrb[0].mxu0 %vm306_vm0, %v8876_v42 }
 0x258   : > { %7374 = vmatpush3.bf16.msra.mxu0 %v7371_v48  ;;  %6822 = vmatprep.mubr.msk.f32.mxu0 %vm306_vm0, %v8878_v43 }
 0x259   : > { %7376 = vmatprep.subr.bf16.mxu0 %v7375_v44 }
 0x25b   : > { %6823 = vmatmul.mubr.msk.f32.gmra.mrb[2].mxu0 %vm306_vm0, %v8884_v45 }
 0x25c   : > { %6825 = vmatprep.mubr.msk.f32.mxu0 %vm306_vm0, %v8718_v58  ;;  %7378 = vmatpush3.bf16.msra.mxu0 %v7375_v44  ;;  %v5921_v58 = vld [vmem:[%s10252_s2 + $0xf8] sm:$0xff] }
 0x25d   : > { %7380 = vmatprep.subr.bf16.mxu0 %v7379_v12  ;;  %v7383_v38 = vpack.c.bf16 %v5921_v58, %v5920_v0 }
 0x25f   : > { %6826 = vmatmul.mubr.msk.f32.gmra.mrb[4].mxu0 %vm306_vm0, %v8890_v46 }
 0x260   : > { %6828 = vmatprep.mubr.msk.f32.mxu0 %vm306_vm0, %v8892_v47  ;;  %v3306_v47 = vld [vmem:[%s10254_s4] sm:$0xff] }
 0x263   : > { %6829 = vmatmul.mubr.msk.f32.gmra.mrb[6].mxu0 %vm306_vm0, %v8898_v49  ;;  %v3307_v49 = vld [vmem:[%s10254_s4 + $0x8] sm:$0xff] }
 0x264   : > { %6831 = vmatprep.mubr.msk.f32.mxu0 %vm306_vm0, %v8900_v50  ;;  %v9370_v50 = vpack.c.bf16 %v3307_v49, %v3306_v47 }
 0x267   : > { %6832 = vmatmul.mubr.msk.f32.gmra.mrb[8].mxu0 %vm306_vm0, %v8906_v51  ;;  %v9375_v51 = vstv %s5967_s8  ;;  %s6187_s8 = sshll.u32 %s8141_s27, 7 }
 0x268   : > { %6834 = vmatprep.mubr.msk.f32.mxu0 %vm306_vm0, %v8908_v54  ;;  %v3159_v54 = vadd.s32 1, %v9375_v51  ;;  %v3162_v44 = vadd.s32 4, %v9375_v51  ;;  %s10127_s14 = scalar_lea.vmem %s8442_s13, %s6187_s8  ;;  %s6188_s13 = sshll.u32 %s8141_s27, 4 }
 0x269   : > { %s5629_s15 = sadd.s32 %s6188_s13, %s6181_s30  ;;  %s8166_s8 = smov [#allocation7]  }
 0x26a   : > { %vm3169_vm6 = vcmp.ge.s32.totalorder %v3159_v54, 0  ;;  %vm3179_vm7 = vcmp.lt.s32.totalorder %v3159_v54, 16  ;;  %vm3172_vm2 = vcmp.ge.s32.totalorder %v3162_v44, 0  ;;  %s6182_s27 = sshll.u32 %s5629_s15, 7 }
 0x26b   : > { %6835 = vmatmul.mubr.msk.f32.gmra.mrb[10].mxu0 %vm306_vm0, %v8914_v8  ;;  %vm9389_vm9 = vmand %vm3169_vm6, %vm3179_vm7  ;;  %vm3182_vm7 = vcmp.lt.s32.totalorder %v3162_v44, 16  ;;  %s10181_s29 = scalar_lea.hbm %s10256_s6, %s6182_s27 }
 0x26c   : > { %6837 = vmatprep.mubr.msk.f32.mxu0 %vm306_vm0, %v8916_v9  ;;  %v9381_v9 = vld [vmem:[%s10253_s3] ss:$0 sm:$0xff] }
 0x26f   : > { %6838 = vmatmul.mubr.msk.f32.gmra.mrb[12].mxu0 %vm306_vm0, %v8922_v10 }
 0x270   : > { %6840 = vmatprep.mubr.msk.f32.mxu0 %vm306_vm0, %v8924_v11 }
 0x273   : > { %6841 = vmatmul.mubr.msk.f32.gmra.mrb[14].mxu0 %vm306_vm0, %v8930_v13  ;;  %v3160_v13 = vadd.s32 2, %v9375_v51 }
 0x274   : > { %6843 = vmatprep.mubr.msk.f32.mxu0 %vm306_vm0, %v8932_v14 }
 0x275   : > { %vm3170_vm10 = vcmp.ge.s32.totalorder %v3160_v13, 0  ;;  %vm3180_vm12 = vcmp.lt.s32.totalorder %v3160_v13, 16 }
 0x276   : > { %vm9404_vm15 = vmand %vm3170_vm10, %vm3180_vm12 }
 0x277   : > { %6844 = vmatmul.mubr.msk.f32.gmra.mrb[16].mxu0 %vm306_vm0, %v8938_v15  ;;  %vm9436_vm10 = vmand %vm3172_vm2, %vm3182_vm7 }
 0x278   : > { %6846 = vmatprep.mubr.msk.f32.mxu0 %vm306_vm0, %v2007_v52 }
 0x27b   : > { %6847 = vmatmul.mubr.msk.f32.gmra.mrb[18].mxu0 %vm306_vm0, %v2008_v39 }
 0x27c   : > { %6857 = vmatprep.mubr.msk.f32.mxu0 %vm306_vm0, %v8792_v17  ;;  %v2278_v17 = vld [vmem:[#allocation2 + $0x108] sm:$0xff] }
 0x27f   : > { %6858 = vmatmul.mubr.msk.f32.vlgmr.msra.gmra.mrb[0].mxu0 %vm306_vm0, %v8798_v19  ;;  %v2279_v19 = vld [vmem:[#allocation2 + $0x110] sm:$0xff] }
 0x280   : > { %7382 = vmatpush3.bf16.msra.mxu0 %v7379_v12  ;;  %6860 = vmatprep.mubr.msk.f32.mxu0 %vm306_vm0, %v8800_v20 }
 0x281   : > { %7384 = vmatprep.subr.bf16.mxu0 %v7383_v38 }
 0x283   : > { %6861 = vmatmul.mubr.msk.f32.gmra.mrb[2].mxu0 %vm306_vm0, %v8806_v21 }
 0x284   : > { %6863 = vmatprep.mubr.msk.f32.mxu0 %vm306_vm0, %v8808_v22  ;;  %7386 = vmatpush3.bf16.msra.mxu0 %v7383_v38  ;;  %v5968_v22 = vld [vmem:[%s10254_s4 + $0x40] sm:$0xff] }
 0x285   : > { %7388 = vmatprep.subr.bf16.mxu0 %v8990_v40 }
 0x287   : > { %6864 = vmatmul.mubr.msk.f32.gmra.mrb[4].mxu0 %vm306_vm0, %v8814_v23  ;;  %v5969_v23 = vld [vmem:[%s10254_s4 + $0x48] sm:$0xff] }
 0x288   : > { %6866 = vmatprep.mubr.msk.f32.mxu0 %vm306_vm0, %v8816_v24  ;;  %v7395_v24 = vpack.c.bf16 %v5969_v23, %v5968_v22 }
 0x28a   : > { %7396 = vmatprep.subr.bf16.mxu1 %v7395_v24 }
 0x28b   : > { %6867 = vmatmul.mubr.msk.f32.gmra.mrb[6].mxu0 %vm306_vm0, %v8822_v25  ;;  %7398 = vmatpush3.bf16.msra.mxu1 %v7395_v24 }
 0x28c   : > { %6869 = vmatprep.mubr.msk.f32.mxu0 %vm306_vm0, %v8824_v26 }
 0x28f   : > { %6870 = vmatmul.mubr.msk.f32.gmra.mrb[8].mxu0 %vm306_vm0, %v8830_v27 }
 0x290   : > { %6872 = vmatprep.mubr.msk.f32.mxu0 %vm306_vm0, %v8832_v28 }
 0x293   : > { %6873 = vmatmul.mubr.msk.f32.gmra.mrb[10].mxu0 %vm306_vm0, %v8838_v29  ;;  %v5970_v29 = vld [vmem:[%s10254_s4 + $0x50] sm:$0xff] }
 0x294   : > { %6875 = vmatprep.mubr.msk.f32.mxu0 %vm306_vm0, %v8840_v30  ;;  %v5971_v30 = vld [vmem:[%s10254_s4 + $0x58] sm:$0xff] }
 0x297   : > { %6876 = vmatmul.mubr.msk.f32.gmra.mrb[12].mxu0 %vm306_vm0, %v8846_v31  ;;  %v7399_v31 = vpack.c.bf16 %v5971_v30, %v5970_v29 }
 0x298   : > { %6878 = vmatprep.mubr.msk.f32.mxu0 %vm306_vm0, %v8848_v32  ;;  %v5972_v32 = vld [vmem:[%s10254_s4 + $0x60] sm:$0xff] }
 0x299   : > { %7400 = vmatprep.subr.bf16.mxu1 %v7399_v31 }
 0x29a   : > { %7402 = vmatpush3.bf16.msra.mxu1 %v7399_v31 }
 0x29b   : > { %6879 = vmatmul.mubr.msk.f32.gmra.mrb[14].mxu0 %vm306_vm0, %v8854_v33  ;;  %v5973_v33 = vld [vmem:[%s10254_s4 + $0x68] sm:$0xff] }
 0x29c   : > { %6881 = vmatprep.mubr.msk.f32.mxu0 %vm306_vm0, %v9004_v18  ;;  %v7403_v42 = vpack.c.bf16 %v5973_v33, %v5972_v32 }
 0x29e   : > { %7404 = vmatprep.subr.bf16.mxu1 %v7403_v42 }
 0x29f   : > { %6882 = vmatmul.mubr.msk.f32.gmra.mrb[16].mxu0 %vm306_vm0, %v9013_v35  ;;  %7406 = vmatpush3.bf16.msra.mxu1 %v7403_v42 }
 0x2a0   : > { %6884 = vmatprep.mubr.msk.f32.mxu0 %vm306_vm0, %v2278_v17 }
 0x2a3   : > { %6885 = vmatmul.mubr.msk.f32.gmra.mrb[18].mxu0 %vm306_vm0, %v2279_v19 }
 0x2a4   : > { %6895 = vmatprep.mubr.msk.f32.mxu0 %vm306_vm0, %v8702_v53  ;;  %v2548_v53 = vld [vmem:[#allocation2 + $0x109] sm:$0xff] }
 0x2a7   : > { %6896 = vmatmul.mubr.msk.f32.vlgmr.msra.gmra.mrb[0].mxu0 %vm306_vm0, %v8708_v55  ;;  %v10277_v55 = vld [vmem:[#allocation14_spill] sm:$0xff] }
 0x2a8   : > { %7390 = vmatpush3.bf16.msra.mxu0 %v8990_v40  ;;  %6898 = vmatprep.mubr.msk.f32.mxu0 %vm306_vm0, %v8710_v56  ;;  %v2549_v56 = vld [vmem:[#allocation2 + $0x111] sm:$0xff] }
 0x2a9   : > { %7392 = vmatprep.subr.bf16.mxu0 %v9006_v34 }
 0x2ab   : > { %6899 = vmatmul.mubr.msk.f32.gmra.mrb[2].mxu0 %vm306_vm0, %v8716_v57 }
 0x2ac   : > { %6901 = vmatprep.mubr.msk.f32.mxu0 %vm306_vm0, %v8720_v59  ;;  %7394 = vmatpush3.bf16.msra.mxu0 %v9006_v34  ;;  %v3161_v34 = vadd.s32 3, %v9375_v51 }
 0x2ae   : > { %vm3171_vm13 = vcmp.ge.s32.totalorder %v3161_v34, 0  ;;  %vm3181_vm1 = vcmp.lt.s32.totalorder %v3161_v34, 16 }
 0x2af   : > { %6902 = vmatmul.mubr.msk.f32.gmra.mrb[4].mxu0 %vm306_vm0, %v8728_v60 }
 0x2b0   : > { %6904 = vmatprep.mubr.msk.f32.mxu0 %vm306_vm0, %v8730_v61 }
 0x2b3   : > { %6905 = vmatmul.mubr.msk.f32.gmra.mrb[6].mxu0 %vm306_vm0, %v8736_v62  ;;  %v10278_v62 = vmov 0.0  }
 0x2b4   : > { %6907 = vmatprep.mubr.msk.f32.mxu0 %vm306_vm0, %v8738_v63  ;;  %3244 = vst.msk [vmem:[#allocation3 + $0x20] sm:$0xff] %vm3238_vm4, %v10278_v62  ;;  %3239 = vst.msk [vmem:[#allocation3] sm:$0xff] %vm3238_vm4, %v10278_v62 }
 0x2b5   : > { %3245 = vst.msk [vmem:[#allocation3 + $0x28] sm:$0x3] %vm3241_vm5, %v10278_v62  ;;  %3242 = vst.msk [vmem:[#allocation3 + $0x10] sm:$0x3] %vm3241_vm5, %v10278_v62 }
 0x2b6   : > { %3240 = vst.msk [vmem:[#allocation3 + $0x8] sm:$0xff] %vm3238_vm4, %v10278_v62  ;;  %3243 = vst.msk [vmem:[#allocation3 + $0x18] sm:$0xff] %vm3238_vm4, %v10278_v62 }
 0x2b7   : > { %6908 = vmatmul.mubr.msk.f32.gmra.mrb[8].mxu0 %vm306_vm0, %v8744_v1  ;;  %3246 = vst.msk [vmem:[#allocation3 + $0x30] sm:$0xff] %vm3238_vm4, %v10278_v62  ;;  %3247 = vst.msk [vmem:[#allocation3 + $0x38] sm:$0xff] %vm3238_vm4, %v10278_v62 }
 0x2b8   : > { %6910 = vmatprep.mubr.msk.f32.mxu0 %vm306_vm0, %v8746_v2  ;;  %3248 = vst.msk [vmem:[#allocation3 + $0x40] sm:$0x3] %vm3241_vm5, %v10278_v62  ;;  %3251 = vst.msk [vmem:[#allocation3 + $0x58] sm:$0x3] %vm3241_vm5, %v10278_v62 }
 0x2b9   : > { %3249 = vst.msk [vmem:[#allocation3 + $0x48] sm:$0xff] %vm3238_vm4, %v10278_v62  ;;  %3250 = vst.msk [vmem:[#allocation3 + $0x50] sm:$0xff] %vm3238_vm4, %v10278_v62 }
 0x2ba   : > { %3252 = vst.msk [vmem:[#allocation3 + $0x60] sm:$0xff] %vm3238_vm4, %v10278_v62  ;;  %3253 = vst.msk [vmem:[#allocation3 + $0x68] sm:$0xff] %vm3238_vm4, %v10278_v62 }
 0x2bb   : > { %6911 = vmatmul.mubr.msk.f32.gmra.mrb[10].mxu0 %vm306_vm0, %v8752_v3  ;;  %3254 = vst.msk [vmem:[#allocation3 + $0x70] sm:$0x3] %vm3241_vm5, %v10278_v62  ;;  %3257 = vst.msk [vmem:[#allocation3 + $0x88] sm:$0x3] %vm3241_vm5, %v10278_v62 }
 0x2bc   : > { %6913 = vmatprep.mubr.msk.f32.mxu0 %vm306_vm0, %v8754_v4  ;;  %3255 = vst.msk [vmem:[#allocation3 + $0x78] sm:$0xff] %vm3238_vm4, %v10278_v62  ;;  %3256 = vst.msk [vmem:[#allocation3 + $0x80] sm:$0xff] %vm3238_vm4, %v10278_v62 }
 0x2bd   : > { %3258 = vst.msk [vmem:[#allocation3 + $0x90] sm:$0xff] %vm3238_vm4, %v10278_v62  ;;  %3259 = vst.msk [vmem:[#allocation3 + $0x98] sm:$0xff] %vm3238_vm4, %v10278_v62 }
 0x2be   : > { %3260 = vst.msk [vmem:[#allocation3 + $0xa0] sm:$0x3] %vm3241_vm5, %v10278_v62  ;;  %3263 = vst.msk [vmem:[#allocation3 + $0xb8] sm:$0x3] %vm3241_vm5, %v10278_v62 }
 0x2bf   : > { %6914 = vmatmul.mubr.msk.f32.gmra.mrb[12].mxu0 %vm306_vm0, %v8760_v5  ;;  %3261 = vst.msk [vmem:[#allocation3 + $0xa8] sm:$0xff] %vm3238_vm4, %v10278_v62  ;;  %3262 = vst.msk [vmem:[#allocation3 + $0xb0] sm:$0xff] %vm3238_vm4, %v10278_v62 }
 0x2c0   : > { %6916 = vmatprep.mubr.msk.f32.mxu0 %vm306_vm0, %v8762_v6  ;;  %3264 = vst.msk [vmem:[#allocation3 + $0xc0] sm:$0xff] %vm3238_vm4, %v10278_v62  ;;  %3265 = vst.msk [vmem:[#allocation3 + $0xc8] sm:$0xff] %vm3238_vm4, %v10278_v62 }
 0x2c1   : > { %3266 = vst.msk [vmem:[#allocation3 + $0xd0] sm:$0x3] %vm3241_vm5, %v10278_v62  ;;  %3269 = vst.msk [vmem:[#allocation3 + $0xe8] sm:$0x3] %vm3241_vm5, %v10278_v62 }
 0x2c2   : > { %3267 = vst.msk [vmem:[#allocation3 + $0xd8] sm:$0xff] %vm3238_vm4, %v10278_v62  ;;  %3268 = vst.msk [vmem:[#allocation3 + $0xe0] sm:$0xff] %vm3238_vm4, %v10278_v62 }
 0x2c3   : > { %6917 = vmatmul.mubr.msk.f32.gmra.mrb[14].mxu0 %vm306_vm0, %v8768_v7  ;;  %vm9420_vm5 = vmand %vm3171_vm13, %vm3181_vm1 }
 0x2c4   : > { %6919 = vmatprep.mubr.msk.f32.mxu0 %vm306_vm0, %v9094_v37 }
 0x2c7   : > { %6920 = vmatmul.mubr.msk.f32.gmra.mrb[16].mxu0 %vm306_vm0, %v10277_v55 }
 0x2c8   : > { %6922 = vmatprep.mubr.msk.f32.mxu0 %vm306_vm0, %v2548_v53 }
 0x2cb   : > { %6923 = vmatmul.mubr.msk.f32.gmra.mrb[18].mxu0 %vm306_vm0, %v2549_v56 }
 0x2cc   : > { %6933 = vmatprep.mubr.msk.f32.mxu0 %vm306_vm0, %v8878_v43  ;;  %v5974_v43 = vld [vmem:[%s10254_s4 + $0x70] sm:$0xff] }
 0x2cf   : > { %6934 = vmatmul.mubr.msk.f32.vlgmr.msra.gmra.mrb[0].mxu0 %vm306_vm0, %v8884_v45  ;;  %v5975_v45 = vld [vmem:[%s10254_s4 + $0x78] sm:$0xff] }
 0x2d0   : > { %v7407_v46 = vpack.c.bf16 %v5975_v45, %v5974_v43 }
 0x2d2   : > { %7408 = vmatprep.subr.bf16.mxu1 %v7407_v46 }
 0x2d3   : > { %7410 = vmatpush3.bf16.msra.mxu1 %v7407_v46  ;;  %v3164_v46 = vadd.s32 6, %v9375_v51 }
 0x2d4   : > { %7412 = vmatprep.subr.bf16.mxu1 %v9370_v50 }
 0x2d5   : > { %vm3174_vm13 = vcmp.ge.s32.totalorder %v3164_v46, 0  ;;  %vm3184_vm1 = vcmp.lt.s32.totalorder %v3164_v46, 16 }
 0x2e5   : > { %v9244_v57 = vpop.f32.mrb[0].mxu1 }
 0x2e6   : > { %v9246_v59 = vpop.f32.mrb[1].mxu1 }
 0x2e9   : > { %v9248_v60 = vpop.f32.mrb[2].mxu1 }
 0x2ea   : > { %v9250_v61 = vpop.f32.mrb[3].mxu1 }
 0x2ed   : > { %v9312_v63 = vpop.f32.mrb[4].mxu1 }
 0x2ee   : > { %v9314_v1 = vpop.f32.mrb[5].mxu1 }
 0x2f1   : > { %v9316_v2 = vpop.f32.mrb[6].mxu1 }
 0x2f2   : > { %v9318_v3 = vpop.f32.mrb[7].mxu1 }
 0x2f5   : > { %v9320_v4 = vpop.f32.mrb[8].mxu1 }
 0x2f6   : > { %v9322_v5 = vpop.f32.mrb[9].mxu1 }
 0x2f9   : > { %v9324_v6 = vpop.f32.mrb[10].mxu1 }
 0x2fa   : > { %v9326_v7 = vpop.f32.mrb[11].mxu1 }
 0x2fd   : > { %v9328_v20 = vpop.f32.mrb[12].mxu1 }
 0x2fe   : > { %v9330_v21 = vpop.f32.mrb[13].mxu1 }
 0x305   : > { %v9338_v25 = vpop.f32.mrb[14].mxu1 }
 0x306   : > { %v9340_v26 = vpop.f32.mrb[15].mxu1 }
 0x309   : > { %v9342_v27 = vpop.f32.mrb[16].mxu1 }
 0x30a   : > { %v9344_v28 = vpop.f32.mrb[17].mxu1 }
 0x37e   : > { %v6900_v8 = vpop.f32.mrb[2].mxu0 }
 0x37f   : > { %v7543_v10 = vadd.f32 %v9244_v57, %v6900_v8  ;;  %v2691_v11 = vpop.f32.mrb[3].mxu0 }
 0x380   : > { %v7544_v14 = vadd.f32 %v9246_v59, %v2691_v11 }
 0x381   : > { %v3080_v15 = vadd.f32 %v7543_v10, %v9381_v9 }
 0x382   : > { %v3079_v40 = vadd.f32 %v7544_v14, %v9381_v9  ;;  %v6903_v18 = vpop.f32.mrb[4].mxu0 }
 0x383   : > { %vm3100_vm8 = vcmp.gt.f32.partialorder %v3080_v15, 0.0  ;;  %v3120_v35 = vmul.f32 0.1, %v3080_v15  ;;  %v7545_v52 = vadd.f32 %v9248_v60, %v6903_v18  ;;  %v2701_v39 = vpop.f32.mrb[5].mxu0 }
 0x384   : > { %vm3099_vm11 = vcmp.gt.f32.partialorder %v3079_v40, 0.0  ;;  %v3119_v37 = vmul.f32 0.1, %v3079_v40  ;;  %v7546_v12 = vadd.f32 %v9250_v61, %v2701_v39 }
 0x385   : > { %v3140_v16 = vsel %vm3100_vm8, %v3080_v15, %v3120_v35  ;;  %v3082_v41 = vadd.f32 %v7545_v52, %v9381_v9 }
 0x386   : > { %v3221_v36 = vsel %vm9389_vm9, %v3140_v16, 0.0  ;;  %v3139_v0 = vsel %vm3099_vm11, %v3079_v40, %v3119_v37  ;;  %v3081_v58 = vadd.f32 %v7546_v12, %v9381_v9  ;;  %v6906_v38 = vpop.f32.mrb[6].mxu0 }
 0x387   : > { %3273 = vst.msk [vmem:[#allocation3 + $0x21] sm:$0xff] %vm3238_vm4, %v3221_v36  ;;  %v3220_v17 = vsel %vm9389_vm9, %v3139_v0, 0.0  ;;  %vm3102_vm14 = vcmp.gt.f32.partialorder %v3082_v41, 0.0  ;;  %v3122_v19 = vmul.f32 0.1, %v3082_v41  ;;  %v7547_v55 = vadd.f32 %v9312_v63, %v6906_v38  ;;  %v2711_v56 = vpop.f32.mrb[7].mxu0 }
 0x388   : > { %3272 = vst.msk [vmem:[#allocation3 + $0x19] sm:$0xff] %vm3238_vm4, %v3220_v17  ;;  %vm3101_vm0 = vcmp.gt.f32.partialorder %v3081_v58, 0.0  ;;  %v3121_v57 = vmul.f32 0.1, %v3081_v58  ;;  %v7548_v59 = vadd.f32 %v9314_v1, %v2711_v56  ;;  %v3163_v63 = vadd.s32 5, %v9375_v51 }
 0x389   : > { %v3142_v60 = vsel %vm3102_vm14, %v3082_v41, %v3122_v19  ;;  %v3084_v61 = vadd.f32 %v7547_v55, %v9381_v9 }
 0x38a   : > { %v3223_v62 = vsel %vm9404_vm15, %v3142_v60, 0.0  ;;  %v3141_v22 = vsel %vm3101_vm0, %v3081_v58, %v3121_v57  ;;  %v3083_v23 = vadd.f32 %v7548_v59, %v9381_v9  ;;  %v6909_v24 = vpop.f32.mrb[8].mxu0  ;;  %vm3173_vm8 = vcmp.ge.s32.totalorder %v3163_v63, 0 }
 0x38b   : > { %3275 = vst.msk [vmem:[#allocation3 + $0x39] sm:$0xff] %vm3238_vm4, %v3223_v62  ;;  %v3222_v29 = vsel %vm9404_vm15, %v3141_v22, 0.0  ;;  %vm3104_vm3 = vcmp.gt.f32.partialorder %v3084_v61, 0.0  ;;  %v3124_v1 = vmul.f32 0.1, %v3084_v61  ;;  %v7549_v31 = vadd.f32 %v9316_v2, %v6909_v24  ;;  %v2721_v32 = vpop.f32.mrb[9].mxu0 }
 0x38c   : > { %3274 = vst.msk [vmem:[#allocation3 + $0x31] sm:$0xff] %vm3238_vm4, %v3222_v29  ;;  %vm3103_vm6 = vcmp.gt.f32.partialorder %v3083_v23, 0.0  ;;  %v3123_v33 = vmul.f32 0.1, %v3083_v23  ;;  %v7550_v42 = vadd.f32 %v9318_v3, %v2721_v32  ;;  %vm3183_vm12 = vcmp.lt.s32.totalorder %v3163_v63, 16 }
 0x38d   : > { %v3144_v43 = vsel %vm3104_vm3, %v3084_v61, %v3124_v1  ;;  %v3086_v45 = vadd.f32 %v7549_v31, %v9381_v9  ;;  %vm9452_vm15 = vmand %vm3173_vm8, %vm3183_vm12  ;;  %v3166_v58 = vadd.s32 8, %v9375_v51 }
 0x38e   : > { %v3225_v47 = vsel %vm9420_vm5, %v3144_v43, 0.0  ;;  %v3143_v49 = vsel %vm3103_vm6, %v3083_v23, %v3123_v33  ;;  %v3085_v54 = vadd.f32 %v7550_v42, %v9381_v9  ;;  %v6912_v2 = vpop.f32.mrb[10].mxu0 }
 0x38f   : > { %3277 = vst.msk [vmem:[#allocation3 + $0x51] sm:$0xff] %vm3238_vm4, %v3225_v47  ;;  %v3224_v8 = vsel %vm9420_vm5, %v3143_v49, 0.0  ;;  %vm3106_vm9 = vcmp.gt.f32.partialorder %v3086_v45, 0.0  ;;  %v3126_v3 = vmul.f32 0.1, %v3086_v45  ;;  %v7551_v11 = vadd.f32 %v9320_v4, %v6912_v2  ;;  %v2731_v13 = vpop.f32.mrb[11].mxu0  ;;  %vm9468_vm5 = vmand %vm3174_vm13, %vm3184_vm1 }
 0x390   : > { %3276 = vst.msk [vmem:[#allocation3 + $0x49] sm:$0xff] %vm3238_vm4, %v3224_v8  ;;  %vm3105_vm11 = vcmp.gt.f32.partialorder %v3085_v54, 0.0  ;;  %v3125_v14 = vmul.f32 0.1, %v3085_v54  ;;  %v7552_v15 = vadd.f32 %v9322_v5, %v2731_v13  ;;  %v3165_v4 = vadd.s32 7, %v9375_v51 }
 0x391   : > { %v3146_v40 = vsel %vm3106_vm9, %v3086_v45, %v3126_v3  ;;  %v3088_v18 = vadd.f32 %v7551_v11, %v9381_v9  ;;  %vm3176_vm8 = vcmp.ge.s32.totalorder %v3166_v58, 0  ;;  %vm3186_vm12 = vcmp.lt.s32.totalorder %v3166_v58, 16  ;;  %v3309_v58 = vld [vmem:[%s10254_s4 + $0x18] sm:$0xff] }
 0x392   : > { %v3227_v34 = vsel %vm9436_vm10, %v3146_v40, 0.0  ;;  %v3145_v35 = vsel %vm3105_vm11, %v3085_v54, %v3125_v14  ;;  %v3087_v48 = vadd.f32 %v7552_v15, %v9381_v9  ;;  %v6915_v52 = vpop.f32.mrb[12].mxu0  ;;  %vm3175_vm2 = vcmp.ge.s32.totalorder %v3165_v4, 0 }
 0x393   : > { %3279 = vst.msk [vmem:[#allocation3 + $0x69] sm:$0xff] %vm3238_vm4, %v3227_v34  ;;  %v3226_v39 = vsel %vm9436_vm10, %v3145_v35, 0.0  ;;  %vm3108_vm14 = vcmp.gt.f32.partialorder %v3088_v18, 0.0  ;;  %v3128_v5 = vmul.f32 0.1, %v3088_v18  ;;  %v7553_v12 = vadd.f32 %v9324_v6, %v6915_v52  ;;  %v2741_v16 = vpop.f32.mrb[13].mxu0 }
 0x394   : > { %3278 = vst.msk [vmem:[#allocation3 + $0x61] sm:$0xff] %vm3238_vm4, %v3226_v39  ;;  %vm3107_vm0 = vcmp.gt.f32.partialorder %v3087_v48, 0.0  ;;  %v3127_v41 = vmul.f32 0.1, %v3087_v48  ;;  %v7554_v44 = vadd.f32 %v9326_v7, %v2741_v16  ;;  %vm3185_vm7 = vcmp.lt.s32.totalorder %v3165_v4, 16 }
 0x395   : > { %v3148_v36 = vsel %vm3108_vm14, %v3088_v18, %v3128_v5  ;;  %v3090_v0 = vadd.f32 %v7553_v12, %v9381_v9  ;;  %vm9484_vm10 = vmand %vm3175_vm2, %vm3185_vm7  ;;  %vm3168_vm2 = vcmp.ge.s32.totalorder %v9375_v51, 0 }
 0x396   : > { %v3229_v38 = vsel %vm9452_vm15, %v3148_v36, 0.0  ;;  %v3147_v17 = vsel %vm3107_vm0, %v3087_v48, %v3127_v41  ;;  %v3089_v19 = vadd.f32 %v7554_v44, %v9381_v9  ;;  %v6918_v6 = vpop.f32.mrb[14].mxu0 }
 0x397   : > { %3281 = vst.msk [vmem:[#allocation3 + $0x81] sm:$0xff] %vm3238_vm4, %v3229_v38  ;;  %v3228_v53 = vsel %vm9452_vm15, %v3147_v17, 0.0  ;;  %vm3110_vm3 = vcmp.gt.f32.partialorder %v3090_v0, 0.0  ;;  %v3130_v7 = vmul.f32 0.1, %v3090_v0  ;;  %v7555_v56 = vadd.f32 %v9328_v20, %v6918_v6  ;;  %v2751_v57 = vpop.f32.mrb[15].mxu0  ;;  %vm9499_vm15 = vmand %vm3176_vm8, %vm3186_vm12 }
 0x398   : > { %3280 = vst.msk [vmem:[#allocation3 + $0x79] sm:$0xff] %vm3238_vm4, %v3228_v53  ;;  %vm3109_vm6 = vcmp.gt.f32.partialorder %v3089_v19, 0.0  ;;  %v3129_v59 = vmul.f32 0.1, %v3089_v19  ;;  %v7556_v60 = vadd.f32 %v9330_v21, %v2751_v57  ;;  %v3167_v20 = vadd.s32 9, %v9375_v51  ;;  %v3310_v6 = vld [vmem:[%s10254_s4 + $0x20] sm:$0xff] }
 0x399   : > { %v3150_v61 = vsel %vm3110_vm3, %v3090_v0, %v3130_v7  ;;  %v3092_v62 = vadd.f32 %v7555_v56, %v9381_v9  ;;  %vm3178_vm3 = vcmp.lt.s32.totalorder %v9375_v51, 16  ;;  %v3308_v0 = vld [vmem:[%s10254_s4 + $0x10] sm:$0xff]  ;;  %v3311_v53 = vld [vmem:[%s10254_s4 + $0x28] sm:$0xff]  ;;  %v9549_v7 = vld [vmem:[#allocation3 + $0x19] sm:$0xff] }
 0x39a   : > { %v3231_v22 = vsel %vm9468_vm5, %v3150_v61, 0.0  ;;  %v3149_v23 = vsel %vm3109_vm6, %v3089_v19, %v3129_v59  ;;  %v3091_v24 = vadd.f32 %v7556_v60, %v9381_v9  ;;  %v6921_v63 = vpop.f32.mrb[16].mxu0  ;;  %vm3177_vm13 = vcmp.ge.s32.totalorder %v3167_v20, 0  ;;  %v9554_v56 = vld [vmem:[#allocation3 + $0x21] sm:$0xff]  ;;  %v3312_v57 = vld [vmem:[%s10254_s4 + $0x30] sm:$0xff]  ;;  %v3313_v59 = vld [vmem:[%s10254_s4 + $0x38] sm:$0xff] }
 0x39b   : > { %3283 = vst.msk [vmem:[#allocation3 + $0x99] sm:$0xff] %vm3238_vm4, %v3231_v22  ;;  %v3230_v29 = vsel %vm9468_vm5, %v3149_v23, 0.0  ;;  %vm3112_vm9 = vcmp.gt.f32.partialorder %v3092_v62, 0.0  ;;  %v3132_v21 = vmul.f32 0.1, %v3092_v62  ;;  %v7557_v30 = vadd.f32 %v9338_v25, %v6921_v63  ;;  %v2761_v31 = vpop.f32.mrb[17].mxu0 }
 0x39c   : > { %3282 = vst.msk [vmem:[#allocation3 + $0x91] sm:$0xff] %vm3238_vm4, %v3230_v29  ;;  %vm3111_vm11 = vcmp.gt.f32.partialorder %v3091_v24, 0.0  ;;  %v3131_v32 = vmul.f32 0.1, %v3091_v24  ;;  %v7558_v33 = vadd.f32 %v9340_v26, %v2761_v31  ;;  %vm3187_vm1 = vcmp.lt.s32.totalorder %v3167_v20, 16  ;;  %v9564_v60 = vld [vmem:[#allocation3 + $0x31] sm:$0xff] }
 0x39d   : > { %v3152_v42 = vsel %vm3112_vm9, %v3092_v62, %v3132_v21  ;;  %v3094_v43 = vadd.f32 %v7557_v30, %v9381_v9  ;;  %vm9516_vm6 = vmand %vm3177_vm13, %vm3187_vm1  ;;  %v7415_v17 = vpack.c.bf16 %v3309_v58, %v3308_v0  ;;  %v7419_v55 = vpack.c.bf16 %v3311_v53, %v3310_v6  ;;  %v9568_v61 = vld [vmem:[#allocation3 + $0x39] sm:$0xff]  ;;  %v6009_v22 = vld [vmem:[%s10254_s4 + $0x88] sm:$0xff] }
 0x39e   : > { %v3233_v45 = vsel %vm9484_vm10, %v3152_v42, 0.0  ;;  %v3151_v46 = vsel %vm3111_vm11, %v3091_v24, %v3131_v32  ;;  %v3093_v47 = vadd.f32 %v7558_v33, %v9381_v9  ;;  %v6924_v49 = vpop.f32.mrb[18].mxu0  ;;  %vm3188_vm9 = vmand %vm3168_vm2, %vm3178_vm3  ;;  %v6008_v62 = vld [vmem:[%s10254_s4 + $0x80] sm:$0xff]  ;;  %v9578_v23 = vld [vmem:[#allocation3 + $0x49] sm:$0xff] }
 0x39f   : > { %3285 = vst.msk [vmem:[#allocation3 + $0xb1] sm:$0xff] %vm3238_vm4, %v3233_v45  ;;  %v3232_v25 = vsel %vm9484_vm10, %v3151_v46, 0.0  ;;  %vm3114_vm14 = vcmp.gt.f32.partialorder %v3094_v43, 0.0  ;;  %v3134_v54 = vmul.f32 0.1, %v3094_v43  ;;  %v7559_v2 = vadd.f32 %v9342_v27, %v6924_v49  ;;  %v2771_v8 = vpop.f32.mrb[19].mxu0 }
 0x3a0   : > { %3284 = vst.msk [vmem:[#allocation3 + $0xa9] sm:$0xff] %vm3238_vm4, %v3232_v25  ;;  %vm3113_vm0 = vcmp.gt.f32.partialorder %v3093_v47, 0.0  ;;  %v3133_v3 = vmul.f32 0.1, %v3093_v47  ;;  %v7560_v10 = vadd.f32 %v9344_v28, %v2771_v8  ;;  %v7427_v24 = vpack.c.bf16 %v6009_v22, %v6008_v62  ;;  %v9582_v63 = vld [vmem:[#allocation3 + $0x51] sm:$0xff]  ;;  %v9586_v20 = vld [vmem:[#allocation3 + $0x61] sm:$0xff] }
 0x3a1   : > { %v3154_v11 = vsel %vm3114_vm14, %v3094_v43, %v3134_v54  ;;  %v3096_v13 = vadd.f32 %v7559_v2, %v9381_v9  ;;  %v9590_v29 = vld [vmem:[#allocation3 + $0x69] sm:$0xff]  ;;  %v9594_v21 = vld [vmem:[#allocation3 + $0x79] sm:$0xff]  ;;  %v9598_v1 = vld [vmem:[#allocation3 + $0x81] sm:$0xff] }
 0x3a2   : > { %v3235_v14 = vsel %vm9499_vm15, %v3154_v11, 0.0  ;;  %v3153_v15 = vsel %vm3113_vm0, %v3093_v47, %v3133_v3  ;;  %v3095_v40 = vadd.f32 %v7560_v10, %v9381_v9  ;;  %v6935_v27 = vpop.f32.mrb[0].mxu0  ;;  %v9606_v31 = vld [vmem:[#allocation3 + $0x99] sm:$0xff]  ;;  %v6010_v42 = vld [vmem:[%s10254_s4 + $0x90] sm:$0xff]  ;;  %v6013_v25 = vld [vmem:[%s10254_s4 + $0xa8] sm:$0xff] }
 0x3a3   : > { %3287 = vst.msk [vmem:[#allocation3 + $0xc9] sm:$0xff] %vm3238_vm4, %v3235_v14  ;;  %v3234_v18 = vsel %vm9499_vm15, %v3153_v15, 0.0  ;;  %vm3116_vm5 = vcmp.gt.f32.partialorder %v3096_v13, 0.0  ;;  %v3136_v28 = vmul.f32 0.1, %v3096_v13  ;;  %v3078_v35 = vadd.f32 %v6935_v27, %v9381_v9  ;;  %v2951_v48 = vpop.f32.mrb[1].mxu0 }
 0x3a4   : > { %3286 = vst.msk [vmem:[#allocation3 + $0xc1] sm:$0xff] %vm3238_vm4, %v3234_v18  ;;  %vm3115_vm7 = vcmp.gt.f32.partialorder %v3095_v40, 0.0  ;;  %v3135_v52 = vmul.f32 0.1, %v3095_v40  ;;  %v3077_v4 = vadd.f32 %v9381_v9, %v2951_v48  ;;  %v9602_v30 = vld [vmem:[#allocation3 + $0x91] sm:$0xff]  ;;  %v6012_v49 = vld [vmem:[%s10254_s4 + $0xa0] sm:$0xff] }
 0x3a5   : > { %v3156_v39 = vsel %vm3116_vm5, %v3096_v13, %v3136_v28  ;;  %vm3098_vm8 = vcmp.gt.f32.partialorder %v3078_v35, 0.0  ;;  %v3118_v5 = vmul.f32 0.1, %v3078_v35  ;;  %v6011_v43 = vld [vmem:[%s10254_s4 + $0x98] sm:$0xff]  ;;  %v7435_v26 = vpack.c.bf16 %v6013_v25, %v6012_v49  ;;  %v9636_v2 = vld [vmem:[#allocation3 + $0x20] sm:$0xff]  ;;  %v6014_v8 = vld [vmem:[%s10254_s4 + $0xb0] sm:$0xff] }
 0x3a6   : > { %v3237_v37 = vsel %vm9516_vm6, %v3156_v39, 0.0  ;;  %v3155_v12 = vsel %vm3115_vm7, %v3095_v40, %v3135_v52  ;;  %vm3097_vm10 = vcmp.gt.f32.partialorder %v3077_v4, 0.0  ;;  %v3117_v16 = vmul.f32 0.1, %v3077_v4  ;;  %v9614_v33 = vld [vmem:[#allocation3 + $0xb1] sm:$0xff]  ;;  %v6032_v14 = vld [vmem:[%s10254_s4 + $0xc0] sm:$0xff] }
 0x3a7   : > { %3289 = vst.msk [vmem:[#allocation3 + $0xe1] sm:$0xff] %vm3238_vm4, %v3237_v37  ;;  %v3236_v41 = vsel %vm9516_vm6, %v3155_v12, 0.0  ;;  %v3138_v9 = vsel %vm3098_vm8, %v3078_v35, %v3118_v5  ;;  %v9610_v32 = vld [vmem:[#allocation3 + $0xa9] sm:$0xff]  ;;  %v7431_v46 = vpack.c.bf16 %v6011_v43, %v6010_v42  ;;  %v9632_v54 = vld [vmem:[#allocation3 + $0x18] sm:$0xff]  ;;  %v9668_v28 = vld [vmem:[#allocation3 + $0x60] sm:$0xff] }
 0x3a8   : > { %3288 = vst.msk [vmem:[#allocation3 + $0xd9] sm:$0xff] %vm3238_vm4, %v3236_v41  ;;  %v3219_v44 = vsel %vm3188_vm9, %v3138_v9, 0.0  ;;  %v3137_v36 = vsel %vm3097_vm10, %v3077_v4, %v3117_v16  ;;  %v6015_v3 = vld [vmem:[%s10254_s4 + $0xb8] sm:$0xff]  ;;  %v9646_v10 = vld [vmem:[#allocation3 + $0x30] sm:$0xff]  ;;  %v6033_v15 = vld [vmem:[%s10254_s4 + $0xc8] sm:$0xff] }
 0x3a9   : > { %3271 = vst.msk [vmem:[#allocation3 + $0x9] sm:$0xff] %vm3238_vm4, %v3219_v44  ;;  %v3218_v51 = vsel %vm3188_vm9, %v3137_v36, 0.0  ;;  %v7439_v11 = vpack.c.bf16 %v6015_v3, %v6014_v8  ;;  %v9650_v13 = vld [vmem:[#allocation3 + $0x38] sm:$0xff]  ;;  %v9660_v40 = vld [vmem:[#allocation3 + $0x48] sm:$0xff]  ;;  %v7443_v27 = vpack.c.bf16 %v6033_v15, %v6032_v14  ;;  %v9664_v18 = vld [vmem:[#allocation3 + $0x50] sm:$0xff] }
 0x3aa   : > { %3270 = vst.msk [vmem:[#allocation3 + $0x1] sm:$0xff] %vm3238_vm4, %v3218_v51  ;;  %v9672_v34 = vld [vmem:[#allocation3 + $0x68] sm:$0xff]  ;;  %v9676_v35 = vld [vmem:[#allocation3 + $0x78] sm:$0xff]  ;;  %v9680_v48 = vld [vmem:[#allocation3 + $0x80] sm:$0xff] }
 0x3ab   : > { %v9684_v52 = vld [vmem:[#allocation3 + $0x90] sm:$0xff]  ;;  %v9688_v4 = vld [vmem:[#allocation3 + $0x98] sm:$0xff]  ;;  %v9692_v39 = vld [vmem:[#allocation3 + $0xa8] sm:$0xff] }
 0x3ac   : > { %v9696_v5 = vld [vmem:[#allocation3 + $0xb0] sm:$0xff]  ;;  %v6035_v12 = vld [vmem:[%s10254_s4 + $0xd8] sm:$0xff]  ;;  %v6036_v44 = vld [vmem:[%s10254_s4 + $0xe0] sm:$0xff] }
 0x3ad   : > { %v6034_v37 = vld [vmem:[%s10254_s4 + $0xd0] sm:$0xff]  ;;  %v6037_v36 = vld [vmem:[%s10254_s4 + $0xe8] sm:$0xff]  ;;  %v9714_v51 = vld [vmem:[#allocation3 + $0x1a] sm:$0xff] }
 0x3ae   : > { %v7447_v41 = vpack.c.bf16 %v6035_v12, %v6034_v37  ;;  %v7451_v0 = vpack.c.bf16 %v6037_v36, %v6036_v44  ;;  %v9718_v58 = vld [vmem:[#allocation3 + $0x22] sm:$0xff]  ;;  %v9732_v53 = vld [vmem:[#allocation3 + $0x3a] sm:$0xff]  ;;  %v9746_v62 = vld [vmem:[#allocation3 + $0x52] sm:$0xff] }
 0x3af   : > { %v9750_v22 = vld [vmem:[#allocation3 + $0x62] sm:$0xff]  ;;  %v9758_v42 = vld [vmem:[#allocation3 + $0x7a] sm:$0xff]  ;;  %v9778_v49 = vld [vmem:[#allocation3 + $0xb2] sm:$0xff] }
 0x3b0   : > { %v3315_v19 = vld [vmem:[#allocation3 + $0x9] sm:$0xff]  ;;  %v6060_v3 = vld [vmem:[%s10254_s4 + $0x120] sm:$0xff]  ;;  %v6063_v15 = vld [vmem:[%s10254_s4 + $0x138] sm:$0xff] }
 0x3b1   : > { %v3314_v38 = vld [vmem:[#allocation3 + $0x1] sm:$0xff]  ;;  %v3726_v9 = vld [vmem:[#allocation3 + $0xa] sm:$0xff]  ;;  %v6083_v44 = vld [vmem:[%s10254_s4 + $0x158] sm:$0xff] }
 0x3b2   : > { %6979 = vmatprep.mubr.msk.f32.mxu1 %vm3238_vm4, %v3314_v38  ;;  %v3290_v45 = vld [vmem:[#allocation3] sm:$0xff]  ;;  %v3291_v47 = vld [vmem:[#allocation3 + $0x8] sm:$0xff]  ;;  %v6038_v38 = vld [vmem:[%s10254_s4 + $0xf0] sm:$0xff] }
 0x3b3   : > { %6980 = vmatmul.mubr.msk.f32.vlgmr.msra.gmra.mrb[18].mxu1 %vm3238_vm4, %v3315_v19  ;;  %v3725_v16 = vld [vmem:[#allocation3 + $0x2] sm:$0xff]  ;;  %v9728_v19 = vld [vmem:[#allocation3 + $0x32] sm:$0xff] }
 0x3b4   : > { %6982 = vmatprep.mubr.msk.f32.mxu1 %vm3238_vm4, %v9549_v7  ;;  %7414 = vmatpush3.bf16.msra.mxu1 %v9370_v50  ;;  %v7423_v50 = vpack.c.bf16 %v3313_v59, %v3312_v57  ;;  %v6057_v57 = vld [vmem:[%s10254_s4 + $0x108] sm:$0xff]  ;;  %v6058_v25 = vld [vmem:[%s10254_s4 + $0x110] sm:$0xff] }
 0x3b5   : > { %7416 = vmatprep.subr.bf16.mxu1 %v7415_v17  ;;  %v9742_v59 = vld [vmem:[#allocation3 + $0x4a] sm:$0xff]  ;;  %v9762_v43 = vld [vmem:[#allocation3 + $0x82] sm:$0xff] }
 0x3b6   : > { %v6081_v37 = vld [vmem:[%s10254_s4 + $0x148] sm:$0xff] }
 0x3b7   : > { %6983 = vmatmul.mubr.msk.f32.gmra.mrb[20].mxu1 %vm3238_vm4, %v9554_v56 }
 0x3b8   : > { %6985 = vmatprep.mubr.msk.f32.mxu1 %vm3238_vm4, %v9564_v60  ;;  %7418 = vmatpush3.bf16.msra.mxu1 %v7415_v17  ;;  %v6039_v17 = vld [vmem:[%s10254_s4 + $0xf8] sm:$0xff] }
 0x3b9   : > { %7420 = vmatprep.subr.bf16.mxu1 %v7419_v55  ;;  %v7455_v6 = vpack.c.bf16 %v6039_v17, %v6038_v38  ;;  %v6085_v38 = vld [vmem:[%s10254_s4 + $0x168] sm:$0xff] }
 0x3bb   : > { %6986 = vmatmul.mubr.msk.f32.gmra.mrb[22].mxu1 %vm3238_vm4, %v9568_v61 }
 0x3bc   : > { %6988 = vmatprep.mubr.msk.f32.mxu1 %vm3238_vm4, %v9578_v23  ;;  %7422 = vmatpush3.bf16.msra.mxu1 %v7419_v55  ;;  %v6056_v55 = vld [vmem:[%s10254_s4 + $0x100] sm:$0xff] }
 0x3bd   : > { %7424 = vmatprep.subr.bf16.mxu1 %v7423_v50 }
 0x3bf   : > { %6989 = vmatmul.mubr.msk.f32.gmra.mrb[24].mxu1 %vm3238_vm4, %v9582_v63 }
 0x3c0   : > { %6991 = vmatprep.mubr.msk.f32.mxu1 %vm3238_vm4, %v9586_v20  ;;  %7426 = vmatpush3.bf16.msra.mxu1 %v7423_v50  ;;  %v7459_v50 = vpack.c.bf16 %v6057_v57, %v6056_v55  ;;  %v6104_v55 = vld [vmem:[%s10254_s4 + $0x180] sm:$0xff]  ;;  %v6105_v57 = vld [vmem:[%s10254_s4 + $0x188] sm:$0xff] }
 0x3c1   : > { %7428 = vmatprep.subr.bf16.mxu1 %v7427_v24 }
 0x3c3   : > { %6992 = vmatmul.mubr.msk.f32.gmra.mrb[26].mxu1 %vm3238_vm4, %v9590_v29 }
 0x3c4   : > { %6994 = vmatprep.mubr.msk.f32.mxu1 %vm3238_vm4, %v9594_v21 }
 0x3c7   : > { %6995 = vmatmul.mubr.msk.f32.gmra.mrb[28].mxu1 %vm3238_vm4, %v9598_v1 }
 0x3c8   : > { %6997 = vmatprep.mubr.msk.f32.mxu1 %vm3238_vm4, %v9602_v30 }
 0x3cb   : > { %6998 = vmatmul.mubr.msk.f32.gmra.mrb[30].mxu1 %vm3238_vm4, %v9606_v31 }
 0x3cc   : > { %7000 = vmatprep.mubr.msk.f32.mxu1 %vm3238_vm4, %v9610_v32 }
 0x3cf   : > { %7001 = vmatmul.mubr.msk.f32.gmra.mrb[32].mxu1 %vm3238_vm4, %v9614_v33 }
 0x3d0   : > { %7019 = vmatprep.mubr.msk.f32.mxu1 %vm3238_vm4, %v3290_v45  ;;  %v9766_v45 = vld [vmem:[#allocation3 + $0x92] sm:$0xff] }
 0x3d3   : > { %7020 = vmatmul.mubr.msk.f32.vlgmr.msra.gmra.mrb[18].mxu1 %vm3238_vm4, %v3291_v47  ;;  %v9774_v47 = vld [vmem:[#allocation3 + $0xaa] sm:$0xff] }
 0x3d4   : > { %7022 = vmatprep.mubr.msk.f32.mxu1 %vm3238_vm4, %v9632_v54  ;;  %7430 = vmatpush3.bf16.msra.mxu1 %v7427_v24  ;;  %v9754_v24 = vld [vmem:[#allocation3 + $0x6a] sm:$0xff] }
 0x3d5   : > { %7432 = vmatprep.subr.bf16.mxu1 %v7431_v46 }
 0x3d7   : > { %7023 = vmatmul.mubr.msk.f32.gmra.mrb[20].mxu1 %vm3238_vm4, %v9636_v2 }
 0x3d8   : > { %7025 = vmatprep.mubr.msk.f32.mxu1 %vm3238_vm4, %v9646_v10  ;;  %7434 = vmatpush3.bf16.msra.mxu1 %v7431_v46  ;;  %v9770_v46 = vld [vmem:[#allocation3 + $0x9a] sm:$0xff] }
 0x3d9   : > { %7436 = vmatprep.subr.bf16.mxu1 %v7435_v26 }
 0x3db   : > { %7026 = vmatmul.mubr.msk.f32.gmra.mrb[22].mxu1 %vm3238_vm4, %v9650_v13 }
 0x3dc   : > { %7028 = vmatprep.mubr.msk.f32.mxu1 %vm3238_vm4, %v9660_v40  ;;  %7438 = vmatpush3.bf16.msra.mxu1 %v7435_v26  ;;  %v6059_v26 = vld [vmem:[%s10254_s4 + $0x118] sm:$0xff] }
 0x3dd   : > { %7440 = vmatprep.subr.bf16.mxu1 %v7439_v11  ;;  %v7463_v8 = vpack.c.bf16 %v6059_v26, %v6058_v25  ;;  %v9894_v25 = vld [vmem:[#allocation3 + $0xc1] sm:$0xff]  ;;  %v9898_v26 = vld [vmem:[#allocation3 + $0xc9] sm:$0xff] }
 0x3df   : > { %7029 = vmatmul.mubr.msk.f32.gmra.mrb[24].mxu1 %vm3238_vm4, %v9664_v18 }
 0x3e0   : > { %7031 = vmatprep.mubr.msk.f32.mxu1 %vm3238_vm4, %v9668_v28  ;;  %7442 = vmatpush3.bf16.msra.mxu1 %v7439_v11  ;;  %v6061_v11 = vld [vmem:[%s10254_s4 + $0x128] sm:$0xff] }
 0x3e1   : > { %7444 = vmatprep.subr.bf16.mxu1 %v7443_v27  ;;  %v7467_v14 = vpack.c.bf16 %v6061_v11, %v6060_v3  ;;  %v6107_v3 = vld [vmem:[%s10254_s4 + $0x198] sm:$0xff] }
 0x3e3   : > { %7032 = vmatmul.mubr.msk.f32.gmra.mrb[26].mxu1 %vm3238_vm4, %v9672_v34 }
 0x3e4   : > { %7034 = vmatprep.mubr.msk.f32.mxu1 %vm3238_vm4, %v9676_v35 }
 0x3e7   : > { %7035 = vmatmul.mubr.msk.f32.gmra.mrb[28].mxu1 %vm3238_vm4, %v9680_v48 }
 0x3e8   : > { %7037 = vmatprep.mubr.msk.f32.mxu1 %vm3238_vm4, %v9684_v52 }
 0x3eb   : > { %7038 = vmatmul.mubr.msk.f32.gmra.mrb[30].mxu1 %vm3238_vm4, %v9688_v4 }
 0x3ec   : > { %7040 = vmatprep.mubr.msk.f32.mxu1 %vm3238_vm4, %v9692_v39 }
 0x3ef   : > { %7041 = vmatmul.mubr.msk.f32.gmra.mrb[32].mxu1 %vm3238_vm4, %v9696_v5 }
 0x3f0   : > { %7059 = vmatprep.mubr.msk.f32.mxu1 %vm3238_vm4, %v3725_v16  ;;  %v9834_v16 = vld [vmem:[#allocation3 + $0xc0] sm:$0xff] }
 0x3f3   : > { %7060 = vmatmul.mubr.msk.f32.vlgmr.msra.gmra.mrb[18].mxu1 %vm3238_vm4, %v3726_v9  ;;  %v6082_v9 = vld [vmem:[%s10254_s4 + $0x150] sm:$0xff] }
 0x3f4   : > { %7062 = vmatprep.mubr.msk.f32.mxu1 %vm3238_vm4, %v9714_v51  ;;  %7446 = vmatpush3.bf16.msra.mxu1 %v7443_v27  ;;  %v6080_v27 = vld [vmem:[%s10254_s4 + $0x140] sm:$0xff]  ;;  %v7479_v36 = vpack.c.bf16 %v6083_v44, %v6082_v9  ;;  %v9958_v44 = vld [vmem:[#allocation3 + $0xca] sm:$0xff] }
 0x3f5   : > { %7448 = vmatprep.subr.bf16.mxu1 %v7447_v41  ;;  %v7475_v12 = vpack.c.bf16 %v6081_v37, %v6080_v27  ;;  %v6128_v27 = vld [vmem:[%s10254_s4 + $0x1c0] sm:$0xff]  ;;  %v6129_v37 = vld [vmem:[%s10254_s4 + $0x1c8] sm:$0xff] }
 0x3f6   : > { %v9954_v9 = vld [vmem:[#allocation3 + $0xc2] sm:$0xff] }
 0x3f7   : > { %7063 = vmatmul.mubr.msk.f32.gmra.mrb[20].mxu1 %vm3238_vm4, %v9718_v58 }
 0x3f8   : > { %7065 = vmatprep.mubr.msk.f32.mxu1 %vm3238_vm4, %v9728_v19  ;;  %7450 = vmatpush3.bf16.msra.mxu1 %v7447_v41  ;;  %v9838_v41 = vld [vmem:[#allocation3 + $0xc8] sm:$0xff] }
 0x3f9   : > { %7452 = vmatprep.subr.bf16.mxu1 %v7451_v0 }
 0x3fb   : > { %7066 = vmatmul.mubr.msk.f32.gmra.mrb[22].mxu1 %vm3238_vm4, %v9732_v53 }
 0x3fc   : > { %7068 = vmatprep.mubr.msk.f32.mxu1 %vm3238_vm4, %v9742_v59  ;;  %7454 = vmatpush3.bf16.msra.mxu1 %v7451_v0  ;;  %v6084_v0 = vld [vmem:[%s10254_s4 + $0x160] sm:$0xff] }
 0x3fd   : > { %7456 = vmatprep.subr.bf16.mxu1 %v7455_v6  ;;  %v7483_v17 = vpack.c.bf16 %v6085_v38, %v6084_v0  ;;  %v6131_v0 = vld [vmem:[%s10254_s4 + $0x1d8] sm:$0xff] }
 0x3ff   : > { %7069 = vmatmul.mubr.msk.f32.gmra.mrb[24].mxu1 %vm3238_vm4, %v9746_v62 }
 0x400   : > { %7071 = vmatprep.mubr.msk.f32.mxu1 %vm3238_vm4, %v9750_v22  ;;  %7458 = vmatpush3.bf16.msra.mxu1 %v7455_v6  ;;  %v6087_v6 = vld [vmem:[%s10254_s4 + $0x178] sm:$0xff] }
 0x401   : > { %7460 = vmatprep.subr.bf16.mxu1 %v7459_v50 }
 0x403   : > { %7072 = vmatmul.mubr.msk.f32.gmra.mrb[26].mxu1 %vm3238_vm4, %v9754_v24 }
 0x404   : > { %7074 = vmatprep.mubr.msk.f32.mxu1 %vm3238_vm4, %v9758_v42 }
 0x407   : > { %7075 = vmatmul.mubr.msk.f32.gmra.mrb[28].mxu1 %vm3238_vm4, %v9762_v43 }
 0x408   : > { %7077 = vmatprep.mubr.msk.f32.mxu1 %vm3238_vm4, %v9766_v45 }
 0x40b   : > { %7078 = vmatmul.mubr.msk.f32.gmra.mrb[30].mxu1 %vm3238_vm4, %v9770_v46 }
 0x40c   : > { %7080 = vmatprep.mubr.msk.f32.mxu1 %vm3238_vm4, %v9774_v47 }
 0x40f   : > { %7081 = vmatmul.mubr.msk.f32.gmra.mrb[32].mxu1 %vm3238_vm4, %v9778_v49 }
 0x410   : > { %7099 = vmatprep.mubr.msk.f32.mxu1 %vm3238_vm4, %v9632_v54  ;;  %v6062_v54 = vld [vmem:[%s10254_s4 + $0x130] sm:$0xff] }
 0x413   : > { %7100 = vmatmul.mubr.msk.f32.vlgmr.msra.gmra.mrb[18].mxu1 %vm3238_vm4, %v9636_v2  ;;  %v7471_v2 = vpack.c.bf16 %v6063_v15, %v6062_v54  ;;  %v6109_v54 = vld [vmem:[%s10254_s4 + $0x1a8] sm:$0xff] }
 0x414   : > { %7102 = vmatprep.mubr.msk.f32.mxu1 %vm3238_vm4, %v9646_v10  ;;  %7462 = vmatpush3.bf16.msra.mxu1 %v7459_v50  ;;  %v7491_v50 = vpack.c.bf16 %v6105_v57, %v6104_v55  ;;  %v6153_v55 = vld [vmem:[%s10254_s4 + $0x208] sm:$0xff] }
 0x415   : > { %7464 = vmatprep.subr.bf16.mxu1 %v7463_v8 }
 0x417   : > { %7103 = vmatmul.mubr.msk.f32.gmra.mrb[20].mxu1 %vm3238_vm4, %v9650_v13 }
 0x418   : > { %7105 = vmatprep.mubr.msk.f32.mxu1 %vm3238_vm4, %v9660_v40  ;;  %7466 = vmatpush3.bf16.msra.mxu1 %v7463_v8  ;;  %v6106_v8 = vld [vmem:[%s10254_s4 + $0x190] sm:$0xff] }
 0x419   : > { %7468 = vmatprep.subr.bf16.mxu1 %v7467_v14  ;;  %v7495_v11 = vpack.c.bf16 %v6107_v3, %v6106_v8 }
 0x41b   : > { %7106 = vmatmul.mubr.msk.f32.gmra.mrb[22].mxu1 %vm3238_vm4, %v9664_v18 }
 0x41c   : > { %7108 = vmatprep.mubr.msk.f32.mxu1 %vm3238_vm4, %v9668_v28  ;;  %7470 = vmatpush3.bf16.msra.mxu1 %v7467_v14  ;;  %v6108_v14 = vld [vmem:[%s10254_s4 + $0x1a0] sm:$0xff] }
 0x41d   : > { %7472 = vmatprep.subr.bf16.mxu1 %v7471_v2  ;;  %v7499_v15 = vpack.c.bf16 %v6109_v54, %v6108_v14 }
 0x41f   : > { %7109 = vmatmul.mubr.msk.f32.gmra.mrb[24].mxu1 %vm3238_vm4, %v9672_v34 }
 0x420   : > { %7111 = vmatprep.mubr.msk.f32.mxu1 %vm3238_vm4, %v9676_v35  ;;  %7474 = vmatpush3.bf16.msra.mxu1 %v7471_v2  ;;  %v6111_v2 = vld [vmem:[%s10254_s4 + $0x1b8] sm:$0xff] }
 0x421   : > { %7476 = vmatprep.subr.bf16.mxu1 %v7475_v12 }
 0x423   : > { %7112 = vmatmul.mubr.msk.f32.gmra.mrb[26].mxu1 %vm3238_vm4, %v9680_v48 }
 0x424   : > { %7114 = vmatprep.mubr.msk.f32.mxu1 %vm3238_vm4, %v9684_v52 }
 0x427   : > { %7115 = vmatmul.mubr.msk.f32.gmra.mrb[28].mxu1 %vm3238_vm4, %v9688_v4 }
 0x428   : > { %7117 = vmatprep.mubr.msk.f32.mxu1 %vm3238_vm4, %v9692_v39 }
 0x42b   : > { %7118 = vmatmul.mubr.msk.f32.gmra.mrb[30].mxu1 %vm3238_vm4, %v9696_v5 }
 0x42c   : > { %7120 = vmatprep.mubr.msk.f32.mxu1 %vm3238_vm4, %v9834_v16 }
 0x42f   : > { %7121 = vmatmul.mubr.msk.f32.gmra.mrb[32].mxu1 %vm3238_vm4, %v9838_v41 }
 0x430   : > { %7139 = vmatprep.mubr.msk.f32.mxu1 %vm3238_vm4, %v9549_v7  ;;  %v6086_v7 = vld [vmem:[%s10254_s4 + $0x170] sm:$0xff] }
 0x433   : > { %7140 = vmatmul.mubr.msk.f32.vlgmr.msra.gmra.mrb[18].mxu1 %vm3238_vm4, %v9554_v56  ;;  %v7487_v56 = vpack.c.bf16 %v6087_v6, %v6086_v7  ;;  %v6133_v7 = vld [vmem:[%s10254_s4 + $0x1e8] sm:$0xff] }
 0x434   : > { %7142 = vmatprep.mubr.msk.f32.mxu1 %vm3238_vm4, %v9564_v60  ;;  %7478 = vmatpush3.bf16.msra.mxu1 %v7475_v12  ;;  %v7507_v12 = vpack.c.bf16 %v6129_v37, %v6128_v27 }
 0x435   : > { %7480 = vmatprep.subr.bf16.mxu1 %v7479_v36 }
 0x437   : > { %7143 = vmatmul.mubr.msk.f32.gmra.mrb[20].mxu1 %vm3238_vm4, %v9568_v61 }
 0x438   : > { %7145 = vmatprep.mubr.msk.f32.mxu1 %vm3238_vm4, %v9578_v23  ;;  %7482 = vmatpush3.bf16.msra.mxu1 %v7479_v36  ;;  %v6130_v36 = vld [vmem:[%s10254_s4 + $0x1d0] sm:$0xff] }
 0x439   : > { %7484 = vmatprep.subr.bf16.mxu1 %v7483_v17  ;;  %v7511_v38 = vpack.c.bf16 %v6131_v0, %v6130_v36 }
 0x43b   : > { %7146 = vmatmul.mubr.msk.f32.gmra.mrb[22].mxu1 %vm3238_vm4, %v9582_v63 }
 0x43c   : > { %7148 = vmatprep.mubr.msk.f32.mxu1 %vm3238_vm4, %v9586_v20  ;;  %7486 = vmatpush3.bf16.msra.mxu1 %v7483_v17  ;;  %v6132_v17 = vld [vmem:[%s10254_s4 + $0x1e0] sm:$0xff] }
 0x43d   : > { %7488 = vmatprep.subr.bf16.mxu1 %v7487_v56  ;;  %v7515_v6 = vpack.c.bf16 %v6133_v7, %v6132_v17 }
 0x43f   : > { %7149 = vmatmul.mubr.msk.f32.gmra.mrb[24].mxu1 %vm3238_vm4, %v9590_v29 }
 0x440   : > { %7151 = vmatprep.mubr.msk.f32.mxu1 %vm3238_vm4, %v9594_v21  ;;  %7490 = vmatpush3.bf16.msra.mxu1 %v7487_v56  ;;  %v6135_v56 = vld [vmem:[%s10254_s4 + $0x1f8] sm:$0xff] }
 0x441   : > { %7492 = vmatprep.subr.bf16.mxu1 %v7491_v50 }
 0x443   : > { %7152 = vmatmul.mubr.msk.f32.gmra.mrb[26].mxu1 %vm3238_vm4, %v9598_v1 }
 0x444   : > { %7154 = vmatprep.mubr.msk.f32.mxu1 %vm3238_vm4, %v9602_v30 }
 0x447   : > { %7155 = vmatmul.mubr.msk.f32.gmra.mrb[28].mxu1 %vm3238_vm4, %v9606_v31 }
 0x448   : > { %7157 = vmatprep.mubr.msk.f32.mxu1 %vm3238_vm4, %v9610_v32 }
 0x44b   : > { %7158 = vmatmul.mubr.msk.f32.gmra.mrb[30].mxu1 %vm3238_vm4, %v9614_v33 }
 0x44c   : > { %7160 = vmatprep.mubr.msk.f32.mxu1 %vm3238_vm4, %v9894_v25 }
 0x44f   : > { %7161 = vmatmul.mubr.msk.f32.gmra.mrb[32].mxu1 %vm3238_vm4, %v9898_v26 }
 0x450   : > { %7179 = vmatprep.mubr.msk.f32.mxu1 %vm3238_vm4, %v9714_v51  ;;  %v6110_v51 = vld [vmem:[%s10254_s4 + $0x1b0] sm:$0xff] }
 0x453   : > { %7180 = vmatmul.mubr.msk.f32.vlgmr.msra.gmra.mrb[18].mxu1 %vm3238_vm4, %v9718_v58  ;;  %v7503_v58 = vpack.c.bf16 %v6111_v2, %v6110_v51 }
 0x454   : > { %7182 = vmatprep.mubr.msk.f32.mxu1 %vm3238_vm4, %v9728_v19  ;;  %7494 = vmatpush3.bf16.msra.mxu1 %v7491_v50 }
 0x455   : > { %7496 = vmatprep.subr.bf16.mxu1 %v7495_v11 }
 0x457   : > { %7183 = vmatmul.mubr.msk.f32.gmra.mrb[20].mxu1 %vm3238_vm4, %v9732_v53 }
 0x458   : > { %7185 = vmatprep.mubr.msk.f32.mxu1 %vm3238_vm4, %v9742_v59  ;;  %7498 = vmatpush3.bf16.msra.mxu1 %v7495_v11 }
 0x459   : > { %7500 = vmatprep.subr.bf16.mxu1 %v7499_v15 }
 0x45b   : > { %7186 = vmatmul.mubr.msk.f32.gmra.mrb[22].mxu1 %vm3238_vm4, %v9746_v62 }
 0x45c   : > { %7188 = vmatprep.mubr.msk.f32.mxu1 %vm3238_vm4, %v9750_v22  ;;  %7502 = vmatpush3.bf16.msra.mxu1 %v7499_v15 }
 0x45d   : > { %7504 = vmatprep.subr.bf16.mxu1 %v7503_v58 }
 0x45f   : > { %7189 = vmatmul.mubr.msk.f32.gmra.mrb[24].mxu1 %vm3238_vm4, %v9754_v24 }
 0x460   : > { %7191 = vmatprep.mubr.msk.f32.mxu1 %vm3238_vm4, %v9758_v42  ;;  %7506 = vmatpush3.bf16.msra.mxu1 %v7503_v58 }
 0x461   : > { %7508 = vmatprep.subr.bf16.mxu1 %v7507_v12 }
 0x463   : > { %7192 = vmatmul.mubr.msk.f32.gmra.mrb[26].mxu1 %vm3238_vm4, %v9762_v43 }
 0x464   : > { %7194 = vmatprep.mubr.msk.f32.mxu1 %vm3238_vm4, %v9766_v45 }
 0x467   : > { %7195 = vmatmul.mubr.msk.f32.gmra.mrb[28].mxu1 %vm3238_vm4, %v9770_v46 }
 0x468   : > { %7197 = vmatprep.mubr.msk.f32.mxu1 %vm3238_vm4, %v9774_v47 }
 0x46b   : > { %7198 = vmatmul.mubr.msk.f32.gmra.mrb[30].mxu1 %vm3238_vm4, %v9778_v49 }
 0x46c   : > { %7200 = vmatprep.mubr.msk.f32.mxu1 %vm3238_vm4, %v9954_v9 }
 0x46f   : > { %7201 = vmatmul.mubr.msk.f32.gmra.mrb[32].mxu1 %vm3238_vm4, %v9958_v44 }
 0x470   : > { %7219 = vmatprep.mubr.msk.f32.mxu1 %vm3238_vm4, %v9646_v10  ;;  %v6134_v10 = vld [vmem:[%s10254_s4 + $0x1f0] sm:$0xff] }
 0x473   : > { %7220 = vmatmul.mubr.msk.f32.vlgmr.msra.gmra.mrb[18].mxu1 %vm3238_vm4, %v9650_v13  ;;  %v7519_v13 = vpack.c.bf16 %v6135_v56, %v6134_v10 }
 0x474   : > { %7222 = vmatprep.mubr.msk.f32.mxu1 %vm3238_vm4, %v9660_v40  ;;  %7510 = vmatpush3.bf16.msra.mxu1 %v7507_v12  ;;  %v6152_v40 = vld [vmem:[%s10254_s4 + $0x200] sm:$0xff] }
 0x475   : > { %7512 = vmatprep.subr.bf16.mxu1 %v7511_v38 }
 0x477   : > { %7223 = vmatmul.mubr.msk.f32.gmra.mrb[20].mxu1 %vm3238_vm4, %v9664_v18  ;;  %v7523_v18 = vpack.c.bf16 %v6153_v55, %v6152_v40 }
 0x478   : > { %7225 = vmatprep.mubr.msk.f32.mxu1 %vm3238_vm4, %v9668_v28  ;;  %7514 = vmatpush3.bf16.msra.mxu1 %v7511_v38  ;;  %v4677_v28 = vld [vmem:[#allocation3 + $0xd8] sm:$0xff] }
 0x479   : > { %7516 = vmatprep.subr.bf16.mxu1 %v7515_v6 }
 0x47b   : > { %7226 = vmatmul.mubr.msk.f32.gmra.mrb[22].mxu1 %vm3238_vm4, %v9672_v34  ;;  %v4678_v34 = vld [vmem:[#allocation3 + $0xe0] sm:$0xff] }
 0x47c   : > { %7228 = vmatprep.mubr.msk.f32.mxu1 %vm3238_vm4, %v9676_v35  ;;  %7518 = vmatpush3.bf16.msra.mxu1 %v7515_v6  ;;  %v6154_v35 = vld [vmem:[%s10254_s4 + $0x210] sm:$0xff] }
 0x47d   : > { %7520 = vmatprep.subr.bf16.mxu1 %v7519_v13 }
 0x47f   : > { %7229 = vmatmul.mubr.msk.f32.gmra.mrb[24].mxu1 %vm3238_vm4, %v9680_v48  ;;  %v6155_v48 = vld [vmem:[%s10254_s4 + $0x218] sm:$0xff] }
 0x480   : > { %7231 = vmatprep.mubr.msk.f32.mxu1 %vm3238_vm4, %v9684_v52  ;;  %7522 = vmatpush3.bf16.msra.mxu1 %v7519_v13  ;;  %v7527_v52 = vpack.c.bf16 %v6155_v48, %v6154_v35 }
 0x481   : > { %7524 = vmatprep.subr.bf16.mxu1 %v7523_v18 }
 0x483   : > { %7232 = vmatmul.mubr.msk.f32.gmra.mrb[26].mxu1 %vm3238_vm4, %v9688_v4  ;;  %v6156_v4 = vld [vmem:[%s10254_s4 + $0x220] sm:$0xff] }
 0x484   : > { %7234 = vmatprep.mubr.msk.f32.mxu1 %vm3238_vm4, %v9692_v39  ;;  %v6157_v39 = vld [vmem:[%s10254_s4 + $0x228] sm:$0xff] }
 0x487   : > { %7235 = vmatmul.mubr.msk.f32.gmra.mrb[28].mxu1 %vm3238_vm4, %v9696_v5  ;;  %v7531_v5 = vpack.c.bf16 %v6157_v39, %v6156_v4 }
 0x488   : > { %7237 = vmatprep.mubr.msk.f32.mxu1 %vm3238_vm4, %v9834_v16  ;;  %v6159_v16 = vld [vmem:[%s10254_s4 + $0x238] sm:$0xff] }
 0x48b   : > { %7238 = vmatmul.mubr.msk.f32.gmra.mrb[30].mxu1 %vm3238_vm4, %v9838_v41 }
 0x48c   : > { %7240 = vmatprep.mubr.msk.f32.mxu1 %vm3238_vm4, %v4677_v28 }
 0x48f   : > { %7241 = vmatmul.mubr.msk.f32.gmra.mrb[32].mxu1 %vm3238_vm4, %v4678_v34 }
 0x490   : > { %7259 = vmatprep.mubr.msk.f32.mxu1 %vm3238_vm4, %v9564_v60  ;;  %v6158_v60 = vld [vmem:[%s10254_s4 + $0x230] sm:$0xff] }
 0x493   : > { %7260 = vmatmul.mubr.msk.f32.vlgmr.msra.gmra.mrb[18].mxu1 %vm3238_vm4, %v9568_v61  ;;  %v7535_v61 = vpack.c.bf16 %v6159_v16, %v6158_v60 }
 0x494   : > { %7262 = vmatprep.mubr.msk.f32.mxu1 %vm3238_vm4, %v9578_v23  ;;  %7526 = vmatpush3.bf16.msra.mxu1 %v7523_v18  ;;  %v4911_v23 = vld [vmem:[#allocation3 + $0xd9] sm:$0xff] }
 0x495   : > { %7528 = vmatprep.subr.bf16.mxu1 %v7527_v52 }
 0x497   : > { %7263 = vmatmul.mubr.msk.f32.gmra.mrb[20].mxu1 %vm3238_vm4, %v9582_v63  ;;  %v4912_v63 = vld [vmem:[#allocation3 + $0xe1] sm:$0xff] }
 0x498   : > { %7265 = vmatprep.mubr.msk.f32.mxu1 %vm3238_vm4, %v9586_v20  ;;  %7530 = vmatpush3.bf16.msra.mxu1 %v7527_v52  ;;  %v5145_v20 = vld [vmem:[#allocation3 + $0xda] sm:$0xff] }
 0x499   : > { %7532 = vmatprep.subr.bf16.mxu1 %v7531_v5 }
 0x49b   : > { %7266 = vmatmul.mubr.msk.f32.gmra.mrb[22].mxu1 %vm3238_vm4, %v9590_v29  ;;  %v5146_v29 = vld [vmem:[#allocation3 + $0xe2] sm:$0xff] }
 0x49c   : > { %7268 = vmatprep.mubr.msk.f32.mxu1 %vm3238_vm4, %v9594_v21  ;;  %7534 = vmatpush3.bf16.msra.mxu1 %v7531_v5  ;;  %v6176_v21 = vld [vmem:[%s10255_s5] ss:$0 sm:$0xff] }
 0x49d   : > { %7536 = vmatprep.subr.bf16.mxu1 %v7535_v61 }
 0x49f   : > { %7269 = vmatmul.mubr.msk.f32.gmra.mrb[24].mxu1 %vm3238_vm4, %v9598_v1 }
 0x4a0   : > { %7271 = vmatprep.mubr.msk.f32.mxu1 %vm3238_vm4, %v9602_v30  ;;  %7538 = vmatpush3.bf16.msra.mxu1 %v7535_v61 }
 0x4a3   : > { %7272 = vmatmul.mubr.msk.f32.gmra.mrb[26].mxu1 %vm3238_vm4, %v9606_v31 }
 0x4a4   : > { %7274 = vmatprep.mubr.msk.f32.mxu1 %vm3238_vm4, %v9610_v32 }
 0x4a7   : > { %7275 = vmatmul.mubr.msk.f32.gmra.mrb[28].mxu1 %vm3238_vm4, %v9614_v33 }
 0x4a8   : > { %7277 = vmatprep.mubr.msk.f32.mxu1 %vm3238_vm4, %v9894_v25 }
 0x4ab   : > { %7278 = vmatmul.mubr.msk.f32.gmra.mrb[30].mxu1 %vm3238_vm4, %v9898_v26 }
 0x4ac   : > { %7280 = vmatprep.mubr.msk.f32.mxu1 %vm3238_vm4, %v4911_v23 }
 0x4af   : > { %7281 = vmatmul.mubr.msk.f32.gmra.mrb[32].mxu1 %vm3238_vm4, %v4912_v63 }
 0x4b0   : > { %7299 = vmatprep.mubr.msk.f32.mxu1 %vm3238_vm4, %v9728_v19 }
 0x4b3   : > { %7300 = vmatmul.mubr.msk.f32.vlgmr.msra.gmra.mrb[18].mxu1 %vm3238_vm4, %v9732_v53 }
 0x4b4   : > { %7302 = vmatprep.mubr.msk.f32.mxu1 %vm3238_vm4, %v9742_v59 }
 0x4b7   : > { %7303 = vmatmul.mubr.msk.f32.gmra.mrb[20].mxu1 %vm3238_vm4, %v9746_v62 }
 0x4b8   : > { %7305 = vmatprep.mubr.msk.f32.mxu1 %vm3238_vm4, %v9750_v22 }
 0x4bb   : > { %7306 = vmatmul.mubr.msk.f32.gmra.mrb[22].mxu1 %vm3238_vm4, %v9754_v24 }
 0x4bc   : > { %7308 = vmatprep.mubr.msk.f32.mxu1 %vm3238_vm4, %v9758_v42 }
 0x4bf   : > { %7309 = vmatmul.mubr.msk.f32.gmra.mrb[24].mxu1 %vm3238_vm4, %v9762_v43 }
 0x4c0   : > { %7311 = vmatprep.mubr.msk.f32.mxu1 %vm3238_vm4, %v9766_v45 }
 0x4c3   : > { %7312 = vmatmul.mubr.msk.f32.gmra.mrb[26].mxu1 %vm3238_vm4, %v9770_v46 }
 0x4c4   : > { %7314 = vmatprep.mubr.msk.f32.mxu1 %vm3238_vm4, %v9774_v47 }
 0x4c7   : > { %7315 = vmatmul.mubr.msk.f32.gmra.mrb[28].mxu1 %vm3238_vm4, %v9778_v49 }
 0x4c8   : > { %7317 = vmatprep.mubr.msk.f32.mxu1 %vm3238_vm4, %v9954_v9 }
 0x4cb   : > { %7318 = vmatmul.mubr.msk.f32.gmra.mrb[30].mxu1 %vm3238_vm4, %v9958_v44 }
 0x4cc   : > { %7320 = vmatprep.mubr.msk.f32.mxu1 %vm3238_vm4, %v5145_v20 }
 0x4cf   : > { %7321 = vmatmul.mubr.msk.f32.gmra.mrb[32].mxu1 %vm3238_vm4, %v5146_v29  ;;  %vm5598_vm4 = vcmask 130048  }
 0x586   : > { %v7301_v1 = vpop.f32.mrb[18].mxu1 }
 0x587   : > { %v5373_v30 = vadd.f32 %v7301_v1, %v6176_v21  ;;  %v5270_v31 = vpop.f32.mrb[19].mxu1 }
 0x588   : > { %v5372_v33 = vadd.f32 %v6176_v21, %v5270_v31 }
 0x589   : > { %5536 = vrot.lane.b32.xlu0 %v5373_v30, %s8165_s11  ;;  %v5389_v37 = vsub.f32 0.0, %v5373_v30 }
 0x58a   : > { %v7304_v32 = vpop.f32.mrb[20].mxu1  ;;  %v5388_v12 = vsub.f32 0.0, %v5372_v33 }
 0x58b   : > { %v5375_v19 = vadd.f32 %v7304_v32, %v6176_v21  ;;  %v5280_v53 = vpop.f32.mrb[21].mxu1  ;;  %v5406_v9 = vmul.f32 1.442695, %v5389_v37 }
 0x58c   : > { %v5374_v62 = vadd.f32 %v6176_v21, %v5280_v53  ;;  %v5404_v36 = vmul.f32 1.442695, %v5388_v12 }
 0x58d   : > { %5534 = vrot.lane.b32.xlu0 %v5372_v33, %s8165_s11  ;;  %5540 = vrot.lane.b32.xlu1 %v5375_v19, %s8165_s11  ;;  %v5391_v44 = vsub.f32 0.0, %v5375_v19  ;;  %7941 = vpow2.f32 %v5406_v9 }
 0x58e   : > { %v7307_v59 = vpop.f32.mrb[22].mxu1  ;;  %v5390_v0 = vsub.f32 0.0, %v5374_v62  ;;  %7943 = vpow2.f32 %v5404_v36 }
 0x58f   : > { %v5290_v22 = vpop.f32.mrb[23].mxu1  ;;  %v5377_v43 = vadd.f32 %v7307_v59, %v6176_v21  ;;  %v5410_v38 = vmul.f32 1.442695, %v5391_v44 }
 0x590   : > { %v5376_v24 = vadd.f32 %v6176_v21, %v5290_v22  ;;  %v5408_v7 = vmul.f32 1.442695, %v5390_v0 }
 0x591   : > { %5538 = vrot.lane.b32.xlu1 %v5374_v62, %s8165_s11  ;;  %v5393_v6 = vsub.f32 0.0, %v5377_v43  ;;  %7945 = vpow2.f32 %v5410_v38  ;;  %v5488_v38 = vld [vmem:[%s10127_s14 + $0x10] sm:$0xff] }
 0x592   : > { %5542 = vrot.lane.b32.xlu0 %v5376_v24, %s8165_s11  ;;  %v7310_v42 = vpop.f32.mrb[24].mxu1  ;;  %v5392_v17 = vsub.f32 0.0, %v5376_v24  ;;  %7947 = vpow2.f32 %v5408_v7 }
 0x593   : > { %v5300_v45 = vpop.f32.mrb[25].mxu1  ;;  %v5379_v49 = vadd.f32 %v7310_v42, %v6176_v21  ;;  %v5414_v13 = vmul.f32 1.442695, %v5393_v6 }
 0x594   : > { %v5378_v46 = vadd.f32 %v6176_v21, %v5300_v45  ;;  %v5412_v10 = vmul.f32 1.442695, %v5392_v17 }
 0x595   : > { %5544 = vrot.lane.b32.xlu1 %v5377_v43, %s8165_s11  ;;  %v5395_v40 = vsub.f32 0.0, %v5379_v49 }
 0x596   : > { %5546 = vrot.lane.b32.xlu0 %v5378_v46, %s8165_s11  ;;  %v7313_v47 = vpop.f32.mrb[26].mxu1  ;;  %v5394_v56 = vsub.f32 0.0, %v5378_v46  ;;  %7949 = vpow2.f32 %v5412_v10  ;;  %v5490_v10 = vld [vmem:[%s10127_s14 + $0x20] sm:$0xff] }
 0x597   : > { %v5310_v41 = vpop.f32.mrb[27].mxu1  ;;  %v5381_v25 = vadd.f32 %v7313_v47, %v6176_v21  ;;  %v7942_v55 = vpop.eup %7941  ;;  %7951 = vpow2.f32 %v5414_v13  ;;  %v5418_v35 = vmul.f32 1.442695, %v5395_v40 }
 0x598   : > { %v5380_v57 = vadd.f32 %v6176_v21, %v5310_v41  ;;  %v5416_v18 = vmul.f32 1.442695, %v5394_v56  ;;  %v7944_v34 = vpop.eup %7943  ;;  %v5437_v52 = vadd.f32 1.0, %v7942_v55 }
 0x599   : > { %5548 = vrot.lane.b32.xlu1 %v5379_v49, %s8165_s11  ;;  %v5397_v48 = vsub.f32 0.0, %v5381_v25  ;;  %v5436_v60 = vadd.f32 1.0, %v7944_v34  ;;  %v5487_v49 = vld [vmem:[%s10127_s14 + $0x8] sm:$0xff] }
 0x59a   : > { %5550 = vrot.lane.b32.xlu0 %v5380_v57, %s8165_s11  ;;  %v7316_v50 = vpop.f32.mrb[28].mxu1  ;;  %v5396_v28 = vsub.f32 0.0, %v5380_v57  ;;  %7953 = vpow2.f32 %v5416_v18 }
 0x59b   : > { %v5320_v26 = vpop.f32.mrb[29].mxu1  ;;  %v5383_v11 = vadd.f32 %v7316_v50, %v6176_v21  ;;  %v7946_v4 = vpop.eup %7945  ;;  %7955 = vpow2.f32 %v5418_v35  ;;  %v5422_v16 = vmul.f32 1.442695, %v5397_v48  ;;  %v5491_v48 = vld [vmem:[%s10127_s14 + $0x28] sm:$0xff] }
 0x59c   : > { %v5382_v8 = vadd.f32 %v6176_v21, %v5320_v26  ;;  %v5420_v39 = vmul.f32 1.442695, %v5396_v28  ;;  %v7948_v61 = vpop.eup %7947  ;;  %7957 = vrcp.f32 %v5437_v52  ;;  %v5439_v23 = vadd.f32 1.0, %v7946_v4 }
 0x59d   : > { %5552 = vrot.lane.b32.xlu1 %v5381_v25, %s8165_s11  ;;  %v5399_v63 = vsub.f32 0.0, %v5383_v11  ;;  %v5438_v1 = vadd.f32 1.0, %v7948_v61 }
 0x59e   : > { %5554 = vrot.lane.b32.xlu0 %v5382_v8, %s8165_s11  ;;  %v7319_v3 = vpop.f32.mrb[30].mxu1  ;;  %v5398_v5 = vsub.f32 0.0, %v5382_v8  ;;  %7959 = vpow2.f32 %v5420_v39 }
 0x59f   : > { %v5330_v14 = vpop.f32.mrb[31].mxu1  ;;  %v10110_v51 = vadd.f32 %v7319_v3, %v6176_v21  ;;  %7961 = vrcp.f32 %v5436_v60  ;;  %v5426_v31 = vmul.f32 1.442695, %v5399_v63 }
 0x5a0   : > { %v5384_v54 = vadd.f32 %v6176_v21, %v5330_v14  ;;  %v5424_v20 = vmul.f32 1.442695, %v5398_v5  ;;  %7963 = vpow2.f32 %v5422_v16  ;;  %v5492_v5 = vld [vmem:[%s10127_s14 + $0x30] sm:$0xff] }
 0x5a1   : > { %5556 = vrot.lane.b32.xlu1 %v5383_v11, %s8165_s11  ;;  %7965 = vrcp.f32 %v5439_v23  ;;  %v5401_v32 = vsub.f32 0.0, %v10110_v51 }
 0x5a2   : > { %5558 = vrot.lane.b32.xlu0 %v5384_v54, %s8165_s11  ;;  %v7322_v15 = vpop.f32.mrb[32].mxu1  ;;  %v5400_v29 = vsub.f32 0.0, %v5384_v54  ;;  %7967 = vpow2.f32 %v5424_v20  ;;  %v5486_v54 = vld [vmem:[%s10127_s14] sm:$0xff] }
 0x5a3   : > { %v5340_v2 = vpop.f32.mrb[33].mxu1  ;;  %v10118_v27 = vadd.f32 %v7322_v15, %v6176_v21  ;;  %7969 = vrcp.f32 %v5438_v1  ;;  %v5430_v22 = vmul.f32 1.442695, %v5401_v32  ;;  %v5489_v15 = vld [vmem:[%s10127_s14 + $0x18] sm:$0xff] }
 0x5a4   : > { %v10112_v58 = vadd.f32 %v6176_v21, %v5340_v2  ;;  %v7950_v21 = vpop.eup %7949  ;;  %v5428_v33 = vmul.f32 1.442695, %v5400_v29  ;;  %7971 = vpow2.f32 %v5426_v31  ;;  %v5493_v1 = vld [vmem:[%s10127_s14 + $0x38] sm:$0xff] }
 0x5a5   : > { %5560 = vrot.lane.b32.xlu1 %v10110_v51, %s8165_s11  ;;  %v7952_v30 = vpop.eup %7951  ;;  %v5440_v53 = vadd.f32 1.0, %v7950_v21  ;;  %v5403_v24 = vsub.f32 0.0, %v10118_v27 }
 0x5a6   : > { %5562 = vrot.lane.b32.xlu0 %v10112_v58, %s8165_s11  ;;  %v5402_v19 = vsub.f32 0.0, %v10112_v58  ;;  %v7954_v59 = vpop.eup %7953  ;;  %v5441_v62 = vadd.f32 1.0, %v7952_v30  ;;  %7973 = vpow2.f32 %v5428_v33  ;;  %v5494_v33 = vld [vmem:[%s10127_s14 + $0x40] sm:$0xff] }
 0x5a7   : > { %v7956_v42 = vpop.eup %7955  ;;  %7975 = vrcp.f32 %v5440_v53  ;;  %v5442_v46 = vadd.f32 1.0, %v7954_v59  ;;  %v5434_v57 = vmul.f32 1.442695, %v5403_v24 }
 0x5a8   : > { %v5432_v43 = vmul.f32 1.442695, %v5402_v19  ;;  %v7958_v45 = vpop.eup %7957  ;;  %7977 = vrcp.f32 %v5441_v62  ;;  %v5443_v25 = vadd.f32 1.0, %v7956_v42  ;;  %v5495_v42 = vld [vmem:[%s10127_s14 + $0x48] sm:$0xff] }
 0x5a9   : > { %5564 = vrot.lane.b32.xlu1 %v10118_v27, %s8165_s11  ;;  %v7960_v47 = vpop.eup %7959  ;;  %7979 = vpow2.f32 %v5430_v22  ;;  %v5503_v3 = vmul.f32 %v7958_v45, %v5487_v49  ;;  %s8035_s11 = scalar_lea.vmem %s10183_s28, 2048 }
 0x5aa   : > { %v7962_v41 = vpop.eup %7961  ;;  %7981 = vpow2.f32 %v5432_v43  ;;  %v5444_v8 = vadd.f32 1.0, %v7960_v47  ;;  %v5496_v47 = vld [vmem:[%s10127_s14 + $0x50] sm:$0xff]  ;;  %p8036_p4 = scmp.ne.s32.totalorder %s10183_s28, %s8035_s11 }
 0x5ab   : > { %v7964_v50 = vpop.eup %7963  ;;  %7983 = vrcp.f32 %v5442_v46  ;;  %v5502_v12 = vmul.f32 %v7962_v41, %v5486_v54 }
 0x5ac   : > { %v7966_v26 = vpop.eup %7965  ;;  %7985 = vpow2.f32 %v5434_v57  ;;  %v5445_v58 = vadd.f32 1.0, %v7964_v50  ;;  %p8037_p1 = pnand %p8036_p4, %p10298_p0 }
 0x5ad   : > { %v7968_v11 = vpop.eup %7967  ;;  %7987 = vrcp.f32 %v5443_v25  ;;  %v5505_v9 = vmul.f32 %v7966_v26, %v5489_v15  ;;  %v5497_v26 = vld [vmem:[%s10127_s14 + $0x58] sm:$0xff] }
 0x5ae   : > { %v7970_v2 = vpop.eup %7969  ;;  %7989 = vrcp.f32 %v5444_v8  ;;  %v5446_v37 = vadd.f32 1.0, %v7968_v11  ;;  %p8038_p6 = pneg %p8037_p1 }
 0x5af   : > { %v7972_v27 = vpop.eup %7971  ;;  %7991 = vrcp.f32 %v5445_v58  ;;  %v5504_v18 = vmul.f32 %v7970_v2, %v5488_v38 }
 0x5b0   : > { %v7974_v44 = vpop.eup %7973  ;;  %v5447_v13 = vadd.f32 1.0, %v7972_v27  ;;  %7993 = vrcp.f32 %v5446_v37  ;;  %v5499_v27 = vld [vmem:[%s10127_s14 + $0x68] sm:$0xff] }
 0x5b1   : > { %v7976_v17 = vpop.eup %7975  ;;  %v5448_v55 = vadd.f32 1.0, %v7974_v44  ;;  %v5500_v44 = vld [vmem:[%s10127_s14 + $0x70] sm:$0xff] }
 0x5b2   : > { %v7978_v56 = vpop.eup %7977  ;;  %v5506_v35 = vmul.f32 %v7976_v17, %v5490_v10  ;;  %7995 = vrcp.f32 %v5447_v13 }
 0x5b3   : > { %v7980_v40 = vpop.eup %7979  ;;  %7997 = vrcp.f32 %v5448_v55  ;;  %v5507_v63 = vmul.f32 %v7978_v56, %v5491_v48 }
 0x5b4   : > { %v7982_v28 = vpop.eup %7981  ;;  %v5449_v60 = vadd.f32 1.0, %v7980_v40 }
 0x5b5   : > { %v7984_v52 = vpop.eup %7983  ;;  %v5450_v23 = vadd.f32 1.0, %v7982_v28 }
 0x5b6   : > { %v7986_v61 = vpop.eup %7985  ;;  %v5508_v21 = vmul.f32 %v7984_v52, %v5492_v5  ;;  %7999 = vrcp.f32 %v5449_v60 }
 0x5b7   : > { %v7988_v20 = vpop.eup %7987  ;;  %v5451_v19 = vadd.f32 1.0, %v7986_v61  ;;  %8001 = vrcp.f32 %v5450_v23 }
 0x5b8   : > { %v7990_v30 = vpop.eup %7989  ;;  %v5509_v59 = vmul.f32 %v7988_v20, %v5493_v1 }
 0x5b9   : > { %v7992_v62 = vpop.eup %7991  ;;  %v5510_v24 = vmul.f32 %v7990_v30, %v5494_v33  ;;  %8003 = vrcp.f32 %v5451_v19 }
 0x5ba   : > { %v7994_v43 = vpop.eup %7993  ;;  %v5511_v41 = vmul.f32 %v7992_v62, %v5495_v42 }
 0x5bb   : > { %v5512_v25 = vmul.f32 %v7994_v43, %v5496_v47 }
 0x5bc   : > { %v7996_v57 = vpop.eup %7995 }
 0x5bd   : > { %v7998_v8 = vpop.eup %7997  ;;  %v5513_v15 = vmul.f32 %v7996_v57, %v5497_v26 }
 0x5fb   : > { %v5537_v14 = vpop.permute.xlu0 %5536 }
 0x5fc   : > { %v5583_v51 = vadd.f32 %v5537_v14, %v5503_v3  ;;  %v5498_v14 = vld [vmem:[%s10127_s14 + $0x60] sm:$0xff] }
 0x5fd   : > { %v5514_v58 = vmul.f32 %v7998_v8, %v5498_v14 }
 0x5fe   : > { %5600 = vst.msk [vmem:[%s8445_s12 + $0x8] sm:$0xff] %vm5598_vm4, %v5583_v51  ;;  %v8000_v51 = vpop.eup %7999 }
 0x5ff   : > { %v5535_v36 = vpop.permute.xlu0 %5534  ;;  %v5541_v0 = vpop.permute.xlu1 %5540 }
 0x600   : > { %v5582_v7 = vadd.f32 %v5535_v36, %v5502_v12  ;;  %v5585_v6 = vadd.f32 %v5541_v0, %v5505_v9  ;;  %v8002_v37 = vpop.eup %8001  ;;  %v5515_v0 = vmul.f32 %v8000_v51, %v5499_v27 }
 0x601   : > { %v8004_v38 = vpop.eup %8003 }
 0x602   : > { %5599 = vst.msk [vmem:[%s8445_s12] sm:$0xff] %vm5598_vm4, %v5582_v7  ;;  %5602 = vst.msk [vmem:[%s8445_s12 + $0x18] sm:$0xff] %vm5598_vm4, %v5585_v6  ;;  %v5516_v7 = vmul.f32 %v8002_v37, %v5500_v44  ;;  %v5501_v6 = vld [vmem:[%s10127_s14 + $0x78] sm:$0xff]  ;;  %s8039_s14 = sshll.u32 %s8166_s8, 4  ;;  %s8040_s14 = int_to_ptr.vmem [resolvable:$false] %s8039_s14 }
 0x603   : > { %v5539_v34 = vpop.permute.xlu1 %5538  ;;  %v5517_v40 = vmul.f32 %v8004_v38, %v5501_v6  ;;  %s8041_s13 = scalar_lea.vmem %s8040_s14, 4096  ;;  %p8042_p9 = scmp.lt.s32.totalorder %s10183_s28, %s8040_s14 }
 0x604   : > { %v5584_v4 = vadd.f32 %v5539_v34, %v5504_v18  ;;  %v5543_v39 = vpop.permute.xlu0 %5542  ;;  %p8043_p3 = scmp.lt.s32.totalorder %s8041_s13, %s8035_s11 }
 0x605   : > { %v5586_v16 = vadd.f32 %v5543_v39, %v5506_v35 }
 0x606   : > { %5601 = vst.msk [vmem:[%s8445_s12 + $0x10] sm:$0xff] %vm5598_vm4, %v5584_v4  ;;  %p8044_p11 = por %p8043_p3, %p8042_p9 }
 0x607   : > { %5603 = vst.msk [vmem:[%s8445_s12 + $0x20] sm:$0xff] %vm5598_vm4, %v5586_v16  ;;  %v5545_v29 = vpop.permute.xlu1 %5544 }
 0x608   : > { %v5587_v31 = vadd.f32 %v5545_v29, %v5507_v63  ;;  %v5547_v32 = vpop.permute.xlu0 %5546  ;;  %p8045_p13 = pnand %p8044_p11, %p8038_p6 }
 0x609   : > { %v5588_v53 = vadd.f32 %v5547_v32, %v5508_v21 }
 0x60a   : > { %5604 = vst.msk [vmem:[%s8445_s12 + $0x28] sm:$0xff] %vm5598_vm4, %v5587_v31 }
 0x60b   : > { %5605 = vst.msk [vmem:[%s8445_s12 + $0x30] sm:$0xff] %vm5598_vm4, %v5588_v53  ;;  %v5549_v22 = vpop.permute.xlu1 %5548 }
 0x60c   : > { %v5589_v45 = vadd.f32 %v5549_v22, %v5509_v59  ;;  %v5551_v46 = vpop.permute.xlu0 %5550 }
 0x60d   : > { %v5590_v49 = vadd.f32 %v5551_v46, %v5510_v24 }
 0x60e   : > { %5606 = vst.msk [vmem:[%s8445_s12 + $0x38] sm:$0xff] %vm5598_vm4, %v5589_v45 }
 0x60f   : > { %5607 = vst.msk [vmem:[%s8445_s12 + $0x40] sm:$0xff] %vm5598_vm4, %v5590_v49  ;;  %v5553_v50 = vpop.permute.xlu1 %5552 }
 0x610   : > { %v5591_v3 = vadd.f32 %v5553_v50, %v5511_v41  ;;  %v5555_v11 = vpop.permute.xlu0 %5554 }
 0x611   : > { %v5592_v54 = vadd.f32 %v5555_v11, %v5512_v25 }
 0x612   : > { %5608 = vst.msk [vmem:[%s8445_s12 + $0x48] sm:$0xff] %vm5598_vm4, %v5591_v3 }
 0x613   : > { %5609 = vst.msk [vmem:[%s8445_s12 + $0x50] sm:$0xff] %vm5598_vm4, %v5592_v54  ;;  %v5557_v2 = vpop.permute.xlu1 %5556 }
 0x614   : > { %v5593_v12 = vadd.f32 %v5557_v2, %v5513_v15  ;;  %v5559_v9 = vpop.permute.xlu0 %5558 }
 0x615   : > { %v5594_v36 = vadd.f32 %v5559_v9, %v5514_v58 }
 0x616   : > { %5610 = vst.msk [vmem:[%s8445_s12 + $0x58] sm:$0xff] %vm5598_vm4, %v5593_v12 }
 0x617   : > { %5611 = vst.msk [vmem:[%s8445_s12 + $0x60] sm:$0xff] %vm5598_vm4, %v5594_v36  ;;  %v5561_v17 = vpop.permute.xlu1 %5560 }
 0x618   : > { %v5595_v10 = vadd.f32 %v5561_v17, %v5515_v0  ;;  %v5563_v56 = vpop.permute.xlu0 %5562 }
 0x619   : > { %v5596_v13 = vadd.f32 %v5563_v56, %v5516_v7 }
 0x61a   : > { %5612 = vst.msk [vmem:[%s8445_s12 + $0x68] sm:$0xff] %vm5598_vm4, %v5595_v10 }
 0x61b   : > { %5613 = vst.msk [vmem:[%s8445_s12 + $0x70] sm:$0xff] %vm5598_vm4, %v5596_v13  ;;  %v5565_v55 = vpop.permute.xlu1 %5564 }
 0x61c   : > { %v5597_v18 = vadd.f32 %v5565_v55, %v5517_v40 }
 0x61e   : > { %5614 = vst.msk [vmem:[%s8445_s12 + $0x78] sm:$0xff] %vm5598_vm4, %v5597_v18 }
 0x61f   : > { %8048 = shalt.err (!%p8045_p13)
}
 0x620   : > { %s8049_s12 = scalar_lea.hbm %s10181_s29, 2048  ;;  %s8053_s27 = scalar_lea.hbm %s10256_s6, 8192 }
 0x621   : > { %p8050_p5 = scmp.ne.s32.totalorder %s10181_s29, %s8049_s12  ;;  %p8054_p12 = scmp.lt.u32.totalorder %s10181_s29, %s10256_s6 }
 0x622   : > { %p8055_p7 = scmp.lt.u32.totalorder %s8053_s27, %s8049_s12  ;;  %p8057_p4 = scmp.lt.u32.totalorder %s8049_s12, %s10181_s29 }
 0x623   : > { %p8051_p8 = pnand %p8050_p5, %p10298_p0 }
 0x624   : > { %p8056_p2 = por %p8055_p7, %p8054_p12 }
 0x625   : > { %p8052_p10 = pneg %p8051_p8 }
 0x626   : > { %p8058_p1 = por %p8057_p4, %p8056_p2 }
 0x628   : > { %p8059_p6 = pnand %p8058_p1, %p8052_p10 }
 0x62a   : > { %8062 = shalt.err (!%p8059_p6)
}
 0x62b   : > { %s8167_s17 = smov 128   ;;  %s8168_s11 = smov 8  }
 0x62c   : > { %7833 = dma.vmem_to_hbm [thread:$0]  (%p10298_p0), %s10183_s28, 2048, %s10181_s29, %s10189_s18, %s8167_s17, %s8167_s17, %s8168_s11  }
 0x62d PF: > { %p7844_p9 = scmp.ge.s32.totalorder %s8157_s7, 2  ;;  %s5647_s8 = sand.u32 1, %s8117_s21  }
 0x62e   : > { %p10299_p3 = scmp.ne.s32.totalorder %s10273_s10, 0  ;;  %s5648_s14 = scalar_lea.sflag [#allocation6], %s5647_s8 }
 0x630   : > { %p7840_p11 = pnand %p7844_p9, %p10299_p3 }
 0x632   : > { %8112 = dma.done.wait (!%p7840_p11), %s5648_s14, 2048  }
 0x633   : > { %8114 = vsyncadd (!%p7840_p11), %s5648_s14, 4294965248  ;;  %s22_s7 = sadd.s32 1, %s8157_s7   ;;  %s10300_s27 = sld [smem:[#allocation10_spill]] }
 0x634   : > { %p19_p13 = scmp.ge.s32.totalorder %s22_s7, 6   ;;  %s10301_s28 = sld [smem:[#allocation11_spill]] }
 0x635   : > { %s10302_s29 = sld [smem:[#allocation12_spill]]  ;;  %s10303_s30 = sld [smem:[#allocation13_spill]] }
 0x636   : > { %s10304_s21 = smov %s8121_s22  ;;  %s10305_s22 = smov %s8125_s23 }
 0x637   : > { %s10306_s23 = smov %s8294_s24  ;;  %s10307_s24 = smov %s8133_s25 }
 0x638   : > { %s10308_s25 = smov %s8137_s26  ;;  %s10309_s26 = smov %s8291_s20 }
 0x639   :  { %21 = sbr.rel (!%p19_p13) target bundleno = 9 (0x9), region = 124 }
 0x640   :  { %5653 = vsyncpa [#allocation5], 1 }
 0x641   :  { %5655 = vsyncpa [#allocation5 + $0x1], 1 }
 0x642   :  { %5656 = vsyncpa [#allocation6], 1 }
 0x643   :  { %5658 = vsyncpa [#allocation6 + $0x1], 1 }

</bundles_post_ra>
